<compile_context>
chip_gen: v6e
topology: v6e:2x2x1
jax: 0.10.0
libtpu: 0.0.40
codegen_flags: <defaults>
</compile_context>

<pallas_src>
import functools

import jax
import jax.numpy as jnp
from jax.experimental import pallas as pl
from jax.experimental.pallas import tpu as pltpu


# ----------------------------------------------------------------------------
# Pallas kernel: fused  out = act(X @ W + b)   (act = SiLU or identity)
#   X, W in bf16 (MXU native), accumulation / bias / SiLU in f32.
# ----------------------------------------------------------------------------
def _gemm_bias_act_kernel(x_ref, w_ref, b_ref, o_ref, *, act):
    acc = jnp.dot(x_ref[...], w_ref[...], preferred_element_type=jnp.float32)
    acc = acc + b_ref[...]                       # (TM, N) + (1, N) broadcast, f32
    if act:
        acc = acc * jax.nn.sigmoid(acc)          # SiLU in f32 (EUP path)
    o_ref[...] = acc.astype(o_ref.dtype)


def _round_up(v, m):
    return (v + m - 1) // m * m


def _pick_tm(m8):
    """Row-tile size: big tiles, but keep >=2 grid steps when M is large (v7x)."""
    if m8 >= 1024:
        return 512
    if m8 >= 512:
        return 256
    return m8                                    # single step for tiny M


def pallas_gemm_bias_act(x2d, w2d, bias2d, act, out_dtype):
    """x2d: (M, K) bf16, w2d: (K, N) bf16, bias2d: (1, N) f32 -> (M, N) out_dtype."""
    M, K = x2d.shape
    N = w2d.shape[1]

    M8 = _round_up(M, 8)
    TM = _pick_tm(M8)
    Mp = _round_up(M8, TM)
    if Mp != M:
        x2d = jnp.pad(x2d, ((0, Mp - M), (0, 0)))   # rows-only pad (rare)

    out_bytes = jnp.dtype(out_dtype).itemsize
    cost = pl.CostEstimate(
        flops=2 * Mp * K * N,
        transcendentals=Mp * N if act else 0,
        bytes_accessed=Mp * K * 2 + K * N * 2 + N * 4 + Mp * N * out_bytes,
    )

    kernel = functools.partial(_gemm_bias_act_kernel, act=act)
    out = pl.pallas_call(
        kernel,
        out_shape=jax.ShapeDtypeStruct((Mp, N), out_dtype),
        grid=(Mp // TM,),
        in_specs=[
            pl.BlockSpec((TM, K), lambda i: (i, 0)),   # activation rows (tiled)
            pl.BlockSpec((K, N), lambda i: (0, 0)),    # weights resident
            pl.BlockSpec((1, N), lambda i: (0, 0)),    # bias resident
        ],
        out_specs=pl.BlockSpec((TM, N), lambda i: (i, 0)),
        compiler_params=pltpu.CompilerParams(
            dimension_semantics=("parallel",),
            vmem_limit_bytes=32 * 1024 * 1024,         # safe on v5e/v6e/v7x
        ),
        cost_estimate=cost,
    )(x2d, w2d, bias2d)
    return out[:M]


# ----------------------------------------------------------------------------
# Conv = (im2col for k>1) + Pallas fused GEMM.  1x1 convs are a pure reshape.
# ----------------------------------------------------------------------------
def _im2col(x, kh, kw, stride, pad):
    """x: (B, H, W, C) -> (B, Ho, Wo, kh*kw*C), patch ordering (kh, kw, C)."""
    x = jnp.pad(x, ((0, 0), (pad, pad), (pad, pad), (0, 0)))
    _, Hp, Wp, _ = x.shape
    Ho = (Hp - kh) // stride + 1
    Wo = (Wp - kw) // stride + 1
    patches = []
    for i in range(kh):
        for j in range(kw):
            patches.append(x[:, i:i + Ho * stride:stride, j:j + Wo * stride:stride, :])
    return jnp.concatenate(patches, axis=-1), Ho, Wo


def conv2d(x, layer, stride=1, act=True):
    """x: (B,H,W,Cin) bf16/f32, layer: prepared params. 'same'-style padding kh//2."""
    kh, kw = layer["kh"], layer["kw"]
    cin, cout = layer["cin"], layer["cout"]
    B = x.shape[0]
    if kh == 1 and kw == 1 and stride == 1:
        Ho, Wo = x.shape[1], x.shape[2]
        x2d = x.reshape(B * Ho * Wo, cin)
    else:
        cols, Ho, Wo = _im2col(x, kh, kw, stride, kh // 2)
        x2d = cols.reshape(B * Ho * Wo, kh * kw * cin)
    out_dtype = jnp.bfloat16 if act else jnp.float32
    y = pallas_gemm_bias_act(x2d.astype(jnp.bfloat16), layer["w2d"], layer["b"],
                             act, out_dtype)
    return y.reshape(B, Ho, Wo, cout)


def maxpool_same(x, k=5):
    p = k // 2
    init = jnp.asarray(-jnp.inf, x.dtype)
    return jax.lax.reduce_window(
        x, init, jax.lax.max,
        window_dimensions=(1, k, k, 1), window_strides=(1, 1, 1, 1),
        padding=[(0, 0), (p, p), (p, p), (0, 0)])


# ----------------------------------------------------------------------------
# Parameter construction (deterministic, synthetic) — weights prepared ONCE:
# reshaped to (K, N), cast to bf16, bias to (1, N) f32.
# ----------------------------------------------------------------------------
def _prep_layer(w, b):
    kh, kw, cin, cout = w.shape
    return {
        "w2d": w.reshape(kh * kw * cin, cout).astype(jnp.bfloat16),
        "b": b.astype(jnp.float32)[None, :],
        "kh": kh, "kw": kw, "cin": cin, "cout": cout,
    }


def _fuse_parallel(wa, ba, wb, bb):
    """Two convs reading the SAME input -> one conv, outputs concatenated."""
    w = jnp.concatenate([wa, wb], axis=3)
    b = jnp.concatenate([ba, bb], axis=0)
    return w, b


def _fuse_blockdiag(wa, ba, wb, bb):
    """Two convs on disjoint (concatenated) inputs -> one block-diagonal conv."""
    kh, kw, cai, cao = wa.shape
    _, _, cbi, cbo = wb.shape
    w = jnp.zeros((kh, kw, cai + cbi, cao + cbo), jnp.float32)
    w = w.at[:, :, :cai, :cao].set(wa)
    w = w.at[:, :, cai:, cao:].set(wb)
    b = jnp.concatenate([ba, bb], axis=0)
    return w, b


def init_yolov8_params(key, nc=1, reg_max=16):
    keys = iter(jax.random.split(key, 40))

    def raw(kh, kw, cin, cout, scale=0.1):
        kw_key, kb_key = jax.random.split(next(keys))
        w = scale * jax.random.normal(kw_key, (kh, kw, cin, cout), jnp.float32)
        b = scale * jax.random.normal(kb_key, (cout,), jnp.float32)
        return w, b

    p = {}
    # ---- backbone ----
    p["stem"] = _prep_layer(*raw(3, 3, 3, 16))        # /2
    p["down1"] = _prep_layer(*raw(3, 3, 16, 32))      # /4
    p["c2f1_cv1"] = _prep_layer(*raw(1, 1, 32, 32))
    p["c2f1_m1"] = _prep_layer(*raw(3, 3, 16, 16))
    p["c2f1_m2"] = _prep_layer(*raw(3, 3, 16, 16))
    p["c2f1_cv2"] = _prep_layer(*raw(1, 1, 48, 32))
    p["down2"] = _prep_layer(*raw(3, 3, 32, 64))      # /8
    p["c2f2_cv1"] = _prep_layer(*raw(1, 1, 64, 64))
    p["c2f2_m1"] = _prep_layer(*raw(3, 3, 32, 32))
    p["c2f2_m2"] = _prep_layer(*raw(3, 3, 32, 32))
    p["c2f2_cv2"] = _prep_layer(*raw(1, 1, 96, 64))
    p["sppf_cv1"] = _prep_layer(*raw(1, 1, 64, 32))
    p["sppf_cv2"] = _prep_layer(*raw(1, 1, 128, 64))
    # ---- decoupled head (box / cls), branch-fused into 3 convs ----
    b1w, b1b = raw(3, 3, 64, 32)
    c1w, c1b = raw(3, 3, 64, 32)
    b2w, b2b = raw(3, 3, 32, 32)
    c2w, c2b = raw(3, 3, 32, 32)
    b3w, b3b = raw(1, 1, 32, 4 * reg_max)
    c3w, c3b = raw(1, 1, 32, nc)
    p["head1"] = _prep_layer(*_fuse_parallel(b1w, b1b, c1w, c1b))   # shared input x
    p["head2"] = _prep_layer(*_fuse_blockdiag(b2w, b2b, c2w, c2b))  # box|cls block-diag
    p["head3"] = _prep_layer(*_fuse_blockdiag(b3w, b3b, c3w, c3b))  # -> [4*reg_max | nc]
    return p


# ----------------------------------------------------------------------------
# Model forward
# ----------------------------------------------------------------------------
def _c2f_lite(x, p, pre):
    y = conv2d(x, p[pre + "_cv1"])
    c = y.shape[-1] // 2
    y1, y2 = y[..., :c], y[..., c:]
    m = conv2d(y2, p[pre + "_m1"])
    m = conv2d(m, p[pre + "_m2"]) + y2
    cat = jnp.concatenate([y1, y2, m], axis=-1)
    return conv2d(cat, p[pre + "_cv2"])


def yolov8_forward(x_nchw, p):
    """x_nchw: (B, 3, H, W) float32 -> (B, 4*reg_max + nc, H/8, W/8) float32."""
    x = jnp.transpose(x_nchw, (0, 2, 3, 1)).astype(jnp.bfloat16)   # NCHW -> NHWC bf16
    # backbone
    x = conv2d(x, p["stem"], stride=2)
    x = conv2d(x, p["down1"], stride=2)
    x = _c2f_lite(x, p, "c2f1")
    x = conv2d(x, p["down2"], stride=2)
    x = _c2f_lite(x, p, "c2f2")
    # SPPF
    y = conv2d(x, p["sppf_cv1"])
    p1 = maxpool_same(y, 5)
    p2 = maxpool_same(p1, 5)
    p3 = maxpool_same(p2, 5)
    x = conv2d(jnp.concatenate([y, p1, p2, p3], axis=-1), p["sppf_cv2"])
    # head (branch-fused: box||cls in one GEMM per stage)
    h = conv2d(x, p["head1"])
    h = conv2d(h, p["head2"])
    out = conv2d(h, p["head3"], act=False)            # (B, H/8, W/8, 4*reg_max + nc) f32
    return jnp.transpose(out, (0, 3, 1, 2)).astype(jnp.float32)    # NHWC -> NCHW


if __name__ == "__main__":
    key = jax.random.PRNGKey(0)
    pkey, xkey = jax.random.split(key)
    params = init_yolov8_params(pkey, nc=1, reg_max=16)
    x = jax.random.normal(xkey, (2, 3, 32, 32), jnp.float32)       # NCHW input

    fwd = jax.jit(lambda xx: yolov8_forward(xx, params))
    out = fwd(x)
    jax.block_until_ready(out)
    assert out.shape == (2, 4 * 16 + 1, 4, 4), out.shape
    assert jnp.all(jnp.isfinite(out))
    print("KERNEL_OK")
</pallas_src>

<mosaic_0001>
module attributes {stable_mosaic.version = 11 : i64} {
  func.func @_gemm_bias_act_kernel(%arg0: i32, %arg1: memref<256x27xbf16, #tpu.memory_space<vmem>>, %arg2: memref<27x16xbf16, #tpu.memory_space<vmem>>, %arg3: memref<1x16xf32, #tpu.memory_space<vmem>>, %arg4: memref<256x16xbf16, #tpu.memory_space<vmem>>) attributes {dimension_semantics = [#tpu.dimension_semantics<parallel>], iteration_bounds = array<i64: 2>, scalar_prefetch = 0 : i64, scratch_operands = 0 : i64, tpu.core_type = #tpu.core_type<tc>, window_params = [{transform_indices = @transform_0, window_bounds = array<i64: 256, 27>}, {pipeline_mode = #tpu.pipeline_mode<synchronous>, transform_indices = @transform_1, window_bounds = array<i64: 27, 16>}, {pipeline_mode = #tpu.pipeline_mode<synchronous>, transform_indices = @transform_2, window_bounds = array<i64: 1, 16>}, {transform_indices = @transform_3, window_bounds = array<i64: 256, 16>}]} {
    %c0 = arith.constant 0 : index
    %c0_0 = arith.constant 0 : index
    %0 = vector.load %arg1[%c0, %c0_0] : memref<256x27xbf16, #tpu.memory_space<vmem>>, vector<256x27xbf16>
    %c0_1 = arith.constant 0 : index
    %c0_2 = arith.constant 0 : index
    %1 = vector.load %arg2[%c0_1, %c0_2] : memref<27x16xbf16, #tpu.memory_space<vmem>>, vector<27x16xbf16>
    %cst = arith.constant dense<0.000000e+00> : vector<256x16xf32>
    %2 = tpu.matmul %0, %1, %cst {dimension_numbers = #tpu.dot_dimension_numbers<[1], [0], [0], [1], [0, 0, 1, 1], [], []>} : vector<256x27xbf16>, vector<27x16xbf16>, vector<256x16xf32> -> vector<256x16xf32>
    %c0_3 = arith.constant 0 : index
    %c0_4 = arith.constant 0 : index
    %3 = vector.load %arg3[%c0_3, %c0_4] : memref<1x16xf32, #tpu.memory_space<vmem>>, vector<1x16xf32>
    %4 = vector.broadcast %3 : vector<1x16xf32> to vector<256x16xf32>
    %5 = arith.addf %2, %4 : vector<256x16xf32>
    %6 = arith.negf %5 : vector<256x16xf32>
    %7 = math.exp %6 : vector<256x16xf32>
    %cst_5 = arith.constant 1.000000e+00 : f32
    %8 = vector.broadcast %cst_5 : f32 to vector<256x16xf32>
    %9 = arith.addf %8, %7 : vector<256x16xf32>
    %10 = arith.divf %8, %9 : vector<256x16xf32>
    %11 = arith.mulf %5, %10 : vector<256x16xf32>
    %12 = arith.truncf %11 : vector<256x16xf32> to vector<256x16xbf16>
    %c0_6 = arith.constant 0 : index
    %c0_7 = arith.constant 0 : index
    %13 = vector.load %arg4[%c0_6, %c0_7] : memref<256x16xbf16, #tpu.memory_space<vmem>>, vector<256x16xbf16>
    tpu.vector_store %arg4[%c0_6, %c0_7], %12 {strides = array<i32>} : memref<256x16xbf16, #tpu.memory_space<vmem>>, vector<256x16xbf16>,
    return
  }
  func.func @transform_0(%arg0: i32) -> (i32, i32) {
    %c0_i32 = arith.constant 0 : i32
    %c0_i32_0 = arith.constant 0 : i32
    return %arg0, %c0_i32 : i32, i32
  }
  func.func @transform_1(%arg0: i32) -> (i32, i32) {
    %c0_i32 = arith.constant 0 : i32
    %c0_i32_0 = arith.constant 0 : i32
    %c0_i32_1 = arith.constant 0 : i32
    return %c0_i32, %c0_i32_0 : i32, i32
  }
  func.func @transform_2(%arg0: i32) -> (i32, i32) {
    %c0_i32 = arith.constant 0 : i32
    %c0_i32_0 = arith.constant 0 : i32
    %c0_i32_1 = arith.constant 0 : i32
    return %c0_i32, %c0_i32_0 : i32, i32
  }
  func.func @transform_3(%arg0: i32) -> (i32, i32) {
    %c0_i32 = arith.constant 0 : i32
    %c0_i32_0 = arith.constant 0 : i32
    return %arg0, %c0_i32 : i32, i32
  }
}

module attributes {stable_mosaic.version = 11 : i64} {
  func.func @_gemm_bias_act_kernel(%arg0: i32, %arg1: memref<128x144xbf16, #tpu.memory_space<vmem>>, %arg2: memref<144x32xbf16, #tpu.memory_space<vmem>>, %arg3: memref<1x32xf32, #tpu.memory_space<vmem>>, %arg4: memref<128x32xbf16, #tpu.memory_space<vmem>>) attributes {dimension_semantics = [#tpu.dimension_semantics<parallel>], iteration_bounds = array<i64: 1>, scalar_prefetch = 0 : i64, scratch_operands = 0 : i64, tpu.core_type = #tpu.core_type<tc>, window_params = [{transform_indices = @transform_0, window_bounds = array<i64: 128, 144>}, {pipeline_mode = #tpu.pipeline_mode<synchronous>, transform_indices = @transform_1, window_bounds = array<i64: 144, 32>}, {pipeline_mode = #tpu.pipeline_mode<synchronous>, transform_indices = @transform_2, window_bounds = array<i64: 1, 32>}, {transform_indices = @transform_3, window_bounds = array<i64: 128, 32>}]} {
    %c0 = arith.constant 0 : index
    %c0_0 = arith.constant 0 : index
    %0 = vector.load %arg1[%c0, %c0_0] : memref<128x144xbf16, #tpu.memory_space<vmem>>, vector<128x144xbf16>
    %c0_1 = arith.constant 0 : index
    %c0_2 = arith.constant 0 : index
    %1 = vector.load %arg2[%c0_1, %c0_2] : memref<144x32xbf16, #tpu.memory_space<vmem>>, vector<144x32xbf16>
    %cst = arith.constant dense<0.000000e+00> : vector<128x32xf32>
    %2 = tpu.matmul %0, %1, %cst {dimension_numbers = #tpu.dot_dimension_numbers<[1], [0], [0], [1], [0, 0, 1, 1], [], []>} : vector<128x144xbf16>, vector<144x32xbf16>, vector<128x32xf32> -> vector<128x32xf32>
    %c0_3 = arith.constant 0 : index
    %c0_4 = arith.constant 0 : index
    %3 = vector.load %arg3[%c0_3, %c0_4] : memref<1x32xf32, #tpu.memory_space<vmem>>, vector<1x32xf32>
    %4 = vector.broadcast %3 : vector<1x32xf32> to vector<128x32xf32>
    %5 = arith.addf %2, %4 : vector<128x32xf32>
    %6 = arith.negf %5 : vector<128x32xf32>
    %7 = math.exp %6 : vector<128x32xf32>
    %cst_5 = arith.constant 1.000000e+00 : f32
    %8 = vector.broadcast %cst_5 : f32 to vector<128x32xf32>
    %9 = arith.addf %8, %7 : vector<128x32xf32>
    %10 = arith.divf %8, %9 : vector<128x32xf32>
    %11 = arith.mulf %5, %10 : vector<128x32xf32>
    %12 = arith.truncf %11 : vector<128x32xf32> to vector<128x32xbf16>
    %c0_6 = arith.constant 0 : index
    %c0_7 = arith.constant 0 : index
    %13 = vector.load %arg4[%c0_6, %c0_7] : memref<128x32xbf16, #tpu.memory_space<vmem>>, vector<128x32xbf16>
    tpu.vector_store %arg4[%c0_6, %c0_7], %12 {strides = array<i32>} : memref<128x32xbf16, #tpu.memory_space<vmem>>, vector<128x32xbf16>,
    return
  }
  func.func @transform_0(%arg0: i32) -> (i32, i32) {
    %c0_i32 = arith.constant 0 : i32
    %c0_i32_0 = arith.constant 0 : i32
    return %arg0, %c0_i32 : i32, i32
  }
  func.func @transform_1(%arg0: i32) -> (i32, i32) {
    %c0_i32 = arith.constant 0 : i32
    %c0_i32_0 = arith.constant 0 : i32
    %c0_i32_1 = arith.constant 0 : i32
    return %c0_i32, %c0_i32_0 : i32, i32
  }
  func.func @transform_2(%arg0: i32) -> (i32, i32) {
    %c0_i32 = arith.constant 0 : i32
    %c0_i32_0 = arith.constant 0 : i32
    %c0_i32_1 = arith.constant 0 : i32
    return %c0_i32, %c0_i32_0 : i32, i32
  }
  func.func @transform_3(%arg0: i32) -> (i32, i32) {
    %c0_i32 = arith.constant 0 : i32
    %c0_i32_0 = arith.constant 0 : i32
    return %arg0, %c0_i32 : i32, i32
  }
}

module attributes {stable_mosaic.version = 11 : i64} {
  func.func @_gemm_bias_act_kernel(%arg0: i32, %arg1: memref<128x32xbf16, #tpu.memory_space<vmem>>, %arg2: memref<32x32xbf16, #tpu.memory_space<vmem>>, %arg3: memref<1x32xf32, #tpu.memory_space<vmem>>, %arg4: memref<128x32xbf16, #tpu.memory_space<vmem>>) attributes {dimension_semantics = [#tpu.dimension_semantics<parallel>], iteration_bounds = array<i64: 1>, scalar_prefetch = 0 : i64, scratch_operands = 0 : i64, tpu.core_type = #tpu.core_type<tc>, window_params = [{transform_indices = @transform_0, window_bounds = array<i64: 128, 32>}, {pipeline_mode = #tpu.pipeline_mode<synchronous>, transform_indices = @transform_1, window_bounds = array<i64: 32, 32>}, {pipeline_mode = #tpu.pipeline_mode<synchronous>, transform_indices = @transform_2, window_bounds = array<i64: 1, 32>}, {transform_indices = @transform_3, window_bounds = array<i64: 128, 32>}]} {
    %c0 = arith.constant 0 : index
    %c0_0 = arith.constant 0 : index
    %0 = vector.load %arg1[%c0, %c0_0] : memref<128x32xbf16, #tpu.memory_space<vmem>>, vector<128x32xbf16>
    %c0_1 = arith.constant 0 : index
    %c0_2 = arith.constant 0 : index
    %1 = vector.load %arg2[%c0_1, %c0_2] : memref<32x32xbf16, #tpu.memory_space<vmem>>, vector<32x32xbf16>
    %cst = arith.constant dense<0.000000e+00> : vector<128x32xf32>
    %2 = tpu.matmul %0, %1, %cst {dimension_numbers = #tpu.dot_dimension_numbers<[1], [0], [0], [1], [0, 0, 1, 1], [], []>} : vector<128x32xbf16>, vector<32x32xbf16>, vector<128x32xf32> -> vector<128x32xf32>
    %c0_3 = arith.constant 0 : index
    %c0_4 = arith.constant 0 : index
    %3 = vector.load %arg3[%c0_3, %c0_4] : memref<1x32xf32, #tpu.memory_space<vmem>>, vector<1x32xf32>
    %4 = vector.broadcast %3 : vector<1x32xf32> to vector<128x32xf32>
    %5 = arith.addf %2, %4 : vector<128x32xf32>
    %6 = arith.negf %5 : vector<128x32xf32>
    %7 = math.exp %6 : vector<128x32xf32>
    %cst_5 = arith.constant 1.000000e+00 : f32
    %8 = vector.broadcast %cst_5 : f32 to vector<128x32xf32>
    %9 = arith.addf %8, %7 : vector<128x32xf32>
    %10 = arith.divf %8, %9 : vector<128x32xf32>
    %11 = arith.mulf %5, %10 : vector<128x32xf32>
    %12 = arith.truncf %11 : vector<128x32xf32> to vector<128x32xbf16>
    %c0_6 = arith.constant 0 : index
    %c0_7 = arith.constant 0 : index
    %13 = vector.load %arg4[%c0_6, %c0_7] : memref<128x32xbf16, #tpu.memory_space<vmem>>, vector<128x32xbf16>
    tpu.vector_store %arg4[%c0_6, %c0_7], %12 {strides = array<i32>} : memref<128x32xbf16, #tpu.memory_space<vmem>>, vector<128x32xbf16>,
    return
  }
  func.func @transform_0(%arg0: i32) -> (i32, i32) {
    %c0_i32 = arith.constant 0 : i32
    %c0_i32_0 = arith.constant 0 : i32
    return %arg0, %c0_i32 : i32, i32
  }
  func.func @transform_1(%arg0: i32) -> (i32, i32) {
    %c0_i32 = arith.constant 0 : i32
    %c0_i32_0 = arith.constant 0 : i32
    %c0_i32_1 = arith.constant 0 : i32
    return %c0_i32, %c0_i32_0 : i32, i32
  }
  func.func @transform_2(%arg0: i32) -> (i32, i32) {
    %c0_i32 = arith.constant 0 : i32
    %c0_i32_0 = arith.constant 0 : i32
    %c0_i32_1 = arith.constant 0 : i32
    return %c0_i32, %c0_i32_0 : i32, i32
  }
  func.func @transform_3(%arg0: i32) -> (i32, i32) {
    %c0_i32 = arith.constant 0 : i32
    %c0_i32_0 = arith.constant 0 : i32
    return %arg0, %c0_i32 : i32, i32
  }
}

module attributes {stable_mosaic.version = 11 : i64} {
  func.func @_gemm_bias_act_kernel(%arg0: i32, %arg1: memref<128x144xbf16, #tpu.memory_space<vmem>>, %arg2: memref<144x16xbf16, #tpu.memory_space<vmem>>, %arg3: memref<1x16xf32, #tpu.memory_space<vmem>>, %arg4: memref<128x16xbf16, #tpu.memory_space<vmem>>) attributes {dimension_semantics = [#tpu.dimension_semantics<parallel>], iteration_bounds = array<i64: 1>, scalar_prefetch = 0 : i64, scratch_operands = 0 : i64, tpu.core_type = #tpu.core_type<tc>, window_params = [{transform_indices = @transform_0, window_bounds = array<i64: 128, 144>}, {pipeline_mode = #tpu.pipeline_mode<synchronous>, transform_indices = @transform_1, window_bounds = array<i64: 144, 16>}, {pipeline_mode = #tpu.pipeline_mode<synchronous>, transform_indices = @transform_2, window_bounds = array<i64: 1, 16>}, {transform_indices = @transform_3, window_bounds = array<i64: 128, 16>}]} {
    %c0 = arith.constant 0 : index
    %c0_0 = arith.constant 0 : index
    %0 = vector.load %arg1[%c0, %c0_0] : memref<128x144xbf16, #tpu.memory_space<vmem>>, vector<128x144xbf16>
    %c0_1 = arith.constant 0 : index
    %c0_2 = arith.constant 0 : index
    %1 = vector.load %arg2[%c0_1, %c0_2] : memref<144x16xbf16, #tpu.memory_space<vmem>>, vector<144x16xbf16>
    %cst = arith.constant dense<0.000000e+00> : vector<128x16xf32>
    %2 = tpu.matmul %0, %1, %cst {dimension_numbers = #tpu.dot_dimension_numbers<[1], [0], [0], [1], [0, 0, 1, 1], [], []>} : vector<128x144xbf16>, vector<144x16xbf16>, vector<128x16xf32> -> vector<128x16xf32>
    %c0_3 = arith.constant 0 : index
    %c0_4 = arith.constant 0 : index
    %3 = vector.load %arg3[%c0_3, %c0_4] : memref<1x16xf32, #tpu.memory_space<vmem>>, vector<1x16xf32>
    %4 = vector.broadcast %3 : vector<1x16xf32> to vector<128x16xf32>
    %5 = arith.addf %2, %4 : vector<128x16xf32>
    %6 = arith.negf %5 : vector<128x16xf32>
    %7 = math.exp %6 : vector<128x16xf32>
    %cst_5 = arith.constant 1.000000e+00 : f32
    %8 = vector.broadcast %cst_5 : f32 to vector<128x16xf32>
    %9 = arith.addf %8, %7 : vector<128x16xf32>
    %10 = arith.divf %8, %9 : vector<128x16xf32>
    %11 = arith.mulf %5, %10 : vector<128x16xf32>
    %12 = arith.truncf %11 : vector<128x16xf32> to vector<128x16xbf16>
    %c0_6 = arith.constant 0 : index
    %c0_7 = arith.constant 0 : index
    %13 = vector.load %arg4[%c0_6, %c0_7] : memref<128x16xbf16, #tpu.memory_space<vmem>>, vector<128x16xbf16>
    tpu.vector_store %arg4[%c0_6, %c0_7], %12 {strides = array<i32>} : memref<128x16xbf16, #tpu.memory_space<vmem>>, vector<128x16xbf16>,
    return
  }
  func.func @transform_0(%arg0: i32) -> (i32, i32) {
    %c0_i32 = arith.constant 0 : i32
    %c0_i32_0 = arith.constant 0 : i32
    return %arg0, %c0_i32 : i32, i32
  }
  func.func @transform_1(%arg0: i32) -> (i32, i32) {
    %c0_i32 = arith.constant 0 : i32
    %c0_i32_0 = arith.constant 0 : i32
    %c0_i32_1 = arith.constant 0 : i32
    return %c0_i32, %c0_i32_0 : i32, i32
  }
  func.func @transform_2(%arg0: i32) -> (i32, i32) {
    %c0_i32 = arith.constant 0 : i32
    %c0_i32_0 = arith.constant 0 : i32
    %c0_i32_1 = arith.constant 0 : i32
    return %c0_i32, %c0_i32_0 : i32, i32
  }
  func.func @transform_3(%arg0: i32) -> (i32, i32) {
    %c0_i32 = arith.constant 0 : i32
    %c0_i32_0 = arith.constant 0 : i32
    return %arg0, %c0_i32 : i32, i32
  }
}

module attributes {stable_mosaic.version = 11 : i64} {
  func.func @_gemm_bias_act_kernel(%arg0: i32, %arg1: memref<128x48xbf16, #tpu.memory_space<vmem>>, %arg2: memref<48x32xbf16, #tpu.memory_space<vmem>>, %arg3: memref<1x32xf32, #tpu.memory_space<vmem>>, %arg4: memref<128x32xbf16, #tpu.memory_space<vmem>>) attributes {dimension_semantics = [#tpu.dimension_semantics<parallel>], iteration_bounds = array<i64: 1>, scalar_prefetch = 0 : i64, scratch_operands = 0 : i64, tpu.core_type = #tpu.core_type<tc>, window_params = [{transform_indices = @transform_0, window_bounds = array<i64: 128, 48>}, {pipeline_mode = #tpu.pipeline_mode<synchronous>, transform_indices = @transform_1, window_bounds = array<i64: 48, 32>}, {pipeline_mode = #tpu.pipeline_mode<synchronous>, transform_indices = @transform_2, window_bounds = array<i64: 1, 32>}, {transform_indices = @transform_3, window_bounds = array<i64: 128, 32>}]} {
    %c0 = arith.constant 0 : index
    %c0_0 = arith.constant 0 : index
    %0 = vector.load %arg1[%c0, %c0_0] : memref<128x48xbf16, #tpu.memory_space<vmem>>, vector<128x48xbf16>
    %c0_1 = arith.constant 0 : index
    %c0_2 = arith.constant 0 : index
    %1 = vector.load %arg2[%c0_1, %c0_2] : memref<48x32xbf16, #tpu.memory_space<vmem>>, vector<48x32xbf16>
    %cst = arith.constant dense<0.000000e+00> : vector<128x32xf32>
    %2 = tpu.matmul %0, %1, %cst {dimension_numbers = #tpu.dot_dimension_numbers<[1], [0], [0], [1], [0, 0, 1, 1], [], []>} : vector<128x48xbf16>, vector<48x32xbf16>, vector<128x32xf32> -> vector<128x32xf32>
    %c0_3 = arith.constant 0 : index
    %c0_4 = arith.constant 0 : index
    %3 = vector.load %arg3[%c0_3, %c0_4] : memref<1x32xf32, #tpu.memory_space<vmem>>, vector<1x32xf32>
    %4 = vector.broadcast %3 : vector<1x32xf32> to vector<128x32xf32>
    %5 = arith.addf %2, %4 : vector<128x32xf32>
    %6 = arith.negf %5 : vector<128x32xf32>
    %7 = math.exp %6 : vector<128x32xf32>
    %cst_5 = arith.constant 1.000000e+00 : f32
    %8 = vector.broadcast %cst_5 : f32 to vector<128x32xf32>
    %9 = arith.addf %8, %7 : vector<128x32xf32>
    %10 = arith.divf %8, %9 : vector<128x32xf32>
    %11 = arith.mulf %5, %10 : vector<128x32xf32>
    %12 = arith.truncf %11 : vector<128x32xf32> to vector<128x32xbf16>
    %c0_6 = arith.constant 0 : index
    %c0_7 = arith.constant 0 : index
    %13 = vector.load %arg4[%c0_6, %c0_7] : memref<128x32xbf16, #tpu.memory_space<vmem>>, vector<128x32xbf16>
    tpu.vector_store %arg4[%c0_6, %c0_7], %12 {strides = array<i32>} : memref<128x32xbf16, #tpu.memory_space<vmem>>, vector<128x32xbf16>,
    return
  }
  func.func @transform_0(%arg0: i32) -> (i32, i32) {
    %c0_i32 = arith.constant 0 : i32
    %c0_i32_0 = arith.constant 0 : i32
    return %arg0, %c0_i32 : i32, i32
  }
  func.func @transform_1(%arg0: i32) -> (i32, i32) {
    %c0_i32 = arith.constant 0 : i32
    %c0_i32_0 = arith.constant 0 : i32
    %c0_i32_1 = arith.constant 0 : i32
    return %c0_i32, %c0_i32_0 : i32, i32
  }
  func.func @transform_2(%arg0: i32) -> (i32, i32) {
    %c0_i32 = arith.constant 0 : i32
    %c0_i32_0 = arith.constant 0 : i32
    %c0_i32_1 = arith.constant 0 : i32
    return %c0_i32, %c0_i32_0 : i32, i32
  }
  func.func @transform_3(%arg0: i32) -> (i32, i32) {
    %c0_i32 = arith.constant 0 : i32
    %c0_i32_0 = arith.constant 0 : i32
    return %arg0, %c0_i32 : i32, i32
  }
}

module attributes {stable_mosaic.version = 11 : i64} {
  func.func @_gemm_bias_act_kernel(%arg0: i32, %arg1: memref<32x288xbf16, #tpu.memory_space<vmem>>, %arg2: memref<288x64xbf16, #tpu.memory_space<vmem>>, %arg3: memref<1x64xf32, #tpu.memory_space<vmem>>, %arg4: memref<32x64xbf16, #tpu.memory_space<vmem>>) attributes {dimension_semantics = [#tpu.dimension_semantics<parallel>], iteration_bounds = array<i64: 1>, scalar_prefetch = 0 : i64, scratch_operands = 0 : i64, tpu.core_type = #tpu.core_type<tc>, window_params = [{transform_indices = @transform_0, window_bounds = array<i64: 32, 288>}, {pipeline_mode = #tpu.pipeline_mode<synchronous>, transform_indices = @transform_1, window_bounds = array<i64: 288, 64>}, {pipeline_mode = #tpu.pipeline_mode<synchronous>, transform_indices = @transform_2, window_bounds = array<i64: 1, 64>}, {transform_indices = @transform_3, window_bounds = array<i64: 32, 64>}]} {
    %c0 = arith.constant 0 : index
    %c0_0 = arith.constant 0 : index
    %0 = vector.load %arg1[%c0, %c0_0] : memref<32x288xbf16, #tpu.memory_space<vmem>>, vector<32x288xbf16>
    %c0_1 = arith.constant 0 : index
    %c0_2 = arith.constant 0 : index
    %1 = vector.load %arg2[%c0_1, %c0_2] : memref<288x64xbf16, #tpu.memory_space<vmem>>, vector<288x64xbf16>
    %cst = arith.constant dense<0.000000e+00> : vector<32x64xf32>
    %2 = tpu.matmul %0, %1, %cst {dimension_numbers = #tpu.dot_dimension_numbers<[1], [0], [0], [1], [0, 0, 1, 1], [], []>} : vector<32x288xbf16>, vector<288x64xbf16>, vector<32x64xf32> -> vector<32x64xf32>
    %c0_3 = arith.constant 0 : index
    %c0_4 = arith.constant 0 : index
    %3 = vector.load %arg3[%c0_3, %c0_4] : memref<1x64xf32, #tpu.memory_space<vmem>>, vector<1x64xf32>
    %4 = vector.broadcast %3 : vector<1x64xf32> to vector<32x64xf32>
    %5 = arith.addf %2, %4 : vector<32x64xf32>
    %6 = arith.negf %5 : vector<32x64xf32>
    %7 = math.exp %6 : vector<32x64xf32>
    %cst_5 = arith.constant 1.000000e+00 : f32
    %8 = vector.broadcast %cst_5 : f32 to vector<32x64xf32>
    %9 = arith.addf %8, %7 : vector<32x64xf32>
    %10 = arith.divf %8, %9 : vector<32x64xf32>
    %11 = arith.mulf %5, %10 : vector<32x64xf32>
    %12 = arith.truncf %11 : vector<32x64xf32> to vector<32x64xbf16>
    %c0_6 = arith.constant 0 : index
    %c0_7 = arith.constant 0 : index
    %13 = vector.load %arg4[%c0_6, %c0_7] : memref<32x64xbf16, #tpu.memory_space<vmem>>, vector<32x64xbf16>
    tpu.vector_store %arg4[%c0_6, %c0_7], %12 {strides = array<i32>} : memref<32x64xbf16, #tpu.memory_space<vmem>>, vector<32x64xbf16>,
    return
  }
  func.func @transform_0(%arg0: i32) -> (i32, i32) {
    %c0_i32 = arith.constant 0 : i32
    %c0_i32_0 = arith.constant 0 : i32
    return %arg0, %c0_i32 : i32, i32
  }
  func.func @transform_1(%arg0: i32) -> (i32, i32) {
    %c0_i32 = arith.constant 0 : i32
    %c0_i32_0 = arith.constant 0 : i32
    %c0_i32_1 = arith.constant 0 : i32
    return %c0_i32, %c0_i32_0 : i32, i32
  }
  func.func @transform_2(%arg0: i32) -> (i32, i32) {
    %c0_i32 = arith.constant 0 : i32
    %c0_i32_0 = arith.constant 0 : i32
    %c0_i32_1 = arith.constant 0 : i32
    return %c0_i32, %c0_i32_0 : i32, i32
  }
  func.func @transform_3(%arg0: i32) -> (i32, i32) {
    %c0_i32 = arith.constant 0 : i32
    %c0_i32_0 = arith.constant 0 : i32
    return %arg0, %c0_i32 : i32, i32
  }
}

module attributes {stable_mosaic.version = 11 : i64} {
  func.func @_gemm_bias_act_kernel(%arg0: i32, %arg1: memref<32x64xbf16, #tpu.memory_space<vmem>>, %arg2: memref<64x64xbf16, #tpu.memory_space<vmem>>, %arg3: memref<1x64xf32, #tpu.memory_space<vmem>>, %arg4: memref<32x64xbf16, #tpu.memory_space<vmem>>) attributes {dimension_semantics = [#tpu.dimension_semantics<parallel>], iteration_bounds = array<i64: 1>, scalar_prefetch = 0 : i64, scratch_operands = 0 : i64, tpu.core_type = #tpu.core_type<tc>, window_params = [{transform_indices = @transform_0, window_bounds = array<i64: 32, 64>}, {pipeline_mode = #tpu.pipeline_mode<synchronous>, transform_indices = @transform_1, window_bounds = array<i64: 64, 64>}, {pipeline_mode = #tpu.pipeline_mode<synchronous>, transform_indices = @transform_2, window_bounds = array<i64: 1, 64>}, {transform_indices = @transform_3, window_bounds = array<i64: 32, 64>}]} {
    %c0 = arith.constant 0 : index
    %c0_0 = arith.constant 0 : index
    %0 = vector.load %arg1[%c0, %c0_0] : memref<32x64xbf16, #tpu.memory_space<vmem>>, vector<32x64xbf16>
    %c0_1 = arith.constant 0 : index
    %c0_2 = arith.constant 0 : index
    %1 = vector.load %arg2[%c0_1, %c0_2] : memref<64x64xbf16, #tpu.memory_space<vmem>>, vector<64x64xbf16>
    %cst = arith.constant dense<0.000000e+00> : vector<32x64xf32>
    %2 = tpu.matmul %0, %1, %cst {dimension_numbers = #tpu.dot_dimension_numbers<[1], [0], [0], [1], [0, 0, 1, 1], [], []>} : vector<32x64xbf16>, vector<64x64xbf16>, vector<32x64xf32> -> vector<32x64xf32>
    %c0_3 = arith.constant 0 : index
    %c0_4 = arith.constant 0 : index
    %3 = vector.load %arg3[%c0_3, %c0_4] : memref<1x64xf32, #tpu.memory_space<vmem>>, vector<1x64xf32>
    %4 = vector.broadcast %3 : vector<1x64xf32> to vector<32x64xf32>
    %5 = arith.addf %2, %4 : vector<32x64xf32>
    %6 = arith.negf %5 : vector<32x64xf32>
    %7 = math.exp %6 : vector<32x64xf32>
    %cst_5 = arith.constant 1.000000e+00 : f32
    %8 = vector.broadcast %cst_5 : f32 to vector<32x64xf32>
    %9 = arith.addf %8, %7 : vector<32x64xf32>
    %10 = arith.divf %8, %9 : vector<32x64xf32>
    %11 = arith.mulf %5, %10 : vector<32x64xf32>
    %12 = arith.truncf %11 : vector<32x64xf32> to vector<32x64xbf16>
    %c0_6 = arith.constant 0 : index
    %c0_7 = arith.constant 0 : index
    %13 = vector.load %arg4[%c0_6, %c0_7] : memref<32x64xbf16, #tpu.memory_space<vmem>>, vector<32x64xbf16>
    tpu.vector_store %arg4[%c0_6, %c0_7], %12 {strides = array<i32>} : memref<32x64xbf16, #tpu.memory_space<vmem>>, vector<32x64xbf16>,
    return
  }
  func.func @transform_0(%arg0: i32) -> (i32, i32) {
    %c0_i32 = arith.constant 0 : i32
    %c0_i32_0 = arith.constant 0 : i32
    return %arg0, %c0_i32 : i32, i32
  }
  func.func @transform_1(%arg0: i32) -> (i32, i32) {
    %c0_i32 = arith.constant 0 : i32
    %c0_i32_0 = arith.constant 0 : i32
    %c0_i32_1 = arith.constant 0 : i32
    return %c0_i32, %c0_i32_0 : i32, i32
  }
  func.func @transform_2(%arg0: i32) -> (i32, i32) {
    %c0_i32 = arith.constant 0 : i32
    %c0_i32_0 = arith.constant 0 : i32
    %c0_i32_1 = arith.constant 0 : i32
    return %c0_i32, %c0_i32_0 : i32, i32
  }
  func.func @transform_3(%arg0: i32) -> (i32, i32) {
    %c0_i32 = arith.constant 0 : i32
    %c0_i32_0 = arith.constant 0 : i32
    return %arg0, %c0_i32 : i32, i32
  }
}

module attributes {stable_mosaic.version = 11 : i64} {
  func.func @_gemm_bias_act_kernel(%arg0: i32, %arg1: memref<32x288xbf16, #tpu.memory_space<vmem>>, %arg2: memref<288x32xbf16, #tpu.memory_space<vmem>>, %arg3: memref<1x32xf32, #tpu.memory_space<vmem>>, %arg4: memref<32x32xbf16, #tpu.memory_space<vmem>>) attributes {dimension_semantics = [#tpu.dimension_semantics<parallel>], iteration_bounds = array<i64: 1>, scalar_prefetch = 0 : i64, scratch_operands = 0 : i64, tpu.core_type = #tpu.core_type<tc>, window_params = [{transform_indices = @transform_0, window_bounds = array<i64: 32, 288>}, {pipeline_mode = #tpu.pipeline_mode<synchronous>, transform_indices = @transform_1, window_bounds = array<i64: 288, 32>}, {pipeline_mode = #tpu.pipeline_mode<synchronous>, transform_indices = @transform_2, window_bounds = array<i64: 1, 32>}, {transform_indices = @transform_3, window_bounds = array<i64: 32, 32>}]} {
    %c0 = arith.constant 0 : index
    %c0_0 = arith.constant 0 : index
    %0 = vector.load %arg1[%c0, %c0_0] : memref<32x288xbf16, #tpu.memory_space<vmem>>, vector<32x288xbf16>
    %c0_1 = arith.constant 0 : index
    %c0_2 = arith.constant 0 : index
    %1 = vector.load %arg2[%c0_1, %c0_2] : memref<288x32xbf16, #tpu.memory_space<vmem>>, vector<288x32xbf16>
    %cst = arith.constant dense<0.000000e+00> : vector<32x32xf32>
    %2 = tpu.matmul %0, %1, %cst {dimension_numbers = #tpu.dot_dimension_numbers<[1], [0], [0], [1], [0, 0, 1, 1], [], []>} : vector<32x288xbf16>, vector<288x32xbf16>, vector<32x32xf32> -> vector<32x32xf32>
    %c0_3 = arith.constant 0 : index
    %c0_4 = arith.constant 0 : index
    %3 = vector.load %arg3[%c0_3, %c0_4] : memref<1x32xf32, #tpu.memory_space<vmem>>, vector<1x32xf32>
    %4 = vector.broadcast %3 : vector<1x32xf32> to vector<32x32xf32>
    %5 = arith.addf %2, %4 : vector<32x32xf32>
    %6 = arith.negf %5 : vector<32x32xf32>
    %7 = math.exp %6 : vector<32x32xf32>
    %cst_5 = arith.constant 1.000000e+00 : f32
    %8 = vector.broadcast %cst_5 : f32 to vector<32x32xf32>
    %9 = arith.addf %8, %7 : vector<32x32xf32>
    %10 = arith.divf %8, %9 : vector<32x32xf32>
    %11 = arith.mulf %5, %10 : vector<32x32xf32>
    %12 = arith.truncf %11 : vector<32x32xf32> to vector<32x32xbf16>
    %c0_6 = arith.constant 0 : index
    %c0_7 = arith.constant 0 : index
    %13 = vector.load %arg4[%c0_6, %c0_7] : memref<32x32xbf16, #tpu.memory_space<vmem>>, vector<32x32xbf16>
    tpu.vector_store %arg4[%c0_6, %c0_7], %12 {strides = array<i32>} : memref<32x32xbf16, #tpu.memory_space<vmem>>, vector<32x32xbf16>,
    return
  }
  func.func @transform_0(%arg0: i32) -> (i32, i32) {
    %c0_i32 = arith.constant 0 : i32
    %c0_i32_0 = arith.constant 0 : i32
    return %arg0, %c0_i32 : i32, i32
  }
  func.func @transform_1(%arg0: i32) -> (i32, i32) {
    %c0_i32 = arith.constant 0 : i32
    %c0_i32_0 = arith.constant 0 : i32
    %c0_i32_1 = arith.constant 0 : i32
    return %c0_i32, %c0_i32_0 : i32, i32
  }
  func.func @transform_2(%arg0: i32) -> (i32, i32) {
    %c0_i32 = arith.constant 0 : i32
    %c0_i32_0 = arith.constant 0 : i32
    %c0_i32_1 = arith.constant 0 : i32
    return %c0_i32, %c0_i32_0 : i32, i32
  }
  func.func @transform_3(%arg0: i32) -> (i32, i32) {
    %c0_i32 = arith.constant 0 : i32
    %c0_i32_0 = arith.constant 0 : i32
    return %arg0, %c0_i32 : i32, i32
  }
}

module attributes {stable_mosaic.version = 11 : i64} {
  func.func @_gemm_bias_act_kernel(%arg0: i32, %arg1: memref<32x96xbf16, #tpu.memory_space<vmem>>, %arg2: memref<96x64xbf16, #tpu.memory_space<vmem>>, %arg3: memref<1x64xf32, #tpu.memory_space<vmem>>, %arg4: memref<32x64xbf16, #tpu.memory_space<vmem>>) attributes {dimension_semantics = [#tpu.dimension_semantics<parallel>], iteration_bounds = array<i64: 1>, scalar_prefetch = 0 : i64, scratch_operands = 0 : i64, tpu.core_type = #tpu.core_type<tc>, window_params = [{transform_indices = @transform_0, window_bounds = array<i64: 32, 96>}, {pipeline_mode = #tpu.pipeline_mode<synchronous>, transform_indices = @transform_1, window_bounds = array<i64: 96, 64>}, {pipeline_mode = #tpu.pipeline_mode<synchronous>, transform_indices = @transform_2, window_bounds = array<i64: 1, 64>}, {transform_indices = @transform_3, window_bounds = array<i64: 32, 64>}]} {
    %c0 = arith.constant 0 : index
    %c0_0 = arith.constant 0 : index
    %0 = vector.load %arg1[%c0, %c0_0] : memref<32x96xbf16, #tpu.memory_space<vmem>>, vector<32x96xbf16>
    %c0_1 = arith.constant 0 : index
    %c0_2 = arith.constant 0 : index
    %1 = vector.load %arg2[%c0_1, %c0_2] : memref<96x64xbf16, #tpu.memory_space<vmem>>, vector<96x64xbf16>
    %cst = arith.constant dense<0.000000e+00> : vector<32x64xf32>
    %2 = tpu.matmul %0, %1, %cst {dimension_numbers = #tpu.dot_dimension_numbers<[1], [0], [0], [1], [0, 0, 1, 1], [], []>} : vector<32x96xbf16>, vector<96x64xbf16>, vector<32x64xf32> -> vector<32x64xf32>
    %c0_3 = arith.constant 0 : index
    %c0_4 = arith.constant 0 : index
    %3 = vector.load %arg3[%c0_3, %c0_4] : memref<1x64xf32, #tpu.memory_space<vmem>>, vector<1x64xf32>
    %4 = vector.broadcast %3 : vector<1x64xf32> to vector<32x64xf32>
    %5 = arith.addf %2, %4 : vector<32x64xf32>
    %6 = arith.negf %5 : vector<32x64xf32>
    %7 = math.exp %6 : vector<32x64xf32>
    %cst_5 = arith.constant 1.000000e+00 : f32
    %8 = vector.broadcast %cst_5 : f32 to vector<32x64xf32>
    %9 = arith.addf %8, %7 : vector<32x64xf32>
    %10 = arith.divf %8, %9 : vector<32x64xf32>
    %11 = arith.mulf %5, %10 : vector<32x64xf32>
    %12 = arith.truncf %11 : vector<32x64xf32> to vector<32x64xbf16>
    %c0_6 = arith.constant 0 : index
    %c0_7 = arith.constant 0 : index
    %13 = vector.load %arg4[%c0_6, %c0_7] : memref<32x64xbf16, #tpu.memory_space<vmem>>, vector<32x64xbf16>
    tpu.vector_store %arg4[%c0_6, %c0_7], %12 {strides = array<i32>} : memref<32x64xbf16, #tpu.memory_space<vmem>>, vector<32x64xbf16>,
    return
  }
  func.func @transform_0(%arg0: i32) -> (i32, i32) {
    %c0_i32 = arith.constant 0 : i32
    %c0_i32_0 = arith.constant 0 : i32
    return %arg0, %c0_i32 : i32, i32
  }
  func.func @transform_1(%arg0: i32) -> (i32, i32) {
    %c0_i32 = arith.constant 0 : i32
    %c0_i32_0 = arith.constant 0 : i32
    %c0_i32_1 = arith.constant 0 : i32
    return %c0_i32, %c0_i32_0 : i32, i32
  }
  func.func @transform_2(%arg0: i32) -> (i32, i32) {
    %c0_i32 = arith.constant 0 : i32
    %c0_i32_0 = arith.constant 0 : i32
    %c0_i32_1 = arith.constant 0 : i32
    return %c0_i32, %c0_i32_0 : i32, i32
  }
  func.func @transform_3(%arg0: i32) -> (i32, i32) {
    %c0_i32 = arith.constant 0 : i32
    %c0_i32_0 = arith.constant 0 : i32
    return %arg0, %c0_i32 : i32, i32
  }
}

module attributes {stable_mosaic.version = 11 : i64} {
  func.func @_gemm_bias_act_kernel(%arg0: i32, %arg1: memref<32x64xbf16, #tpu.memory_space<vmem>>, %arg2: memref<64x32xbf16, #tpu.memory_space<vmem>>, %arg3: memref<1x32xf32, #tpu.memory_space<vmem>>, %arg4: memref<32x32xbf16, #tpu.memory_space<vmem>>) attributes {dimension_semantics = [#tpu.dimension_semantics<parallel>], iteration_bounds = array<i64: 1>, scalar_prefetch = 0 : i64, scratch_operands = 0 : i64, tpu.core_type = #tpu.core_type<tc>, window_params = [{transform_indices = @transform_0, window_bounds = array<i64: 32, 64>}, {pipeline_mode = #tpu.pipeline_mode<synchronous>, transform_indices = @transform_1, window_bounds = array<i64: 64, 32>}, {pipeline_mode = #tpu.pipeline_mode<synchronous>, transform_indices = @transform_2, window_bounds = array<i64: 1, 32>}, {transform_indices = @transform_3, window_bounds = array<i64: 32, 32>}]} {
    %c0 = arith.constant 0 : index
    %c0_0 = arith.constant 0 : index
    %0 = vector.load %arg1[%c0, %c0_0] : memref<32x64xbf16, #tpu.memory_space<vmem>>, vector<32x64xbf16>
    %c0_1 = arith.constant 0 : index
    %c0_2 = arith.constant 0 : index
    %1 = vector.load %arg2[%c0_1, %c0_2] : memref<64x32xbf16, #tpu.memory_space<vmem>>, vector<64x32xbf16>
    %cst = arith.constant dense<0.000000e+00> : vector<32x32xf32>
    %2 = tpu.matmul %0, %1, %cst {dimension_numbers = #tpu.dot_dimension_numbers<[1], [0], [0], [1], [0, 0, 1, 1], [], []>} : vector<32x64xbf16>, vector<64x32xbf16>, vector<32x32xf32> -> vector<32x32xf32>
    %c0_3 = arith.constant 0 : index
    %c0_4 = arith.constant 0 : index
    %3 = vector.load %arg3[%c0_3, %c0_4] : memref<1x32xf32, #tpu.memory_space<vmem>>, vector<1x32xf32>
    %4 = vector.broadcast %3 : vector<1x32xf32> to vector<32x32xf32>
    %5 = arith.addf %2, %4 : vector<32x32xf32>
    %6 = arith.negf %5 : vector<32x32xf32>
    %7 = math.exp %6 : vector<32x32xf32>
    %cst_5 = arith.constant 1.000000e+00 : f32
    %8 = vector.broadcast %cst_5 : f32 to vector<32x32xf32>
    %9 = arith.addf %8, %7 : vector<32x32xf32>
    %10 = arith.divf %8, %9 : vector<32x32xf32>
    %11 = arith.mulf %5, %10 : vector<32x32xf32>
    %12 = arith.truncf %11 : vector<32x32xf32> to vector<32x32xbf16>
    %c0_6 = arith.constant 0 : index
    %c0_7 = arith.constant 0 : index
    %13 = vector.load %arg4[%c0_6, %c0_7] : memref<32x32xbf16, #tpu.memory_space<vmem>>, vector<32x32xbf16>
    tpu.vector_store %arg4[%c0_6, %c0_7], %12 {strides = array<i32>} : memref<32x32xbf16, #tpu.memory_space<vmem>>, vector<32x32xbf16>,
    return
  }
  func.func @transform_0(%arg0: i32) -> (i32, i32) {
    %c0_i32 = arith.constant 0 : i32
    %c0_i32_0 = arith.constant 0 : i32
    return %arg0, %c0_i32 : i32, i32
  }
  func.func @transform_1(%arg0: i32) -> (i32, i32) {
    %c0_i32 = arith.constant 0 : i32
    %c0_i32_0 = arith.constant 0 : i32
    %c0_i32_1 = arith.constant 0 : i32
    return %c0_i32, %c0_i32_0 : i32, i32
  }
  func.func @transform_2(%arg0: i32) -> (i32, i32) {
    %c0_i32 = arith.constant 0 : i32
    %c0_i32_0 = arith.constant 0 : i32
    %c0_i32_1 = arith.constant 0 : i32
    return %c0_i32, %c0_i32_0 : i32, i32
  }
  func.func @transform_3(%arg0: i32) -> (i32, i32) {
    %c0_i32 = arith.constant 0 : i32
    %c0_i32_0 = arith.constant 0 : i32
    return %arg0, %c0_i32 : i32, i32
  }
}

module attributes {stable_mosaic.version = 11 : i64} {
  func.func @_gemm_bias_act_kernel(%arg0: i32, %arg1: memref<32x128xbf16, #tpu.memory_space<vmem>>, %arg2: memref<128x64xbf16, #tpu.memory_space<vmem>>, %arg3: memref<1x64xf32, #tpu.memory_space<vmem>>, %arg4: memref<32x64xbf16, #tpu.memory_space<vmem>>) attributes {dimension_semantics = [#tpu.dimension_semantics<parallel>], iteration_bounds = array<i64: 1>, scalar_prefetch = 0 : i64, scratch_operands = 0 : i64, tpu.core_type = #tpu.core_type<tc>, window_params = [{transform_indices = @transform_0, window_bounds = array<i64: 32, 128>}, {pipeline_mode = #tpu.pipeline_mode<synchronous>, transform_indices = @transform_1, window_bounds = array<i64: 128, 64>}, {pipeline_mode = #tpu.pipeline_mode<synchronous>, transform_indices = @transform_2, window_bounds = array<i64: 1, 64>}, {transform_indices = @transform_3, window_bounds = array<i64: 32, 64>}]} {
    %c0 = arith.constant 0 : index
    %c0_0 = arith.constant 0 : index
    %0 = vector.load %arg1[%c0, %c0_0] : memref<32x128xbf16, #tpu.memory_space<vmem>>, vector<32x128xbf16>
    %c0_1 = arith.constant 0 : index
    %c0_2 = arith.constant 0 : index
    %1 = vector.load %arg2[%c0_1, %c0_2] : memref<128x64xbf16, #tpu.memory_space<vmem>>, vector<128x64xbf16>
    %cst = arith.constant dense<0.000000e+00> : vector<32x64xf32>
    %2 = tpu.matmul %0, %1, %cst {dimension_numbers = #tpu.dot_dimension_numbers<[1], [0], [0], [1], [0, 0, 1, 1], [], []>} : vector<32x128xbf16>, vector<128x64xbf16>, vector<32x64xf32> -> vector<32x64xf32>
    %c0_3 = arith.constant 0 : index
    %c0_4 = arith.constant 0 : index
    %3 = vector.load %arg3[%c0_3, %c0_4] : memref<1x64xf32, #tpu.memory_space<vmem>>, vector<1x64xf32>
    %4 = vector.broadcast %3 : vector<1x64xf32> to vector<32x64xf32>
    %5 = arith.addf %2, %4 : vector<32x64xf32>
    %6 = arith.negf %5 : vector<32x64xf32>
    %7 = math.exp %6 : vector<32x64xf32>
    %cst_5 = arith.constant 1.000000e+00 : f32
    %8 = vector.broadcast %cst_5 : f32 to vector<32x64xf32>
    %9 = arith.addf %8, %7 : vector<32x64xf32>
    %10 = arith.divf %8, %9 : vector<32x64xf32>
    %11 = arith.mulf %5, %10 : vector<32x64xf32>
    %12 = arith.truncf %11 : vector<32x64xf32> to vector<32x64xbf16>
    %c0_6 = arith.constant 0 : index
    %c0_7 = arith.constant 0 : index
    %13 = vector.load %arg4[%c0_6, %c0_7] : memref<32x64xbf16, #tpu.memory_space<vmem>>, vector<32x64xbf16>
    tpu.vector_store %arg4[%c0_6, %c0_7], %12 {strides = array<i32>} : memref<32x64xbf16, #tpu.memory_space<vmem>>, vector<32x64xbf16>,
    return
  }
  func.func @transform_0(%arg0: i32) -> (i32, i32) {
    %c0_i32 = arith.constant 0 : i32
    %c0_i32_0 = arith.constant 0 : i32
    return %arg0, %c0_i32 : i32, i32
  }
  func.func @transform_1(%arg0: i32) -> (i32, i32) {
    %c0_i32 = arith.constant 0 : i32
    %c0_i32_0 = arith.constant 0 : i32
    %c0_i32_1 = arith.constant 0 : i32
    return %c0_i32, %c0_i32_0 : i32, i32
  }
  func.func @transform_2(%arg0: i32) -> (i32, i32) {
    %c0_i32 = arith.constant 0 : i32
    %c0_i32_0 = arith.constant 0 : i32
    %c0_i32_1 = arith.constant 0 : i32
    return %c0_i32, %c0_i32_0 : i32, i32
  }
  func.func @transform_3(%arg0: i32) -> (i32, i32) {
    %c0_i32 = arith.constant 0 : i32
    %c0_i32_0 = arith.constant 0 : i32
    return %arg0, %c0_i32 : i32, i32
  }
}

module attributes {stable_mosaic.version = 11 : i64} {
  func.func @_gemm_bias_act_kernel(%arg0: i32, %arg1: memref<32x576xbf16, #tpu.memory_space<vmem>>, %arg2: memref<576x64xbf16, #tpu.memory_space<vmem>>, %arg3: memref<1x64xf32, #tpu.memory_space<vmem>>, %arg4: memref<32x64xbf16, #tpu.memory_space<vmem>>) attributes {dimension_semantics = [#tpu.dimension_semantics<parallel>], iteration_bounds = array<i64: 1>, scalar_prefetch = 0 : i64, scratch_operands = 0 : i64, tpu.core_type = #tpu.core_type<tc>, window_params = [{transform_indices = @transform_0, window_bounds = array<i64: 32, 576>}, {pipeline_mode = #tpu.pipeline_mode<synchronous>, transform_indices = @transform_1, window_bounds = array<i64: 576, 64>}, {pipeline_mode = #tpu.pipeline_mode<synchronous>, transform_indices = @transform_2, window_bounds = array<i64: 1, 64>}, {transform_indices = @transform_3, window_bounds = array<i64: 32, 64>}]} {
    %c0 = arith.constant 0 : index
    %c0_0 = arith.constant 0 : index
    %0 = vector.load %arg1[%c0, %c0_0] : memref<32x576xbf16, #tpu.memory_space<vmem>>, vector<32x576xbf16>
    %c0_1 = arith.constant 0 : index
    %c0_2 = arith.constant 0 : index
    %1 = vector.load %arg2[%c0_1, %c0_2] : memref<576x64xbf16, #tpu.memory_space<vmem>>, vector<576x64xbf16>
    %cst = arith.constant dense<0.000000e+00> : vector<32x64xf32>
    %2 = tpu.matmul %0, %1, %cst {dimension_numbers = #tpu.dot_dimension_numbers<[1], [0], [0], [1], [0, 0, 1, 1], [], []>} : vector<32x576xbf16>, vector<576x64xbf16>, vector<32x64xf32> -> vector<32x64xf32>
    %c0_3 = arith.constant 0 : index
    %c0_4 = arith.constant 0 : index
    %3 = vector.load %arg3[%c0_3, %c0_4] : memref<1x64xf32, #tpu.memory_space<vmem>>, vector<1x64xf32>
    %4 = vector.broadcast %3 : vector<1x64xf32> to vector<32x64xf32>
    %5 = arith.addf %2, %4 : vector<32x64xf32>
    %6 = arith.negf %5 : vector<32x64xf32>
    %7 = math.exp %6 : vector<32x64xf32>
    %cst_5 = arith.constant 1.000000e+00 : f32
    %8 = vector.broadcast %cst_5 : f32 to vector<32x64xf32>
    %9 = arith.addf %8, %7 : vector<32x64xf32>
    %10 = arith.divf %8, %9 : vector<32x64xf32>
    %11 = arith.mulf %5, %10 : vector<32x64xf32>
    %12 = arith.truncf %11 : vector<32x64xf32> to vector<32x64xbf16>
    %c0_6 = arith.constant 0 : index
    %c0_7 = arith.constant 0 : index
    %13 = vector.load %arg4[%c0_6, %c0_7] : memref<32x64xbf16, #tpu.memory_space<vmem>>, vector<32x64xbf16>
    tpu.vector_store %arg4[%c0_6, %c0_7], %12 {strides = array<i32>} : memref<32x64xbf16, #tpu.memory_space<vmem>>, vector<32x64xbf16>,
    return
  }
  func.func @transform_0(%arg0: i32) -> (i32, i32) {
    %c0_i32 = arith.constant 0 : i32
    %c0_i32_0 = arith.constant 0 : i32
    return %arg0, %c0_i32 : i32, i32
  }
  func.func @transform_1(%arg0: i32) -> (i32, i32) {
    %c0_i32 = arith.constant 0 : i32
    %c0_i32_0 = arith.constant 0 : i32
    %c0_i32_1 = arith.constant 0 : i32
    return %c0_i32, %c0_i32_0 : i32, i32
  }
  func.func @transform_2(%arg0: i32) -> (i32, i32) {
    %c0_i32 = arith.constant 0 : i32
    %c0_i32_0 = arith.constant 0 : i32
    %c0_i32_1 = arith.constant 0 : i32
    return %c0_i32, %c0_i32_0 : i32, i32
  }
  func.func @transform_3(%arg0: i32) -> (i32, i32) {
    %c0_i32 = arith.constant 0 : i32
    %c0_i32_0 = arith.constant 0 : i32
    return %arg0, %c0_i32 : i32, i32
  }
}

module attributes {stable_mosaic.version = 11 : i64} {
  func.func @_gemm_bias_act_kernel(%arg0: i32, %arg1: memref<32x64xbf16, #tpu.memory_space<vmem>>, %arg2: memref<64x65xbf16, #tpu.memory_space<vmem>>, %arg3: memref<1x65xf32, #tpu.memory_space<vmem>>, %arg4: memref<32x65xf32, #tpu.memory_space<vmem>>) attributes {dimension_semantics = [#tpu.dimension_semantics<parallel>], iteration_bounds = array<i64: 1>, scalar_prefetch = 0 : i64, scratch_operands = 0 : i64, tpu.core_type = #tpu.core_type<tc>, window_params = [{transform_indices = @transform_0, window_bounds = array<i64: 32, 64>}, {pipeline_mode = #tpu.pipeline_mode<synchronous>, transform_indices = @transform_1, window_bounds = array<i64: 64, 65>}, {pipeline_mode = #tpu.pipeline_mode<synchronous>, transform_indices = @transform_2, window_bounds = array<i64: 1, 65>}, {transform_indices = @transform_3, window_bounds = array<i64: 32, 65>}]} {
    %c0 = arith.constant 0 : index
    %c0_0 = arith.constant 0 : index
    %0 = vector.load %arg1[%c0, %c0_0] : memref<32x64xbf16, #tpu.memory_space<vmem>>, vector<32x64xbf16>
    %c0_1 = arith.constant 0 : index
    %c0_2 = arith.constant 0 : index
    %1 = vector.load %arg2[%c0_1, %c0_2] : memref<64x65xbf16, #tpu.memory_space<vmem>>, vector<64x65xbf16>
    %cst = arith.constant dense<0.000000e+00> : vector<32x65xf32>
    %2 = tpu.matmul %0, %1, %cst {dimension_numbers = #tpu.dot_dimension_numbers<[1], [0], [0], [1], [0, 0, 1, 1], [], []>} : vector<32x64xbf16>, vector<64x65xbf16>, vector<32x65xf32> -> vector<32x65xf32>
    %c0_3 = arith.constant 0 : index
    %c0_4 = arith.constant 0 : index
    %3 = vector.load %arg3[%c0_3, %c0_4] : memref<1x65xf32, #tpu.memory_space<vmem>>, vector<1x65xf32>
    %4 = vector.broadcast %3 : vector<1x65xf32> to vector<32x65xf32>
    %5 = arith.addf %2, %4 : vector<32x65xf32>
    %c0_5 = arith.constant 0 : index
    %c0_6 = arith.constant 0 : index
    %6 = vector.load %arg4[%c0_5, %c0_6] : memref<32x65xf32, #tpu.memory_space<vmem>>, vector<32x65xf32>
    tpu.vector_store %arg4[%c0_5, %c0_6], %5 {strides = array<i32>} : memref<32x65xf32, #tpu.memory_space<vmem>>, vector<32x65xf32>,
    return
  }
  func.func @transform_0(%arg0: i32) -> (i32, i32) {
    %c0_i32 = arith.constant 0 : i32
    %c0_i32_0 = arith.constant 0 : i32
    return %arg0, %c0_i32 : i32, i32
  }
  func.func @transform_1(%arg0: i32) -> (i32, i32) {
    %c0_i32 = arith.constant 0 : i32
    %c0_i32_0 = arith.constant 0 : i32
    %c0_i32_1 = arith.constant 0 : i32
    return %c0_i32, %c0_i32_0 : i32, i32
  }
  func.func @transform_2(%arg0: i32) -> (i32, i32) {
    %c0_i32 = arith.constant 0 : i32
    %c0_i32_0 = arith.constant 0 : i32
    %c0_i32_1 = arith.constant 0 : i32
    return %c0_i32, %c0_i32_0 : i32, i32
  }
  func.func @transform_3(%arg0: i32) -> (i32, i32) {
    %c0_i32 = arith.constant 0 : i32
    %c0_i32_0 = arith.constant 0 : i32
    return %arg0, %c0_i32 : i32, i32
  }
}

</mosaic_0001>

<bundles_post_ra>
// kernel: _lambda_.16
= control target key start
LH: loop header
LB: loop body
LE: loop exit
PB: predicated region body
PF: predicated region fallthrough
CT: control target
= control target key end

     0   :  { %s1351_s12 = smov 0   ;;  %s1646_s0 = inlined_call_operand.vmem [shape: bf16[512,27], index: 0, kind: input, shape index: {}]   ;;  %s1647_s1 = inlined_call_operand.vmem [shape: bf16[27,16], index: 1, kind: input, shape index: {}]   ;;  %s1648_s2 = inlined_call_operand.vmem [shape: f32[1,16], index: 2, kind: input, shape index: {}]   ;;  %s1649_s3 = inlined_call_operand.vmem [shape: bf16[512,16], index: 3, kind: output, shape index: {}]  }
   0x1 LB: > { %s967_s13 = sadd.s32 4294967295, %s1328_s12   ;;  %p971_p0 = scmp.ge.s32.totalorder %s1328_s12, 1  ;;  %s1328_s12 = sphi %s1351_s12, %s13_s12  }
   0x2   : > { %p138_p1 = scmp.lt.s32.totalorder %s1328_s12, 3 }
   0x4   : > { %p139_p2 = pnand %p971_p0, %p138_p1 }
   0x5   : > { %s972_s16 = sshll.u32 (!%p139_p2), %s967_s13, 5 }
   0x6   : > { %142 = sbr.rel (%p139_p2) target bundleno = 303 (0x12f), region = 32  ;;  %p163_p3 = scmp.lt.s32.totalorder (!%p139_p2), %s972_s16, 63 }
   0xb   : > { %v1176_v0 = vld [vmem:[%s1647_s1 + $0x8] sm:$0x3f]   ;;  %vm358_vm0 = vcmask 1044480   ;;  %vm359_vm1 = vcmask 1045504   ;;  %v1330_v1 = vmov 65535   ;;  %v1177_v5 = vld [vmem:[%s1647_s1] sm:$0xff]  }
   0xc   : > { %v360_v2 = vsel %vm358_vm0, 4294967295, %v1330_v1  ;;  %s1651_s16 = smov (!%p163_p3, %s972_s16), 63  ;;  %vm309_vm2 = vcmask 220160   ;;  %v1410_v22 = vld [vmem:[%s1648_s2] ss:$0 sm:$0xff]  ;;  %vm878_vm3 = vcmask 125952  }
   0xd   : > { %v361_v3 = vsel %vm359_vm1, %v360_v2, 0  ;;  %s973_s19 = sshll.u32 %s1651_s16, 2 }
   0xe   : > { %v363_v4 = vand.u32 %v1176_v0, %v361_v3  ;;  %s1373_s22 = scalar_lea.vmem %s1646_s0, %s973_s19  ;;  %s1522_s27 = scalar_lea.vmem %s1649_s3, %s973_s19 }
   0xf   : > { %v1178_v6 = vld [vmem:[%s1373_s22] sm:$0xff]   ;;  %v1180_v8 = vld [vmem:[%s1373_s22 + $0x8] sm:$0xff]   ;;  %v1182_v10 = vld [vmem:[%s1373_s22 + $0x10] sm:$0xff]  }
  0x10   : > { %1127 = vmatprep.subr.bf16.mxu0 %v363_v4  ;;  %1163 = vmatprep.subr.bf16.mxu1 %v363_v4  ;;  %v1179_v7 = vld [vmem:[%s1373_s22 + $0x40] sm:$0xff]   ;;  %v1181_v9 = vld [vmem:[%s1373_s22 + $0x48] sm:$0xff]   ;;  %v1183_v11 = vld [vmem:[%s1373_s22 + $0x50] sm:$0xff]  }
  0x11   : > { %1128 = vmatpush3.bf16.msra.mxu0 %v363_v4  ;;  %1165 = vmatpush3.bf16.msra.mxu1 %v363_v4  ;;  %v1184_v12 = vld [vmem:[%s1373_s22 + $0x18] sm:$0xff]   ;;  %v1186_v14 = vld [vmem:[%s1373_s22 + $0x20] sm:$0xff]   ;;  %v1188_v16 = vld [vmem:[%s1373_s22 + $0x28] sm:$0xff]  }
  0x12   : > { %1129 = vmatprep.subr.bf16.mxu0 %v1177_v5  ;;  %1164 = vmatprep.subr.bf16.mxu1 %v1177_v5  ;;  %v1185_v13 = vld [vmem:[%s1373_s22 + $0x58] sm:$0xff]   ;;  %v1187_v15 = vld [vmem:[%s1373_s22 + $0x60] sm:$0xff]   ;;  %v1189_v17 = vld [vmem:[%s1373_s22 + $0x68] sm:$0xff]  }
  0x13   : > { %1131 = vmatprep.mubr.msk.bf16.mxu0 %vm309_vm2, %v1178_v6  ;;  %1147 = vmatprep.mubr.msk.bf16.mxu1 %vm309_vm2, %v1179_v7  ;;  %v1190_v18 = vld [vmem:[%s1373_s22 + $0x30] sm:$0xff]   ;;  %v1192_v20 = vld [vmem:[%s1373_s22 + $0x38] sm:$0xff]  }
  0x14   : > { %v1191_v19 = vld [vmem:[%s1373_s22 + $0x70] sm:$0xff]   ;;  %v1193_v21 = vld [vmem:[%s1373_s22 + $0x78] sm:$0xff]  }
  0x15   : > { %1130 = vmatpush3.bf16.msra.mxu0 %v1177_v5  ;;  %1166 = vmatpush3.bf16.msra.mxu1 %v1177_v5 }
  0x18   : > { %1132 = vmatmul.mubr.msk.bf16.vlgmr.msra.gmra.mxu0 %vm309_vm2, %v1180_v8  ;;  %1148 = vmatmul.mubr.msk.bf16.vlgmr.msra.gmra.mxu1 %vm309_vm2, %v1181_v9 }
  0x19   : > { %1135 = vmatprep.mubr.msk.bf16.mxu0 %vm309_vm2, %v1182_v10  ;;  %1151 = vmatprep.mubr.msk.bf16.mxu1 %vm309_vm2, %v1183_v11 }
  0x20   : > { %1136 = vmatmul.mubr.msk.bf16.gmra.mxu0 %vm309_vm2, %v1184_v12  ;;  %1152 = vmatmul.mubr.msk.bf16.gmra.mxu1 %vm309_vm2, %v1185_v13 }
  0x21   : > { %1139 = vmatprep.mubr.msk.bf16.mxu0 %vm309_vm2, %v1186_v14  ;;  %1155 = vmatprep.mubr.msk.bf16.mxu1 %vm309_vm2, %v1187_v15 }
  0x28   : > { %1140 = vmatmul.mubr.msk.bf16.gmra.mxu0 %vm309_vm2, %v1188_v16  ;;  %1156 = vmatmul.mubr.msk.bf16.gmra.mxu1 %vm309_vm2, %v1189_v17 }
  0x29   : > { %1143 = vmatprep.mubr.msk.bf16.mxu0 %vm309_vm2, %v1190_v18  ;;  %1159 = vmatprep.mubr.msk.bf16.mxu1 %vm309_vm2, %v1191_v19 }
  0x30   : > { %1144 = vmatmul.mubr.msk.bf16.gmra.mxu0 %vm309_vm2, %v1192_v20  ;;  %1160 = vmatmul.mubr.msk.bf16.gmra.mxu1 %vm309_vm2, %v1193_v21 }
  0xd8   : > { %v1133_v23 = vpop.f32.mrf.mxu0  ;;  %v1149_v24 = vpop.f32.mrf.mxu1 }
  0xd9   : > { %v1413_v25 = vadd.f32 %v1133_v23, %v1410_v22  ;;  %v1416_v26 = vadd.f32 %v1149_v24, %v1410_v22 }
  0xda   : > { %v399_v27 = vpop.f32.mrf.mxu0  ;;  %v463_v28 = vpop.f32.mrf.mxu1 }
  0xdb   : > { %v1013_v29 = vmul.f32 -1.442695, %v1413_v25  ;;  %v1029_v30 = vmul.f32 -1.442695, %v1416_v26  ;;  %v1421_v31 = vadd.f32 %v1410_v22, %v399_v27  ;;  %v1424_v32 = vadd.f32 %v1410_v22, %v463_v28 }
  0xdc   : > { %v1134_v33 = vpop.f32.mrf.mxu0  ;;  %v1150_v34 = vpop.f32.mrf.mxu1 }
  0xdd   : > { %1194 = vpow2.f32 %v1013_v29  ;;  %v1011_v35 = vmul.f32 -1.442695, %v1421_v31  ;;  %v1027_v36 = vmul.f32 -1.442695, %v1424_v32  ;;  %v1429_v37 = vadd.f32 %v1134_v33, %v1410_v22 }
  0xde   : > { %1196 = vpow2.f32 %v1029_v30  ;;  %v1432_v38 = vadd.f32 %v1150_v34, %v1410_v22  ;;  %v402_v39 = vpop.f32.mrf.mxu0  ;;  %v466_v40 = vpop.f32.mrf.mxu1 }
  0xdf   : > { %1198 = vpow2.f32 %v1011_v35  ;;  %v1014_v41 = vmul.f32 -1.442695, %v1429_v37  ;;  %v1436_v42 = vadd.f32 %v1410_v22, %v402_v39  ;;  %v1439_v43 = vadd.f32 %v1410_v22, %v466_v40 }
  0xe0   : > { %1200 = vpow2.f32 %v1027_v36  ;;  %v1030_v44 = vmul.f32 -1.442695, %v1432_v38  ;;  %v1137_v45 = vpop.f32.mrf.mxu0  ;;  %v1153_v46 = vpop.f32.mrf.mxu1 }
  0xe1   : > { %1202 = vpow2.f32 %v1014_v41  ;;  %v1012_v47 = vmul.f32 -1.442695, %v1436_v42  ;;  %v1028_v48 = vmul.f32 -1.442695, %v1439_v43  ;;  %v1445_v49 = vadd.f32 %v1137_v45, %v1410_v22 }
  0xe2   : > { %1204 = vpow2.f32 %v1030_v44  ;;  %v1448_v50 = vadd.f32 %v1153_v46, %v1410_v22  ;;  %v415_v51 = vpop.f32.mrf.mxu0  ;;  %v479_v52 = vpop.f32.mrf.mxu1 }
  0xe3   : > { %1206 = vpow2.f32 %v1012_v47  ;;  %v1017_v53 = vmul.f32 -1.442695, %v1445_v49  ;;  %v1452_v54 = vadd.f32 %v1410_v22, %v415_v51  ;;  %v1455_v55 = vadd.f32 %v1410_v22, %v479_v52 }
  0xe4   : > { %1208 = vpow2.f32 %v1028_v48  ;;  %v1033_v56 = vmul.f32 -1.442695, %v1448_v50  ;;  %v1138_v57 = vpop.f32.mrf.mxu0  ;;  %v1154_v58 = vpop.f32.mrf.mxu1 }
  0xe5   : > { %1210 = vpow2.f32 %v1017_v53  ;;  %v1015_v59 = vmul.f32 -1.442695, %v1452_v54  ;;  %v1031_v60 = vmul.f32 -1.442695, %v1455_v55  ;;  %v1461_v61 = vadd.f32 %v1138_v57, %v1410_v22 }
  0xe6   : > { %1212 = vpow2.f32 %v1033_v56  ;;  %v1464_v62 = vadd.f32 %v1154_v58, %v1410_v22  ;;  %v418_v63 = vpop.f32.mrf.mxu0  ;;  %v482_v0 = vpop.f32.mrf.mxu1 }
  0xe7   : > { %1214 = vpow2.f32 %v1015_v59  ;;  %v1018_v1 = vmul.f32 -1.442695, %v1461_v61  ;;  %v1468_v2 = vadd.f32 %v1410_v22, %v418_v63  ;;  %v1471_v3 = vadd.f32 %v1410_v22, %v482_v0 }
  0xe8   : > { %1216 = vpow2.f32 %v1031_v60  ;;  %v1034_v4 = vmul.f32 -1.442695, %v1464_v62  ;;  %v1141_v5 = vpop.f32.mrf.mxu0  ;;  %v1157_v6 = vpop.f32.mrf.mxu1 }
  0xe9   : > { %1218 = vpow2.f32 %v1018_v1  ;;  %v1016_v7 = vmul.f32 -1.442695, %v1468_v2  ;;  %v1032_v8 = vmul.f32 -1.442695, %v1471_v3  ;;  %v1477_v29 = vadd.f32 %v1141_v5, %v1410_v22 }
  0xea   : > { %v1195_v9 = vpop.eup %1194  ;;  %1220 = vpow2.f32 %v1034_v4  ;;  %v431_v10 = vpop.f32.mrf.mxu0  ;;  %v1480_v40 = vadd.f32 %v1157_v6, %v1410_v22 }
  0xeb   : > { %v495_v11 = vpop.f32.mrf.mxu1  ;;  %v1197_v12 = vpop.eup %1196  ;;  %v624_v13 = vadd.f32 1.0, %v1195_v9  ;;  %1222 = vpow2.f32 %v1016_v7  ;;  %v1483_v45 = vadd.f32 %v1410_v22, %v431_v10  ;;  %v1021_v48 = vmul.f32 -1.442695, %v1477_v29 }
  0xec   : > { %v1199_v14 = vpop.eup %1198  ;;  %v640_v15 = vadd.f32 1.0, %v1197_v12  ;;  %1224 = vpow2.f32 %v1032_v8  ;;  %v1142_v16 = vpop.f32.mrf.mxu0  ;;  %v1487_v56 = vadd.f32 %v1410_v22, %v495_v11  ;;  %v1037_v63 = vmul.f32 -1.442695, %v1480_v40 }
  0xed   : > { %v1201_v17 = vpop.eup %1200  ;;  %1226 = vrcp.f32 %v624_v13  ;;  %v622_v18 = vadd.f32 1.0, %v1199_v14  ;;  %v1158_v19 = vpop.f32.mrf.mxu1  ;;  %v1490_v57 = vadd.f32 %v1142_v16, %v1410_v22  ;;  %v1019_v5 = vmul.f32 -1.442695, %v1483_v45 }
  0xee   : > { %v1203_v20 = vpop.eup %1202  ;;  %1228 = vrcp.f32 %v640_v15  ;;  %v638_v21 = vadd.f32 1.0, %v1201_v17  ;;  %v434_v30 = vpop.f32.mrf.mxu0  ;;  %v1494_v0 = vadd.f32 %v1158_v19, %v1410_v22  ;;  %v1035_v14 = vmul.f32 -1.442695, %v1487_v56 }
  0xef   : > { %v1205_v23 = vpop.eup %1204  ;;  %1230 = vrcp.f32 %v622_v18  ;;  %v625_v24 = vadd.f32 1.0, %v1203_v20  ;;  %v498_v35 = vpop.f32.mrf.mxu1  ;;  %v1498_v6 = vadd.f32 %v1410_v22, %v434_v30  ;;  %v1022_v15 = vmul.f32 -1.442695, %v1490_v57 }
  0xf0   : > { %v1207_v27 = vpop.eup %1206  ;;  %1232 = vrcp.f32 %v638_v21  ;;  %v641_v28 = vadd.f32 1.0, %v1205_v23  ;;  %v1145_v51 = vpop.f32.mrf.mxu0  ;;  %v1501_v9 = vadd.f32 %v1410_v22, %v498_v35  ;;  %v1038_v19 = vmul.f32 -1.442695, %v1494_v0 }
  0xf1   : > { %v1209_v33 = vpop.eup %1208  ;;  %1234 = vrcp.f32 %v625_v24  ;;  %v623_v34 = vadd.f32 1.0, %v1207_v27  ;;  %v1161_v58 = vpop.f32.mrf.mxu1  ;;  %v1504_v10 = vadd.f32 %v1145_v51, %v1410_v22  ;;  %v1020_v24 = vmul.f32 -1.442695, %v1498_v6 }
  0xf2   : > { %v1211_v36 = vpop.eup %1210  ;;  %1236 = vrcp.f32 %v641_v28  ;;  %v639_v39 = vadd.f32 1.0, %v1209_v33  ;;  %v447_v11 = vpop.f32.mrf.mxu0  ;;  %v1510_v20 = vadd.f32 %v1161_v58, %v1410_v22  ;;  %v1036_v33 = vmul.f32 -1.442695, %v1501_v9 }
  0xf3   : > { %v1213_v41 = vpop.eup %1212  ;;  %1238 = vrcp.f32 %v623_v34  ;;  %v628_v44 = vadd.f32 1.0, %v1211_v36  ;;  %v511_v16 = vpop.f32.mrf.mxu1  ;;  %v1515_v27 = vadd.f32 %v1410_v22, %v447_v11 }
  0xf4   : > { %v1215_v46 = vpop.eup %1214  ;;  %1240 = vrcp.f32 %v639_v39  ;;  %v644_v47 = vadd.f32 1.0, %v1213_v41  ;;  %v1146_v34 = vpop.f32.mrf.mxu0  ;;  %v1529_v41 = vadd.f32 %v1410_v22, %v511_v16  ;;  %v1041_v51 = vmul.f32 -1.442695, %v1510_v20 }
  0xf5   : > { %v1217_v52 = vpop.eup %1216  ;;  %1242 = vrcp.f32 %v628_v44  ;;  %v626_v53 = vadd.f32 1.0, %v1215_v46  ;;  %v1162_v44 = vpop.f32.mrf.mxu1 }
  0xf6   : > { %v1219_v59 = vpop.eup %1218  ;;  %1244 = vrcp.f32 %v644_v47  ;;  %v642_v60 = vadd.f32 1.0, %v1217_v52 }
  0xf7   : > { %v1221_v1 = vpop.eup %1220  ;;  %1246 = vrcp.f32 %v626_v53  ;;  %v629_v4 = vadd.f32 1.0, %v1219_v59 }
  0xf8   : > { %v1223_v7 = vpop.eup %1222  ;;  %1248 = vrcp.f32 %v642_v60  ;;  %v645_v8 = vadd.f32 1.0, %v1221_v1  ;;  %v1541_v60 = vadd.f32 %v1146_v34, %v1410_v22 }
  0xf9   : > { %v1225_v12 = vpop.eup %1224  ;;  %1250 = vrcp.f32 %v629_v4  ;;  %v627_v13 = vadd.f32 1.0, %v1223_v7  ;;  %v514_v7 = vpop.f32.mrf.mxu1 }
  0xfa   : > { %v1227_v17 = vpop.eup %1226  ;;  %1252 = vrcp.f32 %v645_v8  ;;  %v643_v18 = vadd.f32 1.0, %v1225_v12  ;;  %v1551_v12 = vadd.f32 %v1162_v44, %v1410_v22 }
  0xfb   : > { %v1229_v21 = vpop.eup %1228  ;;  %v720_v23 = vmul.f32 %v1227_v17, %v1413_v25  ;;  %1254 = vrcp.f32 %v627_v13  ;;  %v1025_v25 = vmul.f32 -1.442695, %v1504_v10 }
  0xfc   : > { %v1231_v28 = vpop.eup %1230  ;;  %v736_v30 = vmul.f32 %v1229_v21, %v1416_v26  ;;  %1256 = vrcp.f32 %v643_v18  ;;  %v1563_v18 = vadd.f32 %v1410_v22, %v514_v7 }
  0xfd   : > { %v1233_v35 = vpop.eup %1232  ;;  %v1079_v36 = vpack.c.bf16 %v720_v23, %v720_v23  ;;  %v718_v39 = vmul.f32 %v1231_v28, %v1421_v31  ;;  %1258 = vpow2.f32 %v1021_v48  ;;  %v1023_v48 = vmul.f32 -1.442695, %v1515_v27 }
  0xfe   : > { %v1235_v46 = vpop.eup %1234  ;;  %v1095_v47 = vpack.c.bf16 %v736_v30, %v736_v30  ;;  %v734_v26 = vmul.f32 %v1233_v35, %v1424_v32  ;;  %1260 = vpow2.f32 %v1037_v63  ;;  %v450_v63 = vpop.f32.mrf.mxu0  ;;  %v1026_v23 = vmul.f32 -1.442695, %v1541_v60 }
  0xff   : > { %v1237_v52 = vpop.eup %1236  ;;  %881 = vst.msk [vmem:[%s1522_s27 + $0x8] sm:$0xf] %vm878_vm3, %v1079_v36  ;;  %v1077_v53 = vpack.c.bf16 %v718_v39, %v718_v39  ;;  %v721_v31 = vmul.f32 %v1235_v46, %v1429_v37  ;;  %1262 = vpow2.f32 %v1019_v5  ;;  %v1039_v5 = vmul.f32 -1.442695, %v1529_v41 }
 0x100   : > { %v1239_v58 = vpop.eup %1238  ;;  %897 = vst.msk [vmem:[%s1522_s27 + $0x48] sm:$0xf] %vm878_vm3, %v1095_v47  ;;  %v1093_v59 = vpack.c.bf16 %v734_v26, %v734_v26  ;;  %v737_v32 = vmul.f32 %v1237_v52, %v1432_v38  ;;  %1264 = vpow2.f32 %v1035_v14  ;;  %v1040_v36 = vmul.f32 -1.442695, %v1563_v18 }
 0x101   : > { %v1241_v1 = vpop.eup %1240  ;;  %879 = vst.msk [vmem:[%s1522_s27] sm:$0xf] %vm878_vm3, %v1077_v53  ;;  %v1080_v37 = vpack.c.bf16 %v721_v31, %v721_v31  ;;  %v719_v4 = vmul.f32 %v1239_v58, %v1436_v42  ;;  %1266 = vpow2.f32 %v1022_v15  ;;  %v1557_v15 = vadd.f32 %v1410_v22, %v450_v63 }
 0x102   : > { %v1243_v8 = vpop.eup %1242  ;;  %895 = vst.msk [vmem:[%s1522_s27 + $0x40] sm:$0xf] %vm878_vm3, %v1093_v59  ;;  %v1096_v38 = vpack.c.bf16 %v737_v32, %v737_v32  ;;  %v735_v11 = vmul.f32 %v1241_v1, %v1439_v43  ;;  %1268 = vpow2.f32 %v1038_v19  ;;  %v1042_v22 = vmul.f32 -1.442695, %v1551_v12 }
 0x103   : > { %v1245_v13 = vpop.eup %1244  ;;  %882 = vst.msk [vmem:[%s1522_s27 + $0xc] sm:$0xf] %vm878_vm3, %v1080_v37  ;;  %v1078_v42 = vpack.c.bf16 %v719_v4, %v719_v4  ;;  %v724_v14 = vmul.f32 %v1243_v8, %v1445_v49  ;;  %1270 = vpow2.f32 %v1020_v24 }
 0x104   : > { %v1247_v16 = vpop.eup %1246  ;;  %898 = vst.msk [vmem:[%s1522_s27 + $0x4c] sm:$0xf] %vm878_vm3, %v1096_v38  ;;  %v1094_v43 = vpack.c.bf16 %v735_v11, %v735_v11  ;;  %v740_v17 = vmul.f32 %v1245_v13, %v1448_v50  ;;  %1272 = vpow2.f32 %v1036_v33 }
 0x105   : > { %v1249_v19 = vpop.eup %1248  ;;  %880 = vst.msk [vmem:[%s1522_s27 + $0x4] sm:$0xf] %vm878_vm3, %v1078_v42  ;;  %v1083_v49 = vpack.c.bf16 %v724_v14, %v724_v14  ;;  %v722_v21 = vmul.f32 %v1247_v16, %v1452_v54  ;;  %1274 = vpow2.f32 %v1025_v25  ;;  %v1024_v25 = vmul.f32 -1.442695, %v1557_v15 }
 0x106   : > { %v1251_v24 = vpop.eup %1250  ;;  %896 = vst.msk [vmem:[%s1522_s27 + $0x44] sm:$0xf] %vm878_vm3, %v1094_v43  ;;  %v1099_v28 = vpack.c.bf16 %v740_v17, %v740_v17  ;;  %v738_v50 = vmul.f32 %v1249_v19, %v1455_v55  ;;  %1276 = vpow2.f32 %v1041_v51 }
 0x107   : > { %v1253_v30 = vpop.eup %1252  ;;  %885 = vst.msk [vmem:[%s1522_s27 + $0x18] sm:$0xf] %vm878_vm3, %v1083_v49  ;;  %v1081_v33 = vpack.c.bf16 %v722_v21, %v722_v21  ;;  %v725_v54 = vmul.f32 %v1251_v24, %v1461_v61  ;;  %1278 = vpow2.f32 %v1023_v48 }
 0x108   : > { %v1255_v34 = vpop.eup %1254  ;;  %901 = vst.msk [vmem:[%s1522_s27 + $0x58] sm:$0xf] %vm878_vm3, %v1099_v28  ;;  %v1097_v35 = vpack.c.bf16 %v738_v50, %v738_v50  ;;  %v741_v55 = vmul.f32 %v1253_v30, %v1464_v62  ;;  %1280 = vpow2.f32 %v1039_v5 }
 0x109   : > { %v1257_v39 = vpop.eup %1256  ;;  %883 = vst.msk [vmem:[%s1522_s27 + $0x10] sm:$0xf] %vm878_vm3, %v1081_v33  ;;  %v1084_v44 = vpack.c.bf16 %v725_v54, %v725_v54  ;;  %v723_v61 = vmul.f32 %v1255_v34, %v1468_v2  ;;  %1282 = vpow2.f32 %v1026_v23 }
 0x10a   : > { %v1259_v46 = vpop.eup %1258  ;;  %899 = vst.msk [vmem:[%s1522_s27 + $0x50] sm:$0xf] %vm878_vm3, %v1097_v35  ;;  %v1100_v47 = vpack.c.bf16 %v741_v55, %v741_v55  ;;  %v739_v26 = vmul.f32 %v1257_v39, %v1471_v3  ;;  %1284 = vpow2.f32 %v1042_v22 }
 0x10b   : > { %v1261_v62 = vpop.eup %1260  ;;  %886 = vst.msk [vmem:[%s1522_s27 + $0x1c] sm:$0xf] %vm878_vm3, %v1084_v44  ;;  %v1082_v51 = vpack.c.bf16 %v723_v61, %v723_v61  ;;  %v632_v52 = vadd.f32 1.0, %v1259_v46  ;;  %1286 = vpow2.f32 %v1024_v25 }
 0x10c   : > { %v1263_v53 = vpop.eup %1262  ;;  %902 = vst.msk [vmem:[%s1522_s27 + $0x5c] sm:$0xf] %vm878_vm3, %v1100_v47  ;;  %v1098_v2 = vpack.c.bf16 %v739_v26, %v739_v26  ;;  %v648_v31 = vadd.f32 1.0, %v1261_v62  ;;  %1288 = vpow2.f32 %v1040_v36 }
 0x10d   : > { %v1265_v48 = vpop.eup %1264  ;;  %884 = vst.msk [vmem:[%s1522_s27 + $0x14] sm:$0xf] %vm878_vm3, %v1082_v51  ;;  %1290 = vrcp.f32 %v632_v52  ;;  %v630_v58 = vadd.f32 1.0, %v1263_v53 }
 0x10e   : > { %v1267_v3 = vpop.eup %1266  ;;  %900 = vst.msk [vmem:[%s1522_s27 + $0x54] sm:$0xf] %vm878_vm3, %v1098_v2  ;;  %1292 = vrcp.f32 %v648_v31  ;;  %v646_v59 = vadd.f32 1.0, %v1265_v48 }
 0x10f   : > { %v1269_v32 = vpop.eup %1268  ;;  %1294 = vrcp.f32 %v630_v58  ;;  %v633_v63 = vadd.f32 1.0, %v1267_v3 }
 0x110   : > { %v1271_v1 = vpop.eup %1270  ;;  %1296 = vrcp.f32 %v646_v59  ;;  %v649_v37 = vadd.f32 1.0, %v1269_v32 }
 0x111   : > { %v1273_v4 = vpop.eup %1272  ;;  %1298 = vrcp.f32 %v633_v63  ;;  %v631_v5 = vadd.f32 1.0, %v1271_v1 }
 0x112   : > { %v1275_v7 = vpop.eup %1274  ;;  %1300 = vrcp.f32 %v649_v37  ;;  %v647_v8 = vadd.f32 1.0, %v1273_v4 }
 0x113   : > { %v1277_v38 = vpop.eup %1276  ;;  %1302 = vrcp.f32 %v631_v5  ;;  %v636_v11 = vadd.f32 1.0, %v1275_v7 }
 0x114   : > { %v1279_v13 = vpop.eup %1278  ;;  %1304 = vrcp.f32 %v647_v8  ;;  %v652_v42 = vadd.f32 1.0, %v1277_v38 }
 0x115   : > { %v1281_v14 = vpop.eup %1280  ;;  %1306 = vrcp.f32 %v636_v11  ;;  %v634_v16 = vadd.f32 1.0, %v1279_v13 }
 0x116   : > { %v1283_v43 = vpop.eup %1282  ;;  %1308 = vrcp.f32 %v652_v42  ;;  %v650_v17 = vadd.f32 1.0, %v1281_v14 }
 0x117   : > { %v1285_v19 = vpop.eup %1284  ;;  %1310 = vrcp.f32 %v634_v16  ;;  %v637_v49 = vadd.f32 1.0, %v1283_v43 }
 0x118   : > { %v1287_v21 = vpop.eup %1286  ;;  %1312 = vrcp.f32 %v650_v17  ;;  %v653_v23 = vadd.f32 1.0, %v1285_v19 }
 0x119   : > { %v1289_v24 = vpop.eup %1288  ;;  %1314 = vrcp.f32 %v637_v49  ;;  %v635_v28 = vadd.f32 1.0, %v1287_v21 }
 0x11a   : > { %v1291_v50 = vpop.eup %1290  ;;  %1316 = vrcp.f32 %v653_v23  ;;  %v651_v22 = vadd.f32 1.0, %v1289_v24 }
 0x11b   : > { %v1293_v30 = vpop.eup %1292  ;;  %v728_v33 = vmul.f32 %v1291_v50, %v1477_v29  ;;  %1318 = vrcp.f32 %v635_v28 }
 0x11c   : > { %v1295_v54 = vpop.eup %1294  ;;  %v744_v25 = vmul.f32 %v1293_v30, %v1480_v40  ;;  %1320 = vrcp.f32 %v651_v22 }
 0x11d   : > { %v1297_v34 = vpop.eup %1296  ;;  %v1087_v35 = vpack.c.bf16 %v728_v33, %v728_v33  ;;  %v726_v55 = vmul.f32 %v1295_v54, %v1483_v45 }
 0x11e   : > { %v1299_v36 = vpop.eup %1298  ;;  %v1103_v39 = vpack.c.bf16 %v744_v25, %v744_v25  ;;  %v742_v44 = vmul.f32 %v1297_v34, %v1487_v56 }
 0x11f   : > { %v1301_v61 = vpop.eup %1300  ;;  %889 = vst.msk [vmem:[%s1522_s27 + $0x28] sm:$0xf] %vm878_vm3, %v1087_v35  ;;  %v1085_v29 = vpack.c.bf16 %v726_v55, %v726_v55  ;;  %v729_v46 = vmul.f32 %v1299_v36, %v1490_v57 }
 0x120   : > { %v1303_v47 = vpop.eup %1302  ;;  %905 = vst.msk [vmem:[%s1522_s27 + $0x68] sm:$0xf] %vm878_vm3, %v1103_v39  ;;  %v1101_v40 = vpack.c.bf16 %v742_v44, %v742_v44  ;;  %v745_v26 = vmul.f32 %v1301_v61, %v1494_v0 }
 0x121   : > { %v1305_v45 = vpop.eup %1304  ;;  %887 = vst.msk [vmem:[%s1522_s27 + $0x20] sm:$0xf] %vm878_vm3, %v1085_v29  ;;  %v1088_v62 = vpack.c.bf16 %v729_v46, %v729_v46  ;;  %v727_v56 = vmul.f32 %v1303_v47, %v1498_v6 }
 0x122   : > { %v1307_v51 = vpop.eup %1306  ;;  %903 = vst.msk [vmem:[%s1522_s27 + $0x60] sm:$0xf] %vm878_vm3, %v1101_v40  ;;  %v1104_v52 = vpack.c.bf16 %v745_v26, %v745_v26  ;;  %v743_v57 = vmul.f32 %v1305_v45, %v1501_v9 }
 0x123   : > { %v1309_v53 = vpop.eup %1308  ;;  %890 = vst.msk [vmem:[%s1522_s27 + $0x2c] sm:$0xf] %vm878_vm3, %v1088_v62  ;;  %v1086_v2 = vpack.c.bf16 %v727_v56, %v727_v56  ;;  %v732_v0 = vmul.f32 %v1307_v51, %v1504_v10 }
 0x124   : > { %v1311_v31 = vpop.eup %1310  ;;  %906 = vst.msk [vmem:[%s1522_s27 + $0x6c] sm:$0xf] %vm878_vm3, %v1104_v52  ;;  %v1102_v48 = vpack.c.bf16 %v743_v57, %v743_v57  ;;  %v748_v6 = vmul.f32 %v1309_v53, %v1510_v20 }
 0x125   : > { %v1313_v58 = vpop.eup %1312  ;;  %888 = vst.msk [vmem:[%s1522_s27 + $0x24] sm:$0xf] %vm878_vm3, %v1086_v2  ;;  %v1091_v3 = vpack.c.bf16 %v732_v0, %v732_v0  ;;  %v730_v9 = vmul.f32 %v1311_v31, %v1515_v27 }
 0x126   : > { %v1315_v59 = vpop.eup %1314  ;;  %904 = vst.msk [vmem:[%s1522_s27 + $0x64] sm:$0xf] %vm878_vm3, %v1102_v48  ;;  %v1107_v32 = vpack.c.bf16 %v748_v6, %v748_v6  ;;  %v746_v10 = vmul.f32 %v1313_v58, %v1529_v41 }
 0x127   : > { %v1317_v63 = vpop.eup %1316  ;;  %893 = vst.msk [vmem:[%s1522_s27 + $0x38] sm:$0xf] %vm878_vm3, %v1091_v3  ;;  %v1089_v20 = vpack.c.bf16 %v730_v9, %v730_v9  ;;  %v733_v1 = vmul.f32 %v1315_v59, %v1541_v60 }
 0x128   : > { %v1319_v37 = vpop.eup %1318  ;;  %909 = vst.msk [vmem:[%s1522_s27 + $0x78] sm:$0xf] %vm878_vm3, %v1107_v32  ;;  %v1105_v27 = vpack.c.bf16 %v746_v10, %v746_v10  ;;  %v749_v4 = vmul.f32 %v1317_v63, %v1551_v12 }
 0x129   : > { %v1321_v5 = vpop.eup %1320  ;;  %891 = vst.msk [vmem:[%s1522_s27 + $0x30] sm:$0xf] %vm878_vm3, %v1089_v20  ;;  %v1092_v41 = vpack.c.bf16 %v733_v1, %v733_v1  ;;  %v731_v7 = vmul.f32 %v1319_v37, %v1557_v15 }
 0x12a   : > { %907 = vst.msk [vmem:[%s1522_s27 + $0x70] sm:$0xf] %vm878_vm3, %v1105_v27  ;;  %v1108_v8 = vpack.c.bf16 %v749_v4, %v749_v4  ;;  %v747_v38 = vmul.f32 %v1321_v5, %v1563_v18 }
 0x12b   : > { %894 = vst.msk [vmem:[%s1522_s27 + $0x3c] sm:$0xf] %vm878_vm3, %v1092_v41  ;;  %v1090_v60 = vpack.c.bf16 %v731_v7, %v731_v7 }
 0x12c   : > { %910 = vst.msk [vmem:[%s1522_s27 + $0x7c] sm:$0xf] %vm878_vm3, %v1108_v8  ;;  %v1106_v11 = vpack.c.bf16 %v747_v38, %v747_v38 }
 0x12d   : > { %892 = vst.msk [vmem:[%s1522_s27 + $0x34] sm:$0xf] %vm878_vm3, %v1090_v60 }
 0x12e   : > { %908 = vst.msk [vmem:[%s1522_s27 + $0x74] sm:$0xf] %vm878_vm3, %v1106_v11 }
 0x12f PF: > { %s13_s12 = sadd.s32 1, %s1328_s12  }
 0x130   : > { %p10_p4 = scmp.ge.s32.totalorder %s13_s12, 4  }
 0x132   :  { %12 = sbr.rel (!%p10_p4) target bundleno = 1 (0x1), region = 62 }

// kernel: _lambda_.17
= control target key start
LH: loop header
LB: loop body
LE: loop exit
PB: predicated region body
PF: predicated region fallthrough
CT: control target
= control target key end

     0   :  { %v699_v0 = vmov 0   ;;  %vm182_vm0 = vcmask 130048   ;;  %vm480_vm1 = vcmask 257024   ;;  %s952_s1 = inlined_call_operand.vmem [shape: bf16[144,32], index: 1, kind: input, shape index: {}]   ;;  %s953_s0 = inlined_call_operand.vmem [shape: bf16[128,144], index: 0, kind: input, shape index: {}]   ;;  %s954_s2 = inlined_call_operand.vmem [shape: f32[1,32], index: 2, kind: input, shape index: {}]   ;;  %s955_s3 = inlined_call_operand.vmem [shape: bf16[128,32], index: 3, kind: output, shape index: {}]  }
   0x1   :  { %207 = vmatprep.subr.bf16.mxu0 %v699_v0  ;;  %583 = vmatprep.subr.bf16.mxu1 %v699_v0  ;;  %v602_v1 = vld [vmem:[%s952_s1 + $0x38] sm:$0xff]   ;;  %v603_v2 = vld [vmem:[%s952_s1 + $0x30] sm:$0xff]   ;;  %v604_v3 = vld [vmem:[%s952_s1 + $0x28] sm:$0xff]  }
   0x2   :  { %208 = vmatpush1.bf16.msra.mxu0 %v602_v1  ;;  %592 = vmatpush1.bf16.msra.mxu1 %v602_v1  ;;  %v605_v4 = vld [vmem:[%s952_s1 + $0x20] sm:$0xff]   ;;  %v606_v7 = vld [vmem:[%s952_s1 + $0x18] sm:$0xff]   ;;  %v607_v8 = vld [vmem:[%s952_s1 + $0x10] sm:$0xff]  }
   0x3   :  { %209 = vmatprep.subr.bf16.mxu0 %v699_v0  ;;  %584 = vmatprep.subr.bf16.mxu1 %v699_v0  ;;  %v613_v5 = vld [vmem:[%s953_s0 + $0x4] ss:$8 sps:$4 sm:$0xff]   ;;  %v611_v12 = vld [vmem:[%s953_s0] ss:$8 sps:$4 sm:$0xff]   ;;  %v617_v14 = vld [vmem:[%s953_s0 + $0x14] ss:$8 sps:$4 sm:$0xff]  }
   0x4   :  { %v616_v6 = vld [vmem:[%s953_s0 + $0x44] ss:$8 sps:$4 sm:$0xff]   ;;  %527 = vmatprep.mubr.msk.bf16.mxu0 %vm182_vm0, %v613_v5  ;;  %v614_v13 = vld [vmem:[%s953_s0 + $0x40] ss:$8 sps:$4 sm:$0xff]   ;;  %v619_v15 = vld [vmem:[%s953_s0 + $0x54] ss:$8 sps:$4 sm:$0xff]  }
   0x5   :  { %531 = vmatprep.mubr.msk.bf16.mxu1 %vm182_vm0, %v616_v6  ;;  %v608_v9 = vld [vmem:[%s952_s1 + $0x8] sm:$0xff]   ;;  %v609_v10 = vld [vmem:[%s952_s1] sm:$0xff]   ;;  %v621_v16 = vld [vmem:[%s953_s0 + $0x10] ss:$8 sps:$4 sm:$0xff]  }
   0x6   :  { %210 = vmatpush1.bf16.msra.mxu0 %v603_v2  ;;  %593 = vmatpush1.bf16.msra.mxu1 %v603_v2  ;;  %v610_v11 = vld [vmem:[%s952_s1 + $0x40] sm:$0xff]   ;;  %v622_v17 = vld [vmem:[%s953_s0 + $0x50] ss:$8 sps:$4 sm:$0xff]   ;;  %v629_v22 = vld [vmem:[%s953_s0 + $0x34] ss:$8 sps:$4 sm:$0xff]  }
   0x7   :  { %211 = vmatprep.subr.bf16.mxu0 %v699_v0  ;;  %585 = vmatprep.subr.bf16.mxu1 %v699_v0  ;;  %v623_v18 = vld [vmem:[%s953_s0 + $0x24] ss:$8 sps:$4 sm:$0xff]   ;;  %v627_v20 = vld [vmem:[%s953_s0 + $0x20] ss:$8 sps:$4 sm:$0xff]   ;;  %v631_v23 = vld [vmem:[%s953_s0 + $0x74] ss:$8 sps:$4 sm:$0xff]  }
   0x8   :  { %v625_v19 = vld [vmem:[%s953_s0 + $0x64] ss:$8 sps:$4 sm:$0xff]   ;;  %v628_v21 = vld [vmem:[%s953_s0 + $0x60] ss:$8 sps:$4 sm:$0xff]   ;;  %v633_v24 = vld [vmem:[%s953_s0 + $0x30] ss:$8 sps:$4 sm:$0xff]  }
   0x9   :  { %v634_v25 = vld [vmem:[%s953_s0 + $0x70] ss:$8 sps:$4 sm:$0xff]   ;;  %v806_v26 = vld [vmem:[%s954_s2] ss:$0 sm:$0xff] }
   0xa   :  { %212 = vmatpush1.bf16.msra.mxu0 %v604_v3  ;;  %594 = vmatpush1.bf16.msra.mxu1 %v604_v3 }
   0xb   :  { %213 = vmatprep.subr.bf16.mxu0 %v699_v0  ;;  %586 = vmatprep.subr.bf16.mxu1 %v699_v0 }
   0xe   :  { %214 = vmatpush1.bf16.msra.mxu0 %v605_v4  ;;  %595 = vmatpush1.bf16.msra.mxu1 %v605_v4 }
   0xf   :  { %215 = vmatprep.subr.bf16.mxu0 %v699_v0  ;;  %587 = vmatprep.subr.bf16.mxu1 %v699_v0 }
  0x12   :  { %216 = vmatpush1.bf16.msra.mxu0 %v606_v7  ;;  %596 = vmatpush1.bf16.msra.mxu1 %v606_v7 }
  0x13   :  { %217 = vmatprep.subr.bf16.mxu0 %v699_v0  ;;  %588 = vmatprep.subr.bf16.mxu1 %v699_v0 }
  0x16   :  { %218 = vmatpush1.bf16.msra.mxu0 %v607_v8  ;;  %597 = vmatpush1.bf16.msra.mxu1 %v607_v8 }
  0x17   :  { %219 = vmatprep.subr.bf16.mxu0 %v699_v0  ;;  %589 = vmatprep.subr.bf16.mxu1 %v699_v0 }
  0x1a   :  { %220 = vmatpush1.bf16.msra.mxu0 %v608_v9  ;;  %598 = vmatpush1.bf16.msra.mxu1 %v608_v9 }
  0x1b   :  { %221 = vmatprep.subr.bf16.mxu0 %v699_v0  ;;  %590 = vmatprep.subr.bf16.mxu1 %v699_v0 }
  0x1e   :  { %222 = vmatpush1.bf16.msra.mxu0 %v609_v10  ;;  %599 = vmatpush1.bf16.msra.mxu1 %v609_v10 }
  0x1f   :  { %237 = vmatprep.subr.bf16.mxu0 %v699_v0  ;;  %591 = vmatprep.subr.bf16.mxu1 %v699_v0 }
  0x22   :  { %238 = vmatpush2.bf16.msra.mxu0 %v610_v11  ;;  %600 = vmatpush2.bf16.msra.mxu1 %v610_v11 }
  0x25   :  { %240 = vmatmul.mubr.bf16.vlgmr.msra.gmra.mxu0 %v611_v12  ;;  %272 = vmatmul.mubr.bf16.vlgmr.msra.gmra.mxu1 %v614_v13 }
  0x26   :  { %528 = vmatprep.mubr.msk.bf16.mxu0 %vm182_vm0, %v617_v14  ;;  %532 = vmatprep.mubr.msk.bf16.mxu1 %vm182_vm0, %v619_v15 }
  0x2d   :  { %248 = vmatmul.mubr.bf16.gmra.mxu0 %v621_v16  ;;  %280 = vmatmul.mubr.bf16.gmra.mxu1 %v622_v17 }
  0x2e   :  { %529 = vmatprep.mubr.msk.bf16.mxu0 %vm182_vm0, %v623_v18  ;;  %533 = vmatprep.mubr.msk.bf16.mxu1 %vm182_vm0, %v625_v19 }
  0x35   :  { %256 = vmatmul.mubr.bf16.gmra.mxu0 %v627_v20  ;;  %288 = vmatmul.mubr.bf16.gmra.mxu1 %v628_v21 }
  0x36   :  { %530 = vmatprep.mubr.msk.bf16.mxu0 %vm182_vm0, %v629_v22  ;;  %534 = vmatprep.mubr.msk.bf16.mxu1 %vm182_vm0, %v631_v23 }
  0x3d   :  { %264 = vmatmul.mubr.bf16.gmra.mxu0 %v633_v24  ;;  %296 = vmatmul.mubr.bf16.gmra.mxu1 %v634_v25 }
  0xe5   :  { %v241_v27 = vpop.f32.mrf.mxu0  ;;  %v273_v28 = vpop.f32.mrf.mxu1 }
  0xe6   :  { %v809_v29 = vadd.f32 %v806_v26, %v241_v27  ;;  %v812_v30 = vadd.f32 %v806_v26, %v273_v28 }
  0xe7   :  { %v243_v31 = vpop.f32.mrf.mxu0  ;;  %v275_v32 = vpop.f32.mrf.mxu1 }
  0xe8   :  { %v535_v33 = vmul.f32 -1.442695, %v809_v29  ;;  %v543_v34 = vmul.f32 -1.442695, %v812_v30 }
  0xe9   :  { %v244_v35 = vpop.f32.mrf.mxu0  ;;  %v276_v36 = vpop.f32.mrf.mxu1 }
  0xea   :  { %635 = vpow2.f32 %v535_v33  ;;  %v817_v37 = vadd.f32 %v806_v26, %v244_v35  ;;  %v820_v38 = vadd.f32 %v806_v26, %v276_v36 }
  0xeb   :  { %637 = vpow2.f32 %v543_v34  ;;  %v246_v39 = vpop.f32.mrf.mxu0  ;;  %v278_v40 = vpop.f32.mrf.mxu1 }
  0xec   :  { %v536_v41 = vmul.f32 -1.442695, %v817_v37  ;;  %v544_v42 = vmul.f32 -1.442695, %v820_v38 }
  0xed   :  { %v249_v43 = vpop.f32.mrf.mxu0  ;;  %v281_v44 = vpop.f32.mrf.mxu1 }
  0xee   :  { %639 = vpow2.f32 %v536_v41  ;;  %v825_v45 = vadd.f32 %v806_v26, %v249_v43  ;;  %v828_v46 = vadd.f32 %v806_v26, %v281_v44 }
  0xef   :  { %641 = vpow2.f32 %v544_v42  ;;  %v251_v47 = vpop.f32.mrf.mxu0  ;;  %v283_v48 = vpop.f32.mrf.mxu1 }
  0xf0   :  { %v537_v49 = vmul.f32 -1.442695, %v825_v45  ;;  %v545_v50 = vmul.f32 -1.442695, %v828_v46 }
  0xf1   :  { %v252_v51 = vpop.f32.mrf.mxu0  ;;  %v284_v52 = vpop.f32.mrf.mxu1 }
  0xf2   :  { %643 = vpow2.f32 %v537_v49  ;;  %v833_v53 = vadd.f32 %v806_v26, %v252_v51  ;;  %v836_v54 = vadd.f32 %v806_v26, %v284_v52 }
  0xf3   :  { %645 = vpow2.f32 %v545_v50  ;;  %v254_v55 = vpop.f32.mrf.mxu0  ;;  %v286_v56 = vpop.f32.mrf.mxu1 }
  0xf4   :  { %v538_v57 = vmul.f32 -1.442695, %v833_v53  ;;  %v546_v58 = vmul.f32 -1.442695, %v836_v54 }
  0xf5   :  { %v257_v59 = vpop.f32.mrf.mxu0  ;;  %v289_v60 = vpop.f32.mrf.mxu1 }
  0xf6   :  { %647 = vpow2.f32 %v538_v57  ;;  %v841_v61 = vadd.f32 %v806_v26, %v257_v59  ;;  %v844_v62 = vadd.f32 %v806_v26, %v289_v60 }
  0xf7   :  { %v636_v63 = vpop.eup %635  ;;  %649 = vpow2.f32 %v546_v58  ;;  %v259_v0 = vpop.f32.mrf.mxu0 }
  0xf8   :  { %v291_v1 = vpop.f32.mrf.mxu1  ;;  %v638_v2 = vpop.eup %637  ;;  %v352_v3 = vadd.f32 1.0, %v636_v63  ;;  %v539_v4 = vmul.f32 -1.442695, %v841_v61  ;;  %v547_v6 = vmul.f32 -1.442695, %v844_v62 }
  0xf9   :  { %v360_v5 = vadd.f32 1.0, %v638_v2  ;;  %v260_v7 = vpop.f32.mrf.mxu0 }
  0xfa   :  { %v292_v8 = vpop.f32.mrf.mxu1  ;;  %651 = vrcp.f32 %v352_v3  ;;  %v849_v9 = vadd.f32 %v806_v26, %v260_v7 }
  0xfb   :  { %v852_v10 = vadd.f32 %v806_v26, %v292_v8  ;;  %v640_v11 = vpop.eup %639  ;;  %653 = vrcp.f32 %v360_v5  ;;  %v262_v12 = vpop.f32.mrf.mxu0 }
  0xfc   :  { %v294_v13 = vpop.f32.mrf.mxu1  ;;  %v642_v14 = vpop.eup %641  ;;  %v353_v15 = vadd.f32 1.0, %v640_v11  ;;  %655 = vpow2.f32 %v539_v4  ;;  %v540_v16 = vmul.f32 -1.442695, %v849_v9 }
  0xfd   :  { %v361_v17 = vadd.f32 1.0, %v642_v14  ;;  %657 = vpow2.f32 %v547_v6  ;;  %v548_v18 = vmul.f32 -1.442695, %v852_v10  ;;  %v265_v19 = vpop.f32.mrf.mxu0 }
  0xfe   :  { %v297_v20 = vpop.f32.mrf.mxu1  ;;  %659 = vrcp.f32 %v353_v15  ;;  %v857_v21 = vadd.f32 %v806_v26, %v265_v19 }
  0xff   :  { %v860_v22 = vadd.f32 %v806_v26, %v297_v20  ;;  %v644_v23 = vpop.eup %643  ;;  %661 = vrcp.f32 %v361_v17  ;;  %v267_v24 = vpop.f32.mrf.mxu0 }
 0x100   :  { %v299_v25 = vpop.f32.mrf.mxu1  ;;  %v646_v27 = vpop.eup %645  ;;  %v354_v28 = vadd.f32 1.0, %v644_v23  ;;  %663 = vpow2.f32 %v540_v16  ;;  %v541_v31 = vmul.f32 -1.442695, %v857_v21 }
 0x101   :  { %v362_v32 = vadd.f32 1.0, %v646_v27  ;;  %665 = vpow2.f32 %v548_v18  ;;  %v549_v33 = vmul.f32 -1.442695, %v860_v22  ;;  %v268_v34 = vpop.f32.mrf.mxu0 }
 0x102   :  { %v300_v35 = vpop.f32.mrf.mxu1  ;;  %667 = vrcp.f32 %v354_v28  ;;  %v865_v36 = vadd.f32 %v806_v26, %v268_v34 }
 0x103   :  { %v868_v39 = vadd.f32 %v806_v26, %v300_v35  ;;  %v648_v40 = vpop.eup %647  ;;  %669 = vrcp.f32 %v362_v32  ;;  %v270_v41 = vpop.f32.mrf.mxu0 }
 0x104   :  { %v302_v42 = vpop.f32.mrf.mxu1  ;;  %v650_v43 = vpop.eup %649  ;;  %v355_v44 = vadd.f32 1.0, %v648_v40  ;;  %671 = vpow2.f32 %v541_v31  ;;  %v542_v47 = vmul.f32 -1.442695, %v865_v36 }
 0x105   :  { %v363_v48 = vadd.f32 1.0, %v650_v43  ;;  %673 = vpow2.f32 %v549_v33  ;;  %v550_v49 = vmul.f32 -1.442695, %v868_v39 }
 0x106   :  { %675 = vrcp.f32 %v355_v44 }
 0x107   :  { %v652_v50 = vpop.eup %651  ;;  %677 = vrcp.f32 %v363_v48 }
 0x108   :  { %v654_v51 = vpop.eup %653  ;;  %v400_v26 = vmul.f32 %v652_v50, %v809_v29  ;;  %679 = vpow2.f32 %v542_v47 }
 0x109   :  { %v656_v52 = vpop.eup %655  ;;  %v408_v55 = vmul.f32 %v654_v51, %v812_v30  ;;  %681 = vpow2.f32 %v550_v49 }
 0x10a   :  { %v658_v56 = vpop.eup %657  ;;  %v567_v57 = vpack.c.bf16 %v400_v26, %v400_v26  ;;  %v356_v58 = vadd.f32 1.0, %v656_v52 }
 0x10b   :  { %v660_v59 = vpop.eup %659  ;;  %v575_v60 = vpack.c.bf16 %v408_v55, %v408_v55  ;;  %v364_v63 = vadd.f32 1.0, %v658_v56 }
 0x10c   :  { %v662_v0 = vpop.eup %661  ;;  %481 = vst.msk [vmem:[%s955_s3] sm:$0xf] %vm480_vm1, %v567_v57  ;;  %v401_v29 = vmul.f32 %v660_v59, %v817_v37  ;;  %683 = vrcp.f32 %v356_v58 }
 0x10d   :  { %v664_v1 = vpop.eup %663  ;;  %489 = vst.msk [vmem:[%s955_s3 + $0x20] sm:$0xf] %vm480_vm1, %v575_v60  ;;  %v409_v30 = vmul.f32 %v662_v0, %v820_v38  ;;  %685 = vrcp.f32 %v364_v63 }
 0x10e   :  { %v666_v2 = vpop.eup %665  ;;  %v568_v3 = vpack.c.bf16 %v401_v29, %v401_v29  ;;  %v357_v4 = vadd.f32 1.0, %v664_v1 }
 0x10f   :  { %v668_v5 = vpop.eup %667  ;;  %v576_v6 = vpack.c.bf16 %v409_v30, %v409_v30  ;;  %v365_v7 = vadd.f32 1.0, %v666_v2 }
 0x110   :  { %v670_v8 = vpop.eup %669  ;;  %482 = vst.msk [vmem:[%s955_s3 + $0x4] sm:$0xf] %vm480_vm1, %v568_v3  ;;  %v402_v37 = vmul.f32 %v668_v5, %v825_v45  ;;  %687 = vrcp.f32 %v357_v4 }
 0x111   :  { %v672_v11 = vpop.eup %671  ;;  %490 = vst.msk [vmem:[%s955_s3 + $0x24] sm:$0xf] %vm480_vm1, %v576_v6  ;;  %v410_v38 = vmul.f32 %v670_v8, %v828_v46  ;;  %689 = vrcp.f32 %v365_v7 }
 0x112   :  { %v674_v12 = vpop.eup %673  ;;  %v569_v13 = vpack.c.bf16 %v402_v37, %v402_v37  ;;  %v358_v14 = vadd.f32 1.0, %v672_v11 }
 0x113   :  { %v676_v15 = vpop.eup %675  ;;  %v577_v16 = vpack.c.bf16 %v410_v38, %v410_v38  ;;  %v366_v17 = vadd.f32 1.0, %v674_v12 }
 0x114   :  { %v678_v18 = vpop.eup %677  ;;  %483 = vst.msk [vmem:[%s955_s3 + $0x8] sm:$0xf] %vm480_vm1, %v569_v13  ;;  %v403_v45 = vmul.f32 %v676_v15, %v833_v53  ;;  %691 = vrcp.f32 %v358_v14 }
 0x115   :  { %v680_v19 = vpop.eup %679  ;;  %491 = vst.msk [vmem:[%s955_s3 + $0x28] sm:$0xf] %vm480_vm1, %v577_v16  ;;  %v411_v46 = vmul.f32 %v678_v18, %v836_v54  ;;  %693 = vrcp.f32 %v366_v17 }
 0x116   :  { %v682_v20 = vpop.eup %681  ;;  %v570_v23 = vpack.c.bf16 %v403_v45, %v403_v45  ;;  %v359_v24 = vadd.f32 1.0, %v680_v19 }
 0x117   :  { %v578_v25 = vpack.c.bf16 %v411_v46, %v411_v46  ;;  %v367_v27 = vadd.f32 1.0, %v682_v20 }
 0x118   :  { %484 = vst.msk [vmem:[%s955_s3 + $0xc] sm:$0xf] %vm480_vm1, %v570_v23  ;;  %695 = vrcp.f32 %v359_v24 }
 0x119   :  { %v684_v53 = vpop.eup %683  ;;  %492 = vst.msk [vmem:[%s955_s3 + $0x2c] sm:$0xf] %vm480_vm1, %v578_v25  ;;  %697 = vrcp.f32 %v367_v27 }
 0x11a   :  { %v686_v54 = vpop.eup %685  ;;  %v404_v28 = vmul.f32 %v684_v53, %v841_v61 }
 0x11b   :  { %v412_v31 = vmul.f32 %v686_v54, %v844_v62 }
 0x11c   :  { %v571_v32 = vpack.c.bf16 %v404_v28, %v404_v28 }
 0x11d   :  { %v688_v33 = vpop.eup %687  ;;  %v579_v34 = vpack.c.bf16 %v412_v31, %v412_v31 }
 0x11e   :  { %v690_v35 = vpop.eup %689  ;;  %485 = vst.msk [vmem:[%s955_s3 + $0x10] sm:$0xf] %vm480_vm1, %v571_v32  ;;  %v405_v40 = vmul.f32 %v688_v33, %v849_v9 }
 0x11f   :  { %493 = vst.msk [vmem:[%s955_s3 + $0x30] sm:$0xf] %vm480_vm1, %v579_v34  ;;  %v413_v61 = vmul.f32 %v690_v35, %v852_v10 }
 0x120   :  { %v572_v41 = vpack.c.bf16 %v405_v40, %v405_v40 }
 0x121   :  { %v692_v62 = vpop.eup %691  ;;  %v580_v42 = vpack.c.bf16 %v413_v61, %v413_v61 }
 0x122   :  { %v694_v43 = vpop.eup %693  ;;  %486 = vst.msk [vmem:[%s955_s3 + $0x14] sm:$0xf] %vm480_vm1, %v572_v41  ;;  %v406_v44 = vmul.f32 %v692_v62, %v857_v21 }
 0x123   :  { %494 = vst.msk [vmem:[%s955_s3 + $0x34] sm:$0xf] %vm480_vm1, %v580_v42  ;;  %v414_v9 = vmul.f32 %v694_v43, %v860_v22 }
 0x124   :  { %v573_v47 = vpack.c.bf16 %v406_v44, %v406_v44 }
 0x125   :  { %v696_v10 = vpop.eup %695  ;;  %v581_v48 = vpack.c.bf16 %v414_v9, %v414_v9 }
 0x126   :  { %v698_v49 = vpop.eup %697  ;;  %487 = vst.msk [vmem:[%s955_s3 + $0x18] sm:$0xf] %vm480_vm1, %v573_v47  ;;  %v407_v50 = vmul.f32 %v696_v10, %v865_v36 }
 0x127   :  { %495 = vst.msk [vmem:[%s955_s3 + $0x38] sm:$0xf] %vm480_vm1, %v581_v48  ;;  %v415_v21 = vmul.f32 %v698_v49, %v868_v39 }
 0x128   :  { %v574_v51 = vpack.c.bf16 %v407_v50, %v407_v50 }
 0x129   :  { %v582_v22 = vpack.c.bf16 %v415_v21, %v415_v21 }
 0x12a   :  { %488 = vst.msk [vmem:[%s955_s3 + $0x1c] sm:$0xf] %vm480_vm1, %v574_v51 }
 0x12b   :  { %496 = vst.msk [vmem:[%s955_s3 + $0x3c] sm:$0xf] %vm480_vm1, %v582_v22 }

// kernel: _lambda_.18
= control target key start
LH: loop header
LB: loop body
LE: loop exit
PB: predicated region body
PF: predicated region fallthrough
CT: control target
= control target key end

     0   :  { %vm94_vm0 = vcmask 261120   ;;  %vm392_vm1 = vcmask 257024   ;;  %s777_s1 = inlined_call_operand.vmem [shape: bf16[32,32], index: 1, kind: input, shape index: {}]   ;;  %s778_s0 = inlined_call_operand.vmem [shape: bf16[128,32], index: 0, kind: input, shape index: {}]   ;;  %s779_s2 = inlined_call_operand.vmem [shape: f32[1,32], index: 2, kind: input, shape index: {}]   ;;  %s780_s3 = inlined_call_operand.vmem [shape: bf16[128,32], index: 3, kind: output, shape index: {}]  }
   0x1   :  { %v514_v0 = vld [vmem:[%s777_s1 + $0x8] sm:$0xff]   ;;  %v515_v1 = vld [vmem:[%s777_s1] sm:$0xff]   ;;  %v520_v6 = vld [vmem:[%s778_s0 + $0x10] sm:$0xff]  }
   0x2   :  { %490 = vmatprep.subr.bf16.mxu0 %v514_v0  ;;  %510 = vmatprep.subr.bf16.mxu1 %v514_v0  ;;  %v516_v2 = vld [vmem:[%s778_s0] sm:$0xff]   ;;  %v518_v4 = vld [vmem:[%s778_s0 + $0x8] sm:$0xff]   ;;  %v521_v7 = vld [vmem:[%s778_s0 + $0x30] sm:$0xff]  }
   0x3   :  { %491 = vmatpush3.bf16.msra.mxu0 %v514_v0  ;;  %512 = vmatpush3.bf16.msra.mxu1 %v514_v0  ;;  %v517_v3 = vld [vmem:[%s778_s0 + $0x20] sm:$0xff]   ;;  %v519_v5 = vld [vmem:[%s778_s0 + $0x28] sm:$0xff]   ;;  %v522_v8 = vld [vmem:[%s778_s0 + $0x18] sm:$0xff]  }
   0x4   :  { %492 = vmatprep.subr.bf16.mxu0 %v515_v1  ;;  %511 = vmatprep.subr.bf16.mxu1 %v515_v1  ;;  %v523_v9 = vld [vmem:[%s778_s0 + $0x38] sm:$0xff]   ;;  %v413_v10 = vld [vmem:[%s779_s2] ss:$0 sm:$0xff] }
   0x5   :  { %494 = vmatprep.mubr.msk.bf16.mxu0 %vm94_vm0, %v516_v2  ;;  %502 = vmatprep.mubr.msk.bf16.mxu1 %vm94_vm0, %v517_v3 }
   0x7   :  { %493 = vmatpush3.bf16.msra.mxu0 %v515_v1  ;;  %513 = vmatpush3.bf16.msra.mxu1 %v515_v1 }
   0xa   :  { %495 = vmatmul.mubr.msk.bf16.vlgmr.msra.gmra.mxu0 %vm94_vm0, %v518_v4  ;;  %503 = vmatmul.mubr.msk.bf16.vlgmr.msra.gmra.mxu1 %vm94_vm0, %v519_v5 }
   0xb   :  { %498 = vmatprep.mubr.msk.bf16.mxu0 %vm94_vm0, %v520_v6  ;;  %506 = vmatprep.mubr.msk.bf16.mxu1 %vm94_vm0, %v521_v7 }
  0x12   :  { %499 = vmatmul.mubr.msk.bf16.gmra.mxu0 %vm94_vm0, %v522_v8  ;;  %507 = vmatmul.mubr.msk.bf16.gmra.mxu1 %vm94_vm0, %v523_v9 }
  0xca   :  { %v496_v11 = vpop.f32.mrf.mxu0  ;;  %v504_v12 = vpop.f32.mrf.mxu1 }
  0xcb   :  { %v649_v13 = vadd.f32 %v496_v11, %v413_v10  ;;  %v651_v14 = vadd.f32 %v504_v12, %v413_v10 }
  0xcc   :  { %v153_v15 = vpop.f32.mrf.mxu0  ;;  %v185_v16 = vpop.f32.mrf.mxu1 }
  0xcd   :  { %v434_v17 = vmul.f32 -1.442695, %v649_v13  ;;  %v442_v18 = vmul.f32 -1.442695, %v651_v14  ;;  %v655_v19 = vadd.f32 %v413_v10, %v153_v15  ;;  %v657_v20 = vadd.f32 %v413_v10, %v185_v16 }
  0xce   :  { %v497_v21 = vpop.f32.mrf.mxu0  ;;  %v505_v22 = vpop.f32.mrf.mxu1 }
  0xcf   :  { %524 = vpow2.f32 %v434_v17  ;;  %v432_v23 = vmul.f32 -1.442695, %v655_v19  ;;  %v440_v24 = vmul.f32 -1.442695, %v657_v20  ;;  %v661_v25 = vadd.f32 %v497_v21, %v413_v10 }
  0xd0   :  { %526 = vpow2.f32 %v442_v18  ;;  %v663_v26 = vadd.f32 %v505_v22, %v413_v10  ;;  %v156_v27 = vpop.f32.mrf.mxu0  ;;  %v188_v28 = vpop.f32.mrf.mxu1 }
  0xd1   :  { %528 = vpow2.f32 %v432_v23  ;;  %v435_v29 = vmul.f32 -1.442695, %v661_v25  ;;  %v666_v30 = vadd.f32 %v413_v10, %v156_v27  ;;  %v668_v31 = vadd.f32 %v413_v10, %v188_v28 }
  0xd2   :  { %530 = vpow2.f32 %v440_v24  ;;  %v443_v32 = vmul.f32 -1.442695, %v663_v26  ;;  %v500_v33 = vpop.f32.mrf.mxu0  ;;  %v508_v34 = vpop.f32.mrf.mxu1 }
  0xd3   :  { %532 = vpow2.f32 %v435_v29  ;;  %v433_v35 = vmul.f32 -1.442695, %v666_v30  ;;  %v441_v36 = vmul.f32 -1.442695, %v668_v31  ;;  %v673_v37 = vadd.f32 %v500_v33, %v413_v10 }
  0xd4   :  { %534 = vpow2.f32 %v443_v32  ;;  %v675_v38 = vadd.f32 %v508_v34, %v413_v10  ;;  %v169_v39 = vpop.f32.mrf.mxu0  ;;  %v201_v40 = vpop.f32.mrf.mxu1 }
  0xd5   :  { %536 = vpow2.f32 %v433_v35  ;;  %v438_v41 = vmul.f32 -1.442695, %v673_v37  ;;  %v678_v42 = vadd.f32 %v413_v10, %v169_v39  ;;  %v680_v43 = vadd.f32 %v413_v10, %v201_v40 }
  0xd6   :  { %538 = vpow2.f32 %v441_v36  ;;  %v446_v44 = vmul.f32 -1.442695, %v675_v38  ;;  %v501_v45 = vpop.f32.mrf.mxu0  ;;  %v509_v46 = vpop.f32.mrf.mxu1 }
  0xd7   :  { %540 = vpow2.f32 %v438_v41  ;;  %v436_v47 = vmul.f32 -1.442695, %v678_v42  ;;  %v444_v48 = vmul.f32 -1.442695, %v680_v43  ;;  %v685_v49 = vadd.f32 %v501_v45, %v413_v10 }
  0xd8   :  { %542 = vpow2.f32 %v446_v44  ;;  %v687_v50 = vadd.f32 %v509_v46, %v413_v10  ;;  %v172_v51 = vpop.f32.mrf.mxu0  ;;  %v204_v52 = vpop.f32.mrf.mxu1 }
  0xd9   :  { %544 = vpow2.f32 %v436_v47  ;;  %v439_v53 = vmul.f32 -1.442695, %v685_v49  ;;  %v690_v54 = vadd.f32 %v413_v10, %v172_v51  ;;  %v692_v55 = vadd.f32 %v413_v10, %v204_v52 }
  0xda   :  { %546 = vpow2.f32 %v444_v48  ;;  %v447_v56 = vmul.f32 -1.442695, %v687_v50 }
  0xdb   :  { %548 = vpow2.f32 %v439_v53  ;;  %v437_v57 = vmul.f32 -1.442695, %v690_v54  ;;  %v445_v58 = vmul.f32 -1.442695, %v692_v55 }
  0xdc   :  { %v525_v59 = vpop.eup %524  ;;  %550 = vpow2.f32 %v447_v56 }
  0xdd   :  { %v527_v60 = vpop.eup %526  ;;  %v266_v61 = vadd.f32 1.0, %v525_v59  ;;  %552 = vpow2.f32 %v437_v57 }
  0xde   :  { %v529_v62 = vpop.eup %528  ;;  %v274_v63 = vadd.f32 1.0, %v527_v60  ;;  %554 = vpow2.f32 %v445_v58 }
  0xdf   :  { %v531_v0 = vpop.eup %530  ;;  %556 = vrcp.f32 %v266_v61  ;;  %v264_v1 = vadd.f32 1.0, %v529_v62 }
  0xe0   :  { %v533_v2 = vpop.eup %532  ;;  %558 = vrcp.f32 %v274_v63  ;;  %v272_v3 = vadd.f32 1.0, %v531_v0 }
  0xe1   :  { %v535_v4 = vpop.eup %534  ;;  %560 = vrcp.f32 %v264_v1  ;;  %v267_v5 = vadd.f32 1.0, %v533_v2 }
  0xe2   :  { %v537_v6 = vpop.eup %536  ;;  %562 = vrcp.f32 %v272_v3  ;;  %v275_v7 = vadd.f32 1.0, %v535_v4 }
  0xe3   :  { %v539_v8 = vpop.eup %538  ;;  %564 = vrcp.f32 %v267_v5  ;;  %v265_v9 = vadd.f32 1.0, %v537_v6 }
  0xe4   :  { %v541_v10 = vpop.eup %540  ;;  %566 = vrcp.f32 %v275_v7  ;;  %v273_v11 = vadd.f32 1.0, %v539_v8 }
  0xe5   :  { %v543_v12 = vpop.eup %542  ;;  %568 = vrcp.f32 %v265_v9  ;;  %v270_v15 = vadd.f32 1.0, %v541_v10 }
  0xe6   :  { %v545_v16 = vpop.eup %544  ;;  %570 = vrcp.f32 %v273_v11  ;;  %v278_v17 = vadd.f32 1.0, %v543_v12 }
  0xe7   :  { %v547_v18 = vpop.eup %546  ;;  %572 = vrcp.f32 %v270_v15  ;;  %v268_v21 = vadd.f32 1.0, %v545_v16 }
  0xe8   :  { %v549_v22 = vpop.eup %548  ;;  %574 = vrcp.f32 %v278_v17  ;;  %v276_v23 = vadd.f32 1.0, %v547_v18 }
  0xe9   :  { %v551_v24 = vpop.eup %550  ;;  %576 = vrcp.f32 %v268_v21  ;;  %v271_v27 = vadd.f32 1.0, %v549_v22 }
  0xea   :  { %v553_v28 = vpop.eup %552  ;;  %578 = vrcp.f32 %v276_v23  ;;  %v279_v29 = vadd.f32 1.0, %v551_v24 }
  0xeb   :  { %v555_v32 = vpop.eup %554  ;;  %580 = vrcp.f32 %v271_v27  ;;  %v269_v33 = vadd.f32 1.0, %v553_v28 }
  0xec   :  { %v557_v34 = vpop.eup %556  ;;  %582 = vrcp.f32 %v279_v29  ;;  %v277_v35 = vadd.f32 1.0, %v555_v32 }
  0xed   :  { %v559_v36 = vpop.eup %558  ;;  %v314_v39 = vmul.f32 %v557_v34, %v649_v13  ;;  %584 = vrcp.f32 %v269_v33 }
  0xee   :  { %v561_v40 = vpop.eup %560  ;;  %v322_v41 = vmul.f32 %v559_v36, %v651_v14  ;;  %586 = vrcp.f32 %v277_v35 }
  0xef   :  { %v563_v44 = vpop.eup %562  ;;  %v466_v45 = vpack.c.bf16 %v314_v39, %v314_v39  ;;  %v312_v46 = vmul.f32 %v561_v40, %v655_v19 }
  0xf0   :  { %v565_v47 = vpop.eup %564  ;;  %v474_v48 = vpack.c.bf16 %v322_v41, %v322_v41  ;;  %v320_v51 = vmul.f32 %v563_v44, %v657_v20 }
  0xf1   :  { %v567_v52 = vpop.eup %566  ;;  %395 = vst.msk [vmem:[%s780_s3 + $0x8] sm:$0xf] %vm392_vm1, %v466_v45  ;;  %v464_v13 = vpack.c.bf16 %v312_v46, %v312_v46  ;;  %v315_v53 = vmul.f32 %v565_v47, %v661_v25 }
  0xf2   :  { %v569_v56 = vpop.eup %568  ;;  %403 = vst.msk [vmem:[%s780_s3 + $0x28] sm:$0xf] %vm392_vm1, %v474_v48  ;;  %v472_v14 = vpack.c.bf16 %v320_v51, %v320_v51  ;;  %v323_v19 = vmul.f32 %v567_v52, %v663_v26 }
  0xf3   :  { %v571_v57 = vpop.eup %570  ;;  %393 = vst.msk [vmem:[%s780_s3] sm:$0xf] %vm392_vm1, %v464_v13  ;;  %v467_v20 = vpack.c.bf16 %v315_v53, %v315_v53  ;;  %v313_v58 = vmul.f32 %v569_v56, %v666_v30 }
  0xf4   :  { %v573_v59 = vpop.eup %572  ;;  %401 = vst.msk [vmem:[%s780_s3 + $0x20] sm:$0xf] %vm392_vm1, %v472_v14  ;;  %v475_v25 = vpack.c.bf16 %v323_v19, %v323_v19  ;;  %v321_v60 = vmul.f32 %v571_v57, %v668_v31 }
  0xf5   :  { %v575_v61 = vpop.eup %574  ;;  %396 = vst.msk [vmem:[%s780_s3 + $0xc] sm:$0xf] %vm392_vm1, %v467_v20  ;;  %v465_v26 = vpack.c.bf16 %v313_v58, %v313_v58  ;;  %v318_v62 = vmul.f32 %v573_v59, %v673_v37 }
  0xf6   :  { %v577_v63 = vpop.eup %576  ;;  %404 = vst.msk [vmem:[%s780_s3 + $0x2c] sm:$0xf] %vm392_vm1, %v475_v25  ;;  %v473_v30 = vpack.c.bf16 %v321_v60, %v321_v60  ;;  %v326_v0 = vmul.f32 %v575_v61, %v675_v38 }
  0xf7   :  { %v579_v1 = vpop.eup %578  ;;  %394 = vst.msk [vmem:[%s780_s3 + $0x4] sm:$0xf] %vm392_vm1, %v465_v26  ;;  %v470_v31 = vpack.c.bf16 %v318_v62, %v318_v62  ;;  %v316_v2 = vmul.f32 %v577_v63, %v678_v42 }
  0xf8   :  { %v581_v3 = vpop.eup %580  ;;  %402 = vst.msk [vmem:[%s780_s3 + $0x24] sm:$0xf] %vm392_vm1, %v473_v30  ;;  %v478_v37 = vpack.c.bf16 %v326_v0, %v326_v0  ;;  %v324_v4 = vmul.f32 %v579_v1, %v680_v43 }
  0xf9   :  { %v583_v5 = vpop.eup %582  ;;  %399 = vst.msk [vmem:[%s780_s3 + $0x18] sm:$0xf] %vm392_vm1, %v470_v31  ;;  %v468_v38 = vpack.c.bf16 %v316_v2, %v316_v2  ;;  %v319_v6 = vmul.f32 %v581_v3, %v685_v49 }
  0xfa   :  { %v585_v7 = vpop.eup %584  ;;  %407 = vst.msk [vmem:[%s780_s3 + $0x38] sm:$0xf] %vm392_vm1, %v478_v37  ;;  %v476_v42 = vpack.c.bf16 %v324_v4, %v324_v4  ;;  %v327_v8 = vmul.f32 %v583_v5, %v687_v50 }
  0xfb   :  { %v587_v9 = vpop.eup %586  ;;  %397 = vst.msk [vmem:[%s780_s3 + $0x10] sm:$0xf] %vm392_vm1, %v468_v38  ;;  %v471_v43 = vpack.c.bf16 %v319_v6, %v319_v6  ;;  %v317_v10 = vmul.f32 %v585_v7, %v690_v54 }
  0xfc   :  { %405 = vst.msk [vmem:[%s780_s3 + $0x30] sm:$0xf] %vm392_vm1, %v476_v42  ;;  %v479_v49 = vpack.c.bf16 %v327_v8, %v327_v8  ;;  %v325_v11 = vmul.f32 %v587_v9, %v692_v55 }
  0xfd   :  { %400 = vst.msk [vmem:[%s780_s3 + $0x1c] sm:$0xf] %vm392_vm1, %v471_v43  ;;  %v469_v50 = vpack.c.bf16 %v317_v10, %v317_v10 }
  0xfe   :  { %408 = vst.msk [vmem:[%s780_s3 + $0x3c] sm:$0xf] %vm392_vm1, %v479_v49  ;;  %v477_v54 = vpack.c.bf16 %v325_v11, %v325_v11 }
  0xff   :  { %398 = vst.msk [vmem:[%s780_s3 + $0x14] sm:$0xf] %vm392_vm1, %v469_v50 }
 0x100   :  { %406 = vst.msk [vmem:[%s780_s3 + $0x34] sm:$0xf] %vm392_vm1, %v477_v54 }

// kernel: _lambda_.19
= control target key start
LH: loop header
LB: loop body
LE: loop exit
PB: predicated region body
PF: predicated region fallthrough
CT: control target
= control target key end

     0   :  { %v699_v0 = vmov 0   ;;  %vm182_vm0 = vcmask 130048   ;;  %vm480_vm1 = vcmask 125952   ;;  %s952_s1 = inlined_call_operand.vmem [shape: bf16[144,16], index: 1, kind: input, shape index: {}]   ;;  %s953_s0 = inlined_call_operand.vmem [shape: bf16[128,144], index: 0, kind: input, shape index: {}]   ;;  %s954_s2 = inlined_call_operand.vmem [shape: f32[1,16], index: 2, kind: input, shape index: {}]   ;;  %s955_s3 = inlined_call_operand.vmem [shape: bf16[128,16], index: 3, kind: output, shape index: {}]  }
   0x1   :  { %207 = vmatprep.subr.bf16.mxu0 %v699_v0  ;;  %583 = vmatprep.subr.bf16.mxu1 %v699_v0  ;;  %v602_v1 = vld [vmem:[%s952_s1 + $0x38] sm:$0xff]   ;;  %v603_v2 = vld [vmem:[%s952_s1 + $0x30] sm:$0xff]   ;;  %v604_v3 = vld [vmem:[%s952_s1 + $0x28] sm:$0xff]  }
   0x2   :  { %208 = vmatpush1.bf16.msra.mxu0 %v602_v1  ;;  %592 = vmatpush1.bf16.msra.mxu1 %v602_v1  ;;  %v605_v4 = vld [vmem:[%s952_s1 + $0x20] sm:$0xff]   ;;  %v606_v7 = vld [vmem:[%s952_s1 + $0x18] sm:$0xff]   ;;  %v607_v8 = vld [vmem:[%s952_s1 + $0x10] sm:$0xff]  }
   0x3   :  { %209 = vmatprep.subr.bf16.mxu0 %v699_v0  ;;  %584 = vmatprep.subr.bf16.mxu1 %v699_v0  ;;  %v613_v5 = vld [vmem:[%s953_s0 + $0x4] ss:$8 sps:$4 sm:$0xff]   ;;  %v611_v12 = vld [vmem:[%s953_s0] ss:$8 sps:$4 sm:$0xff]   ;;  %v617_v14 = vld [vmem:[%s953_s0 + $0x14] ss:$8 sps:$4 sm:$0xff]  }
   0x4   :  { %v616_v6 = vld [vmem:[%s953_s0 + $0x44] ss:$8 sps:$4 sm:$0xff]   ;;  %527 = vmatprep.mubr.msk.bf16.mxu0 %vm182_vm0, %v613_v5  ;;  %v614_v13 = vld [vmem:[%s953_s0 + $0x40] ss:$8 sps:$4 sm:$0xff]   ;;  %v619_v15 = vld [vmem:[%s953_s0 + $0x54] ss:$8 sps:$4 sm:$0xff]  }
   0x5   :  { %531 = vmatprep.mubr.msk.bf16.mxu1 %vm182_vm0, %v616_v6  ;;  %v608_v9 = vld [vmem:[%s952_s1 + $0x8] sm:$0xff]   ;;  %v609_v10 = vld [vmem:[%s952_s1] sm:$0xff]   ;;  %v621_v16 = vld [vmem:[%s953_s0 + $0x10] ss:$8 sps:$4 sm:$0xff]  }
   0x6   :  { %210 = vmatpush1.bf16.msra.mxu0 %v603_v2  ;;  %593 = vmatpush1.bf16.msra.mxu1 %v603_v2  ;;  %v610_v11 = vld [vmem:[%s952_s1 + $0x40] sm:$0xff]   ;;  %v622_v17 = vld [vmem:[%s953_s0 + $0x50] ss:$8 sps:$4 sm:$0xff]   ;;  %v629_v22 = vld [vmem:[%s953_s0 + $0x34] ss:$8 sps:$4 sm:$0xff]  }
   0x7   :  { %211 = vmatprep.subr.bf16.mxu0 %v699_v0  ;;  %585 = vmatprep.subr.bf16.mxu1 %v699_v0  ;;  %v623_v18 = vld [vmem:[%s953_s0 + $0x24] ss:$8 sps:$4 sm:$0xff]   ;;  %v627_v20 = vld [vmem:[%s953_s0 + $0x20] ss:$8 sps:$4 sm:$0xff]   ;;  %v631_v23 = vld [vmem:[%s953_s0 + $0x74] ss:$8 sps:$4 sm:$0xff]  }
   0x8   :  { %v625_v19 = vld [vmem:[%s953_s0 + $0x64] ss:$8 sps:$4 sm:$0xff]   ;;  %v628_v21 = vld [vmem:[%s953_s0 + $0x60] ss:$8 sps:$4 sm:$0xff]   ;;  %v633_v24 = vld [vmem:[%s953_s0 + $0x30] ss:$8 sps:$4 sm:$0xff]  }
   0x9   :  { %v634_v25 = vld [vmem:[%s953_s0 + $0x70] ss:$8 sps:$4 sm:$0xff]   ;;  %v806_v26 = vld [vmem:[%s954_s2] ss:$0 sm:$0xff] }
   0xa   :  { %212 = vmatpush1.bf16.msra.mxu0 %v604_v3  ;;  %594 = vmatpush1.bf16.msra.mxu1 %v604_v3 }
   0xb   :  { %213 = vmatprep.subr.bf16.mxu0 %v699_v0  ;;  %586 = vmatprep.subr.bf16.mxu1 %v699_v0 }
   0xe   :  { %214 = vmatpush1.bf16.msra.mxu0 %v605_v4  ;;  %595 = vmatpush1.bf16.msra.mxu1 %v605_v4 }
   0xf   :  { %215 = vmatprep.subr.bf16.mxu0 %v699_v0  ;;  %587 = vmatprep.subr.bf16.mxu1 %v699_v0 }
  0x12   :  { %216 = vmatpush1.bf16.msra.mxu0 %v606_v7  ;;  %596 = vmatpush1.bf16.msra.mxu1 %v606_v7 }
  0x13   :  { %217 = vmatprep.subr.bf16.mxu0 %v699_v0  ;;  %588 = vmatprep.subr.bf16.mxu1 %v699_v0 }
  0x16   :  { %218 = vmatpush1.bf16.msra.mxu0 %v607_v8  ;;  %597 = vmatpush1.bf16.msra.mxu1 %v607_v8 }
  0x17   :  { %219 = vmatprep.subr.bf16.mxu0 %v699_v0  ;;  %589 = vmatprep.subr.bf16.mxu1 %v699_v0 }
  0x1a   :  { %220 = vmatpush1.bf16.msra.mxu0 %v608_v9  ;;  %598 = vmatpush1.bf16.msra.mxu1 %v608_v9 }
  0x1b   :  { %221 = vmatprep.subr.bf16.mxu0 %v699_v0  ;;  %590 = vmatprep.subr.bf16.mxu1 %v699_v0 }
  0x1e   :  { %222 = vmatpush1.bf16.msra.mxu0 %v609_v10  ;;  %599 = vmatpush1.bf16.msra.mxu1 %v609_v10 }
  0x1f   :  { %237 = vmatprep.subr.bf16.mxu0 %v699_v0  ;;  %591 = vmatprep.subr.bf16.mxu1 %v699_v0 }
  0x22   :  { %238 = vmatpush2.bf16.msra.mxu0 %v610_v11  ;;  %600 = vmatpush2.bf16.msra.mxu1 %v610_v11 }
  0x25   :  { %240 = vmatmul.mubr.bf16.vlgmr.msra.gmra.mxu0 %v611_v12  ;;  %272 = vmatmul.mubr.bf16.vlgmr.msra.gmra.mxu1 %v614_v13 }
  0x26   :  { %528 = vmatprep.mubr.msk.bf16.mxu0 %vm182_vm0, %v617_v14  ;;  %532 = vmatprep.mubr.msk.bf16.mxu1 %vm182_vm0, %v619_v15 }
  0x2d   :  { %248 = vmatmul.mubr.bf16.gmra.mxu0 %v621_v16  ;;  %280 = vmatmul.mubr.bf16.gmra.mxu1 %v622_v17 }
  0x2e   :  { %529 = vmatprep.mubr.msk.bf16.mxu0 %vm182_vm0, %v623_v18  ;;  %533 = vmatprep.mubr.msk.bf16.mxu1 %vm182_vm0, %v625_v19 }
  0x35   :  { %256 = vmatmul.mubr.bf16.gmra.mxu0 %v627_v20  ;;  %288 = vmatmul.mubr.bf16.gmra.mxu1 %v628_v21 }
  0x36   :  { %530 = vmatprep.mubr.msk.bf16.mxu0 %vm182_vm0, %v629_v22  ;;  %534 = vmatprep.mubr.msk.bf16.mxu1 %vm182_vm0, %v631_v23 }
  0x3d   :  { %264 = vmatmul.mubr.bf16.gmra.mxu0 %v633_v24  ;;  %296 = vmatmul.mubr.bf16.gmra.mxu1 %v634_v25 }
  0xe5   :  { %v241_v27 = vpop.f32.mrf.mxu0  ;;  %v273_v28 = vpop.f32.mrf.mxu1 }
  0xe6   :  { %v809_v29 = vadd.f32 %v806_v26, %v241_v27  ;;  %v812_v30 = vadd.f32 %v806_v26, %v273_v28 }
  0xe7   :  { %v243_v31 = vpop.f32.mrf.mxu0  ;;  %v275_v32 = vpop.f32.mrf.mxu1 }
  0xe8   :  { %v535_v33 = vmul.f32 -1.442695, %v809_v29  ;;  %v543_v34 = vmul.f32 -1.442695, %v812_v30 }
  0xe9   :  { %v244_v35 = vpop.f32.mrf.mxu0  ;;  %v276_v36 = vpop.f32.mrf.mxu1 }
  0xea   :  { %635 = vpow2.f32 %v535_v33  ;;  %v817_v37 = vadd.f32 %v806_v26, %v244_v35  ;;  %v820_v38 = vadd.f32 %v806_v26, %v276_v36 }
  0xeb   :  { %637 = vpow2.f32 %v543_v34  ;;  %v246_v39 = vpop.f32.mrf.mxu0  ;;  %v278_v40 = vpop.f32.mrf.mxu1 }
  0xec   :  { %v536_v41 = vmul.f32 -1.442695, %v817_v37  ;;  %v544_v42 = vmul.f32 -1.442695, %v820_v38 }
  0xed   :  { %v249_v43 = vpop.f32.mrf.mxu0  ;;  %v281_v44 = vpop.f32.mrf.mxu1 }
  0xee   :  { %639 = vpow2.f32 %v536_v41  ;;  %v825_v45 = vadd.f32 %v806_v26, %v249_v43  ;;  %v828_v46 = vadd.f32 %v806_v26, %v281_v44 }
  0xef   :  { %641 = vpow2.f32 %v544_v42  ;;  %v251_v47 = vpop.f32.mrf.mxu0  ;;  %v283_v48 = vpop.f32.mrf.mxu1 }
  0xf0   :  { %v537_v49 = vmul.f32 -1.442695, %v825_v45  ;;  %v545_v50 = vmul.f32 -1.442695, %v828_v46 }
  0xf1   :  { %v252_v51 = vpop.f32.mrf.mxu0  ;;  %v284_v52 = vpop.f32.mrf.mxu1 }
  0xf2   :  { %643 = vpow2.f32 %v537_v49  ;;  %v833_v53 = vadd.f32 %v806_v26, %v252_v51  ;;  %v836_v54 = vadd.f32 %v806_v26, %v284_v52 }
  0xf3   :  { %645 = vpow2.f32 %v545_v50  ;;  %v254_v55 = vpop.f32.mrf.mxu0  ;;  %v286_v56 = vpop.f32.mrf.mxu1 }
  0xf4   :  { %v538_v57 = vmul.f32 -1.442695, %v833_v53  ;;  %v546_v58 = vmul.f32 -1.442695, %v836_v54 }
  0xf5   :  { %v257_v59 = vpop.f32.mrf.mxu0  ;;  %v289_v60 = vpop.f32.mrf.mxu1 }
  0xf6   :  { %647 = vpow2.f32 %v538_v57  ;;  %v841_v61 = vadd.f32 %v806_v26, %v257_v59  ;;  %v844_v62 = vadd.f32 %v806_v26, %v289_v60 }
  0xf7   :  { %v636_v63 = vpop.eup %635  ;;  %649 = vpow2.f32 %v546_v58  ;;  %v259_v0 = vpop.f32.mrf.mxu0 }
  0xf8   :  { %v291_v1 = vpop.f32.mrf.mxu1  ;;  %v638_v2 = vpop.eup %637  ;;  %v352_v3 = vadd.f32 1.0, %v636_v63  ;;  %v539_v4 = vmul.f32 -1.442695, %v841_v61  ;;  %v547_v6 = vmul.f32 -1.442695, %v844_v62 }
  0xf9   :  { %v360_v5 = vadd.f32 1.0, %v638_v2  ;;  %v260_v7 = vpop.f32.mrf.mxu0 }
  0xfa   :  { %v292_v8 = vpop.f32.mrf.mxu1  ;;  %651 = vrcp.f32 %v352_v3  ;;  %v849_v9 = vadd.f32 %v806_v26, %v260_v7 }
  0xfb   :  { %v852_v10 = vadd.f32 %v806_v26, %v292_v8  ;;  %v640_v11 = vpop.eup %639  ;;  %653 = vrcp.f32 %v360_v5  ;;  %v262_v12 = vpop.f32.mrf.mxu0 }
  0xfc   :  { %v294_v13 = vpop.f32.mrf.mxu1  ;;  %v642_v14 = vpop.eup %641  ;;  %v353_v15 = vadd.f32 1.0, %v640_v11  ;;  %655 = vpow2.f32 %v539_v4  ;;  %v540_v16 = vmul.f32 -1.442695, %v849_v9 }
  0xfd   :  { %v361_v17 = vadd.f32 1.0, %v642_v14  ;;  %657 = vpow2.f32 %v547_v6  ;;  %v548_v18 = vmul.f32 -1.442695, %v852_v10  ;;  %v265_v19 = vpop.f32.mrf.mxu0 }
  0xfe   :  { %v297_v20 = vpop.f32.mrf.mxu1  ;;  %659 = vrcp.f32 %v353_v15  ;;  %v857_v21 = vadd.f32 %v806_v26, %v265_v19 }
  0xff   :  { %v860_v22 = vadd.f32 %v806_v26, %v297_v20  ;;  %v644_v23 = vpop.eup %643  ;;  %661 = vrcp.f32 %v361_v17  ;;  %v267_v24 = vpop.f32.mrf.mxu0 }
 0x100   :  { %v299_v25 = vpop.f32.mrf.mxu1  ;;  %v646_v27 = vpop.eup %645  ;;  %v354_v28 = vadd.f32 1.0, %v644_v23  ;;  %663 = vpow2.f32 %v540_v16  ;;  %v541_v31 = vmul.f32 -1.442695, %v857_v21 }
 0x101   :  { %v362_v32 = vadd.f32 1.0, %v646_v27  ;;  %665 = vpow2.f32 %v548_v18  ;;  %v549_v33 = vmul.f32 -1.442695, %v860_v22  ;;  %v268_v34 = vpop.f32.mrf.mxu0 }
 0x102   :  { %v300_v35 = vpop.f32.mrf.mxu1  ;;  %667 = vrcp.f32 %v354_v28  ;;  %v865_v36 = vadd.f32 %v806_v26, %v268_v34 }
 0x103   :  { %v868_v39 = vadd.f32 %v806_v26, %v300_v35  ;;  %v648_v40 = vpop.eup %647  ;;  %669 = vrcp.f32 %v362_v32  ;;  %v270_v41 = vpop.f32.mrf.mxu0 }
 0x104   :  { %v302_v42 = vpop.f32.mrf.mxu1  ;;  %v650_v43 = vpop.eup %649  ;;  %v355_v44 = vadd.f32 1.0, %v648_v40  ;;  %671 = vpow2.f32 %v541_v31  ;;  %v542_v47 = vmul.f32 -1.442695, %v865_v36 }
 0x105   :  { %v363_v48 = vadd.f32 1.0, %v650_v43  ;;  %673 = vpow2.f32 %v549_v33  ;;  %v550_v49 = vmul.f32 -1.442695, %v868_v39 }
 0x106   :  { %675 = vrcp.f32 %v355_v44 }
 0x107   :  { %v652_v50 = vpop.eup %651  ;;  %677 = vrcp.f32 %v363_v48 }
 0x108   :  { %v654_v51 = vpop.eup %653  ;;  %v400_v26 = vmul.f32 %v652_v50, %v809_v29  ;;  %679 = vpow2.f32 %v542_v47 }
 0x109   :  { %v656_v52 = vpop.eup %655  ;;  %v408_v55 = vmul.f32 %v654_v51, %v812_v30  ;;  %681 = vpow2.f32 %v550_v49 }
 0x10a   :  { %v658_v56 = vpop.eup %657  ;;  %v567_v57 = vpack.c.bf16 %v400_v26, %v400_v26  ;;  %v356_v58 = vadd.f32 1.0, %v656_v52 }
 0x10b   :  { %v660_v59 = vpop.eup %659  ;;  %v575_v60 = vpack.c.bf16 %v408_v55, %v408_v55  ;;  %v364_v63 = vadd.f32 1.0, %v658_v56 }
 0x10c   :  { %v662_v0 = vpop.eup %661  ;;  %481 = vst.msk [vmem:[%s955_s3] sm:$0xf] %vm480_vm1, %v567_v57  ;;  %v401_v29 = vmul.f32 %v660_v59, %v817_v37  ;;  %683 = vrcp.f32 %v356_v58 }
 0x10d   :  { %v664_v1 = vpop.eup %663  ;;  %489 = vst.msk [vmem:[%s955_s3 + $0x20] sm:$0xf] %vm480_vm1, %v575_v60  ;;  %v409_v30 = vmul.f32 %v662_v0, %v820_v38  ;;  %685 = vrcp.f32 %v364_v63 }
 0x10e   :  { %v666_v2 = vpop.eup %665  ;;  %v568_v3 = vpack.c.bf16 %v401_v29, %v401_v29  ;;  %v357_v4 = vadd.f32 1.0, %v664_v1 }
 0x10f   :  { %v668_v5 = vpop.eup %667  ;;  %v576_v6 = vpack.c.bf16 %v409_v30, %v409_v30  ;;  %v365_v7 = vadd.f32 1.0, %v666_v2 }
 0x110   :  { %v670_v8 = vpop.eup %669  ;;  %482 = vst.msk [vmem:[%s955_s3 + $0x4] sm:$0xf] %vm480_vm1, %v568_v3  ;;  %v402_v37 = vmul.f32 %v668_v5, %v825_v45  ;;  %687 = vrcp.f32 %v357_v4 }
 0x111   :  { %v672_v11 = vpop.eup %671  ;;  %490 = vst.msk [vmem:[%s955_s3 + $0x24] sm:$0xf] %vm480_vm1, %v576_v6  ;;  %v410_v38 = vmul.f32 %v670_v8, %v828_v46  ;;  %689 = vrcp.f32 %v365_v7 }
 0x112   :  { %v674_v12 = vpop.eup %673  ;;  %v569_v13 = vpack.c.bf16 %v402_v37, %v402_v37  ;;  %v358_v14 = vadd.f32 1.0, %v672_v11 }
 0x113   :  { %v676_v15 = vpop.eup %675  ;;  %v577_v16 = vpack.c.bf16 %v410_v38, %v410_v38  ;;  %v366_v17 = vadd.f32 1.0, %v674_v12 }
 0x114   :  { %v678_v18 = vpop.eup %677  ;;  %483 = vst.msk [vmem:[%s955_s3 + $0x8] sm:$0xf] %vm480_vm1, %v569_v13  ;;  %v403_v45 = vmul.f32 %v676_v15, %v833_v53  ;;  %691 = vrcp.f32 %v358_v14 }
 0x115   :  { %v680_v19 = vpop.eup %679  ;;  %491 = vst.msk [vmem:[%s955_s3 + $0x28] sm:$0xf] %vm480_vm1, %v577_v16  ;;  %v411_v46 = vmul.f32 %v678_v18, %v836_v54  ;;  %693 = vrcp.f32 %v366_v17 }
 0x116   :  { %v682_v20 = vpop.eup %681  ;;  %v570_v23 = vpack.c.bf16 %v403_v45, %v403_v45  ;;  %v359_v24 = vadd.f32 1.0, %v680_v19 }
 0x117   :  { %v578_v25 = vpack.c.bf16 %v411_v46, %v411_v46  ;;  %v367_v27 = vadd.f32 1.0, %v682_v20 }
 0x118   :  { %484 = vst.msk [vmem:[%s955_s3 + $0xc] sm:$0xf] %vm480_vm1, %v570_v23  ;;  %695 = vrcp.f32 %v359_v24 }
 0x119   :  { %v684_v53 = vpop.eup %683  ;;  %492 = vst.msk [vmem:[%s955_s3 + $0x2c] sm:$0xf] %vm480_vm1, %v578_v25  ;;  %697 = vrcp.f32 %v367_v27 }
 0x11a   :  { %v686_v54 = vpop.eup %685  ;;  %v404_v28 = vmul.f32 %v684_v53, %v841_v61 }
 0x11b   :  { %v412_v31 = vmul.f32 %v686_v54, %v844_v62 }
 0x11c   :  { %v571_v32 = vpack.c.bf16 %v404_v28, %v404_v28 }
 0x11d   :  { %v688_v33 = vpop.eup %687  ;;  %v579_v34 = vpack.c.bf16 %v412_v31, %v412_v31 }
 0x11e   :  { %v690_v35 = vpop.eup %689  ;;  %485 = vst.msk [vmem:[%s955_s3 + $0x10] sm:$0xf] %vm480_vm1, %v571_v32  ;;  %v405_v40 = vmul.f32 %v688_v33, %v849_v9 }
 0x11f   :  { %493 = vst.msk [vmem:[%s955_s3 + $0x30] sm:$0xf] %vm480_vm1, %v579_v34  ;;  %v413_v61 = vmul.f32 %v690_v35, %v852_v10 }
 0x120   :  { %v572_v41 = vpack.c.bf16 %v405_v40, %v405_v40 }
 0x121   :  { %v692_v62 = vpop.eup %691  ;;  %v580_v42 = vpack.c.bf16 %v413_v61, %v413_v61 }
 0x122   :  { %v694_v43 = vpop.eup %693  ;;  %486 = vst.msk [vmem:[%s955_s3 + $0x14] sm:$0xf] %vm480_vm1, %v572_v41  ;;  %v406_v44 = vmul.f32 %v692_v62, %v857_v21 }
 0x123   :  { %494 = vst.msk [vmem:[%s955_s3 + $0x34] sm:$0xf] %vm480_vm1, %v580_v42  ;;  %v414_v9 = vmul.f32 %v694_v43, %v860_v22 }
 0x124   :  { %v573_v47 = vpack.c.bf16 %v406_v44, %v406_v44 }
 0x125   :  { %v696_v10 = vpop.eup %695  ;;  %v581_v48 = vpack.c.bf16 %v414_v9, %v414_v9 }
 0x126   :  { %v698_v49 = vpop.eup %697  ;;  %487 = vst.msk [vmem:[%s955_s3 + $0x18] sm:$0xf] %vm480_vm1, %v573_v47  ;;  %v407_v50 = vmul.f32 %v696_v10, %v865_v36 }
 0x127   :  { %495 = vst.msk [vmem:[%s955_s3 + $0x38] sm:$0xf] %vm480_vm1, %v581_v48  ;;  %v415_v21 = vmul.f32 %v698_v49, %v868_v39 }
 0x128   :  { %v574_v51 = vpack.c.bf16 %v407_v50, %v407_v50 }
 0x129   :  { %v582_v22 = vpack.c.bf16 %v415_v21, %v415_v21 }
 0x12a   :  { %488 = vst.msk [vmem:[%s955_s3 + $0x1c] sm:$0xf] %vm480_vm1, %v574_v51 }
 0x12b   :  { %496 = vst.msk [vmem:[%s955_s3 + $0x3c] sm:$0xf] %vm480_vm1, %v582_v22 }

// kernel: _lambda_.21
= control target key start
LH: loop header
LB: loop body
LE: loop exit
PB: predicated region body
PF: predicated region fallthrough
CT: control target
= control target key end

     0   :  { %vm102_vm0 = vcmask 392192   ;;  %vm400_vm1 = vcmask 257024   ;;  %s795_s1 = inlined_call_operand.vmem [shape: bf16[48,32], index: 1, kind: input, shape index: {}]   ;;  %s796_s0 = inlined_call_operand.vmem [shape: bf16[128,48], index: 0, kind: input, shape index: {}]   ;;  %s797_s2 = inlined_call_operand.vmem [shape: f32[1,32], index: 2, kind: input, shape index: {}]   ;;  %s798_s3 = inlined_call_operand.vmem [shape: bf16[128,32], index: 3, kind: output, shape index: {}]  }
   0x1   :  { %v528_v0 = vld [vmem:[%s795_s1 + $0x10] sm:$0xff]   ;;  %v529_v1 = vld [vmem:[%s795_s1 + $0x8] sm:$0xff]   ;;  %v530_v2 = vld [vmem:[%s795_s1] sm:$0xff]  }
   0x2   :  { %500 = vmatprep.subr.bf16.mxu0 %v528_v0  ;;  %522 = vmatprep.subr.bf16.mxu1 %v528_v0  ;;  %v531_v3 = vld [vmem:[%s796_s0] sm:$0xff]   ;;  %v533_v5 = vld [vmem:[%s796_s0 + $0x8] sm:$0xff]   ;;  %v535_v7 = vld [vmem:[%s796_s0 + $0x10] sm:$0xff]  }
   0x3   :  { %501 = vmatpush3.bf16.msra.mxu0 %v528_v0  ;;  %525 = vmatpush3.bf16.msra.mxu1 %v528_v0  ;;  %v532_v4 = vld [vmem:[%s796_s0 + $0x20] sm:$0xff]   ;;  %v534_v6 = vld [vmem:[%s796_s0 + $0x28] sm:$0xff]   ;;  %v536_v8 = vld [vmem:[%s796_s0 + $0x30] sm:$0xff]  }
   0x4   :  { %502 = vmatprep.subr.bf16.mxu0 %v529_v1  ;;  %523 = vmatprep.subr.bf16.mxu1 %v529_v1  ;;  %v537_v9 = vld [vmem:[%s796_s0 + $0x18] sm:$0xff]   ;;  %v421_v11 = vld [vmem:[%s797_s2] ss:$0 sm:$0xff] }
   0x5   :  { %506 = vmatprep.mubr.msk.bf16.mxu0 %vm102_vm0, %v531_v3  ;;  %514 = vmatprep.mubr.msk.bf16.mxu1 %vm102_vm0, %v532_v4  ;;  %v538_v10 = vld [vmem:[%s796_s0 + $0x38] sm:$0xff]  }
   0x7   :  { %503 = vmatpush3.bf16.msra.mxu0 %v529_v1  ;;  %526 = vmatpush3.bf16.msra.mxu1 %v529_v1 }
   0x8   :  { %504 = vmatprep.subr.bf16.mxu0 %v530_v2  ;;  %524 = vmatprep.subr.bf16.mxu1 %v530_v2 }
   0xb   :  { %505 = vmatpush3.bf16.msra.mxu0 %v530_v2  ;;  %527 = vmatpush3.bf16.msra.mxu1 %v530_v2 }
   0xe   :  { %507 = vmatmul.mubr.msk.bf16.vlgmr.msra.gmra.mxu0 %vm102_vm0, %v533_v5  ;;  %515 = vmatmul.mubr.msk.bf16.vlgmr.msra.gmra.mxu1 %vm102_vm0, %v534_v6 }
   0xf   :  { %510 = vmatprep.mubr.msk.bf16.mxu0 %vm102_vm0, %v535_v7  ;;  %518 = vmatprep.mubr.msk.bf16.mxu1 %vm102_vm0, %v536_v8 }
  0x16   :  { %511 = vmatmul.mubr.msk.bf16.gmra.mxu0 %vm102_vm0, %v537_v9  ;;  %519 = vmatmul.mubr.msk.bf16.gmra.mxu1 %vm102_vm0, %v538_v10 }
  0xce   :  { %v508_v12 = vpop.f32.mrf.mxu0  ;;  %v516_v13 = vpop.f32.mrf.mxu1 }
  0xcf   :  { %v667_v14 = vadd.f32 %v508_v12, %v421_v11  ;;  %v669_v15 = vadd.f32 %v516_v13, %v421_v11 }
  0xd0   :  { %v161_v16 = vpop.f32.mrf.mxu0  ;;  %v193_v17 = vpop.f32.mrf.mxu1 }
  0xd1   :  { %v443_v18 = vmul.f32 -1.442695, %v667_v14  ;;  %v451_v19 = vmul.f32 -1.442695, %v669_v15  ;;  %v673_v20 = vadd.f32 %v421_v11, %v161_v16  ;;  %v675_v21 = vadd.f32 %v421_v11, %v193_v17 }
  0xd2   :  { %v509_v22 = vpop.f32.mrf.mxu0  ;;  %v517_v23 = vpop.f32.mrf.mxu1 }
  0xd3   :  { %539 = vpow2.f32 %v443_v18  ;;  %v441_v24 = vmul.f32 -1.442695, %v673_v20  ;;  %v449_v25 = vmul.f32 -1.442695, %v675_v21  ;;  %v679_v26 = vadd.f32 %v509_v22, %v421_v11 }
  0xd4   :  { %541 = vpow2.f32 %v451_v19  ;;  %v681_v27 = vadd.f32 %v517_v23, %v421_v11  ;;  %v164_v28 = vpop.f32.mrf.mxu0  ;;  %v196_v29 = vpop.f32.mrf.mxu1 }
  0xd5   :  { %543 = vpow2.f32 %v441_v24  ;;  %v444_v30 = vmul.f32 -1.442695, %v679_v26  ;;  %v684_v31 = vadd.f32 %v421_v11, %v164_v28  ;;  %v686_v32 = vadd.f32 %v421_v11, %v196_v29 }
  0xd6   :  { %545 = vpow2.f32 %v449_v25  ;;  %v452_v33 = vmul.f32 -1.442695, %v681_v27  ;;  %v512_v34 = vpop.f32.mrf.mxu0  ;;  %v520_v35 = vpop.f32.mrf.mxu1 }
  0xd7   :  { %547 = vpow2.f32 %v444_v30  ;;  %v442_v36 = vmul.f32 -1.442695, %v684_v31  ;;  %v450_v37 = vmul.f32 -1.442695, %v686_v32  ;;  %v691_v38 = vadd.f32 %v512_v34, %v421_v11 }
  0xd8   :  { %549 = vpow2.f32 %v452_v33  ;;  %v693_v39 = vadd.f32 %v520_v35, %v421_v11  ;;  %v177_v40 = vpop.f32.mrf.mxu0  ;;  %v209_v41 = vpop.f32.mrf.mxu1 }
  0xd9   :  { %551 = vpow2.f32 %v442_v36  ;;  %v447_v42 = vmul.f32 -1.442695, %v691_v38  ;;  %v696_v43 = vadd.f32 %v421_v11, %v177_v40  ;;  %v698_v44 = vadd.f32 %v421_v11, %v209_v41 }
  0xda   :  { %553 = vpow2.f32 %v450_v37  ;;  %v455_v45 = vmul.f32 -1.442695, %v693_v39  ;;  %v513_v46 = vpop.f32.mrf.mxu0  ;;  %v521_v47 = vpop.f32.mrf.mxu1 }
  0xdb   :  { %555 = vpow2.f32 %v447_v42  ;;  %v445_v48 = vmul.f32 -1.442695, %v696_v43  ;;  %v453_v49 = vmul.f32 -1.442695, %v698_v44  ;;  %v703_v50 = vadd.f32 %v513_v46, %v421_v11 }
  0xdc   :  { %557 = vpow2.f32 %v455_v45  ;;  %v705_v51 = vadd.f32 %v521_v47, %v421_v11  ;;  %v180_v52 = vpop.f32.mrf.mxu0  ;;  %v212_v53 = vpop.f32.mrf.mxu1 }
  0xdd   :  { %559 = vpow2.f32 %v445_v48  ;;  %v448_v54 = vmul.f32 -1.442695, %v703_v50  ;;  %v708_v55 = vadd.f32 %v421_v11, %v180_v52  ;;  %v710_v56 = vadd.f32 %v421_v11, %v212_v53 }
  0xde   :  { %561 = vpow2.f32 %v453_v49  ;;  %v456_v57 = vmul.f32 -1.442695, %v705_v51 }
  0xdf   :  { %563 = vpow2.f32 %v448_v54  ;;  %v446_v58 = vmul.f32 -1.442695, %v708_v55  ;;  %v454_v59 = vmul.f32 -1.442695, %v710_v56 }
  0xe0   :  { %v540_v60 = vpop.eup %539  ;;  %565 = vpow2.f32 %v456_v57 }
  0xe1   :  { %v542_v61 = vpop.eup %541  ;;  %v274_v62 = vadd.f32 1.0, %v540_v60  ;;  %567 = vpow2.f32 %v446_v58 }
  0xe2   :  { %v544_v63 = vpop.eup %543  ;;  %v282_v0 = vadd.f32 1.0, %v542_v61  ;;  %569 = vpow2.f32 %v454_v59 }
  0xe3   :  { %v546_v1 = vpop.eup %545  ;;  %571 = vrcp.f32 %v274_v62  ;;  %v272_v2 = vadd.f32 1.0, %v544_v63 }
  0xe4   :  { %v548_v3 = vpop.eup %547  ;;  %573 = vrcp.f32 %v282_v0  ;;  %v280_v4 = vadd.f32 1.0, %v546_v1 }
  0xe5   :  { %v550_v5 = vpop.eup %549  ;;  %575 = vrcp.f32 %v272_v2  ;;  %v275_v6 = vadd.f32 1.0, %v548_v3 }
  0xe6   :  { %v552_v7 = vpop.eup %551  ;;  %577 = vrcp.f32 %v280_v4  ;;  %v283_v8 = vadd.f32 1.0, %v550_v5 }
  0xe7   :  { %v554_v9 = vpop.eup %553  ;;  %579 = vrcp.f32 %v275_v6  ;;  %v273_v10 = vadd.f32 1.0, %v552_v7 }
  0xe8   :  { %v556_v11 = vpop.eup %555  ;;  %581 = vrcp.f32 %v283_v8  ;;  %v281_v12 = vadd.f32 1.0, %v554_v9 }
  0xe9   :  { %v558_v13 = vpop.eup %557  ;;  %583 = vrcp.f32 %v273_v10  ;;  %v278_v16 = vadd.f32 1.0, %v556_v11 }
  0xea   :  { %v560_v17 = vpop.eup %559  ;;  %585 = vrcp.f32 %v281_v12  ;;  %v286_v18 = vadd.f32 1.0, %v558_v13 }
  0xeb   :  { %v562_v19 = vpop.eup %561  ;;  %587 = vrcp.f32 %v278_v16  ;;  %v276_v22 = vadd.f32 1.0, %v560_v17 }
  0xec   :  { %v564_v23 = vpop.eup %563  ;;  %589 = vrcp.f32 %v286_v18  ;;  %v284_v24 = vadd.f32 1.0, %v562_v19 }
  0xed   :  { %v566_v25 = vpop.eup %565  ;;  %591 = vrcp.f32 %v276_v22  ;;  %v279_v28 = vadd.f32 1.0, %v564_v23 }
  0xee   :  { %v568_v29 = vpop.eup %567  ;;  %593 = vrcp.f32 %v284_v24  ;;  %v287_v30 = vadd.f32 1.0, %v566_v25 }
  0xef   :  { %v570_v33 = vpop.eup %569  ;;  %595 = vrcp.f32 %v279_v28  ;;  %v277_v34 = vadd.f32 1.0, %v568_v29 }
  0xf0   :  { %v572_v35 = vpop.eup %571  ;;  %597 = vrcp.f32 %v287_v30  ;;  %v285_v36 = vadd.f32 1.0, %v570_v33 }
  0xf1   :  { %v574_v37 = vpop.eup %573  ;;  %v322_v40 = vmul.f32 %v572_v35, %v667_v14  ;;  %599 = vrcp.f32 %v277_v34 }
  0xf2   :  { %v576_v41 = vpop.eup %575  ;;  %v330_v42 = vmul.f32 %v574_v37, %v669_v15  ;;  %601 = vrcp.f32 %v285_v36 }
  0xf3   :  { %v578_v45 = vpop.eup %577  ;;  %v475_v46 = vpack.c.bf16 %v322_v40, %v322_v40  ;;  %v320_v47 = vmul.f32 %v576_v41, %v673_v20 }
  0xf4   :  { %v580_v48 = vpop.eup %579  ;;  %v483_v49 = vpack.c.bf16 %v330_v42, %v330_v42  ;;  %v328_v52 = vmul.f32 %v578_v45, %v675_v21 }
  0xf5   :  { %v582_v53 = vpop.eup %581  ;;  %403 = vst.msk [vmem:[%s798_s3 + $0x8] sm:$0xf] %vm400_vm1, %v475_v46  ;;  %v473_v14 = vpack.c.bf16 %v320_v47, %v320_v47  ;;  %v323_v54 = vmul.f32 %v580_v48, %v679_v26 }
  0xf6   :  { %v584_v57 = vpop.eup %583  ;;  %411 = vst.msk [vmem:[%s798_s3 + $0x28] sm:$0xf] %vm400_vm1, %v483_v49  ;;  %v481_v15 = vpack.c.bf16 %v328_v52, %v328_v52  ;;  %v331_v20 = vmul.f32 %v582_v53, %v681_v27 }
  0xf7   :  { %v586_v58 = vpop.eup %585  ;;  %401 = vst.msk [vmem:[%s798_s3] sm:$0xf] %vm400_vm1, %v473_v14  ;;  %v476_v21 = vpack.c.bf16 %v323_v54, %v323_v54  ;;  %v321_v59 = vmul.f32 %v584_v57, %v684_v31 }
  0xf8   :  { %v588_v60 = vpop.eup %587  ;;  %409 = vst.msk [vmem:[%s798_s3 + $0x20] sm:$0xf] %vm400_vm1, %v481_v15  ;;  %v484_v26 = vpack.c.bf16 %v331_v20, %v331_v20  ;;  %v329_v61 = vmul.f32 %v586_v58, %v686_v32 }
  0xf9   :  { %v590_v62 = vpop.eup %589  ;;  %404 = vst.msk [vmem:[%s798_s3 + $0xc] sm:$0xf] %vm400_vm1, %v476_v21  ;;  %v474_v27 = vpack.c.bf16 %v321_v59, %v321_v59  ;;  %v326_v63 = vmul.f32 %v588_v60, %v691_v38 }
  0xfa   :  { %v592_v0 = vpop.eup %591  ;;  %412 = vst.msk [vmem:[%s798_s3 + $0x2c] sm:$0xf] %vm400_vm1, %v484_v26  ;;  %v482_v31 = vpack.c.bf16 %v329_v61, %v329_v61  ;;  %v334_v1 = vmul.f32 %v590_v62, %v693_v39 }
  0xfb   :  { %v594_v2 = vpop.eup %593  ;;  %402 = vst.msk [vmem:[%s798_s3 + $0x4] sm:$0xf] %vm400_vm1, %v474_v27  ;;  %v479_v32 = vpack.c.bf16 %v326_v63, %v326_v63  ;;  %v324_v3 = vmul.f32 %v592_v0, %v696_v43 }
  0xfc   :  { %v596_v4 = vpop.eup %595  ;;  %410 = vst.msk [vmem:[%s798_s3 + $0x24] sm:$0xf] %vm400_vm1, %v482_v31  ;;  %v487_v38 = vpack.c.bf16 %v334_v1, %v334_v1  ;;  %v332_v5 = vmul.f32 %v594_v2, %v698_v44 }
  0xfd   :  { %v598_v6 = vpop.eup %597  ;;  %407 = vst.msk [vmem:[%s798_s3 + $0x18] sm:$0xf] %vm400_vm1, %v479_v32  ;;  %v477_v39 = vpack.c.bf16 %v324_v3, %v324_v3  ;;  %v327_v7 = vmul.f32 %v596_v4, %v703_v50 }
  0xfe   :  { %v600_v8 = vpop.eup %599  ;;  %415 = vst.msk [vmem:[%s798_s3 + $0x38] sm:$0xf] %vm400_vm1, %v487_v38  ;;  %v485_v43 = vpack.c.bf16 %v332_v5, %v332_v5  ;;  %v335_v9 = vmul.f32 %v598_v6, %v705_v51 }
  0xff   :  { %v602_v10 = vpop.eup %601  ;;  %405 = vst.msk [vmem:[%s798_s3 + $0x10] sm:$0xf] %vm400_vm1, %v477_v39  ;;  %v480_v44 = vpack.c.bf16 %v327_v7, %v327_v7  ;;  %v325_v11 = vmul.f32 %v600_v8, %v708_v55 }
 0x100   :  { %413 = vst.msk [vmem:[%s798_s3 + $0x30] sm:$0xf] %vm400_vm1, %v485_v43  ;;  %v488_v50 = vpack.c.bf16 %v335_v9, %v335_v9  ;;  %v333_v12 = vmul.f32 %v602_v10, %v710_v56 }
 0x101   :  { %408 = vst.msk [vmem:[%s798_s3 + $0x1c] sm:$0xf] %vm400_vm1, %v480_v44  ;;  %v478_v51 = vpack.c.bf16 %v325_v11, %v325_v11 }
 0x102   :  { %416 = vst.msk [vmem:[%s798_s3 + $0x3c] sm:$0xf] %vm400_vm1, %v488_v50  ;;  %v486_v55 = vpack.c.bf16 %v333_v12, %v333_v12 }
 0x103   :  { %406 = vst.msk [vmem:[%s798_s3 + $0x14] sm:$0xf] %vm400_vm1, %v478_v51 }
 0x104   :  { %414 = vst.msk [vmem:[%s798_s3 + $0x34] sm:$0xf] %vm400_vm1, %v486_v55 }

// kernel: _lambda_.22
= control target key start
LH: loop header
LB: loop body
LE: loop exit
PB: predicated region body
PF: predicated region fallthrough
CT: control target
= control target key end

     0   :  { %vm204_vm0 = vcmask 261120   ;;  %vm353_vm1 = vcmask 519168   ;;  %s590_s1 = inlined_call_operand.vmem [shape: bf16[288,64], index: 1, kind: input, shape index: {}]   ;;  %s591_s0 = inlined_call_operand.vmem [shape: bf16[32,288], index: 0, kind: input, shape index: {}]   ;;  %s592_s2 = inlined_call_operand.vmem [shape: f32[1,64], index: 2, kind: input, shape index: {}]   ;;  %s593_s3 = inlined_call_operand.vmem [shape: bf16[32,64], index: 3, kind: output, shape index: {}]  }
   0x1   :  { %v441_v0 = vld [vmem:[%s590_s1 + $0x78] sm:$0xff]   ;;  %v443_v2 = vld [vmem:[%s590_s1 + $0x70] sm:$0xff]   ;;  %v445_v4 = vld [vmem:[%s590_s1 + $0x68] sm:$0xff]  }
   0x2   :  { %v442_v1 = vld [vmem:[%s590_s1 + $0x38] sm:$0xff]   ;;  %401 = vmatprep.subr.bf16.mxu0 %v441_v0  ;;  %v444_v3 = vld [vmem:[%s590_s1 + $0x30] sm:$0xff]   ;;  %v446_v5 = vld [vmem:[%s590_s1 + $0x28] sm:$0xff]  }
   0x3   :  { %402 = vmatpush3.bf16.msra.mxu0 %v442_v1  ;;  %v447_v6 = vld [vmem:[%s590_s1 + $0x60] sm:$0xff]   ;;  %v449_v8 = vld [vmem:[%s590_s1 + $0x58] sm:$0xff]   ;;  %v456_v10 = vld [vmem:[%s590_s1 + $0x88] sm:$0xff]  }
   0x4   :  { %403 = vmatprep.subr.bf16.mxu0 %v443_v2  ;;  %v448_v7 = vld [vmem:[%s590_s1 + $0x20] sm:$0xff]   ;;  %v450_v9 = vld [vmem:[%s590_s1 + $0x18] sm:$0xff]   ;;  %v451_v11 = vld [vmem:[%s590_s1 + $0x50] sm:$0xff]   ;;  %433 = vmatprep.subr.bf16.mxu1 %v456_v10 }
   0x5   :  { %v452_v12 = vld [vmem:[%s590_s1 + $0x10] sm:$0xff]   ;;  %v453_v13 = vld [vmem:[%s590_s1 + $0x48] sm:$0xff]   ;;  %434 = vmatpush3.bf16.msra.mxu1 %v456_v10  ;;  %v461_v15 = vld [vmem:[%s590_s1 + $0x80] sm:$0xff]  }
   0x6   :  { %v460_v14 = vld [vmem:[%s591_s0 + $0x4] ss:$12 sps:$4 sm:$0xff]   ;;  %v462_v16 = vld [vmem:[%s591_s0 + $0x8] ss:$12 sps:$4 sm:$0xff]   ;;  %435 = vmatprep.subr.bf16.mxu1 %v461_v15  ;;  %v463_v17 = vld [vmem:[%s591_s0 + $0x20] ss:$12 sps:$4 sm:$0xff]  }
   0x7   :  { %404 = vmatpush3.bf16.msra.mxu0 %v444_v3  ;;  %243 = vmatprep.mubr.bf16.mxu0 %v460_v14  ;;  %v454_v18 = vld [vmem:[%s590_s1 + $0x8] sm:$0xff]   ;;  %v455_v19 = vld [vmem:[%s590_s1 + $0x40] sm:$0xff]  }
   0x8   :  { %405 = vmatprep.subr.bf16.mxu0 %v445_v4  ;;  %437 = vmatprep.mubr.msk.bf16.mxu1 %vm204_vm0, %v462_v16  ;;  %v457_v20 = vld [vmem:[%s590_s1] sm:$0xff]   ;;  %v464_v22 = vld [vmem:[%s591_s0 + $0x1c] ss:$12 sps:$4 sm:$0xff]  }
   0x9   :  { %436 = vmatpush3.bf16.msra.mxu1 %v461_v15  ;;  %v458_v21 = vld [vmem:[%s591_s0] ss:$12 sps:$4 sm:$0xff]   ;;  %v466_v23 = vld [vmem:[%s591_s0 + $0x18] ss:$12 sps:$4 sm:$0xff]  }
   0xa   :  { %v362_v28 = vld [vmem:[%s592_s2] ss:$0 sm:$0xff] }
   0xb   :  { %406 = vmatpush3.bf16.msra.mxu0 %v446_v5 }
   0xc   :  { %407 = vmatprep.subr.bf16.mxu0 %v447_v6  ;;  %438 = vmatmul.mubr.msk.bf16.vlgmr.msra.gmra.mxu1 %vm204_vm0, %v463_v17 }
   0xf   :  { %408 = vmatpush3.bf16.msra.mxu0 %v448_v7 }
  0x10   :  { %409 = vmatprep.subr.bf16.mxu0 %v449_v8 }
  0x13   :  { %410 = vmatpush3.bf16.msra.mxu0 %v450_v9 }
  0x14   :  { %411 = vmatprep.subr.bf16.mxu0 %v451_v11 }
  0x17   :  { %412 = vmatpush3.bf16.msra.mxu0 %v452_v12 }
  0x18   :  { %413 = vmatprep.subr.bf16.mxu0 %v453_v13 }
  0x1b   :  { %414 = vmatpush3.bf16.msra.mxu0 %v454_v18 }
  0x1c   :  { %415 = vmatprep.subr.bf16.mxu0 %v455_v19 }
  0x1f   :  { %416 = vmatpush3.bf16.msra.mxu0 %v457_v20 }
  0x22   :  { %244 = vmatmul.mubr.bf16.vlgmr.msra.gmra.mxu0 %v458_v21 }
  0x23   :  { %251 = vmatprep.mubr.bf16.mxu0 %v464_v22 }
  0x2a   :  { %252 = vmatmul.mubr.bf16.gmra.mxu0 %v466_v23 }
  0xcc   :  { %v439_v24 = vpop.f32.mrf.mxu1 }
  0xce   :  { %v294_v26 = vpop.f32.mrf.mxu1 }
  0xd0   :  { %v440_v31 = vpop.f32.mrf.mxu1 }
  0xd2   :  { %v297_v37 = vpop.f32.mrf.mxu1 }
  0xe2   :  { %v417_v25 = vpop.f32.mrf.mxu0 }
  0xe4   :  { %v418_v27 = vpop.f32.mrf.mxu0 }
  0xe5   :  { %v419_v29 = vadd.f32 %v418_v27, %v417_v25 }
  0xe6   :  { %v420_v30 = vpop.f32.mrf.mxu0 }
  0xe7   :  { %v246_v32 = vadd.f32 %v419_v29, %v362_v28 }
  0xe8   :  { %v421_v33 = vpop.f32.mrf.mxu0 }
  0xe9   :  { %v422_v34 = vadd.f32 %v421_v33, %v420_v30  ;;  %v295_v35 = vadd.f32 %v294_v26, %v246_v32 }
  0xea   :  { %v423_v36 = vpop.f32.mrf.mxu0 }
  0xeb   :  { %v389_v38 = vmul.f32 -1.442695, %v295_v35  ;;  %v249_v39 = vadd.f32 %v422_v34, %v362_v28 }
  0xec   :  { %v424_v40 = vpop.f32.mrf.mxu0 }
  0xed   :  { %467 = vpow2.f32 %v389_v38  ;;  %v425_v41 = vadd.f32 %v424_v40, %v423_v36  ;;  %v298_v42 = vadd.f32 %v297_v37, %v249_v39 }
  0xee   :  { %v426_v43 = vpop.f32.mrf.mxu0 }
  0xef   :  { %v254_v44 = vadd.f32 %v425_v41, %v362_v28  ;;  %v390_v45 = vmul.f32 -1.442695, %v298_v42 }
  0xf0   :  { %v427_v46 = vpop.f32.mrf.mxu0 }
  0xf1   :  { %v303_v47 = vadd.f32 %v439_v24, %v254_v44  ;;  %469 = vpow2.f32 %v390_v45  ;;  %v428_v48 = vadd.f32 %v427_v46, %v426_v43 }
  0xf3   :  { %v391_v49 = vmul.f32 -1.442695, %v303_v47  ;;  %v257_v50 = vadd.f32 %v428_v48, %v362_v28 }
  0xf5   :  { %471 = vpow2.f32 %v391_v49  ;;  %v306_v51 = vadd.f32 %v440_v31, %v257_v50 }
  0xf7   :  { %v392_v52 = vmul.f32 -1.442695, %v306_v51 }
  0xf9   :  { %473 = vpow2.f32 %v392_v52 }
  0xfa   :  { %v468_v53 = vpop.eup %467 }
  0xfb   :  { %v321_v54 = vadd.f32 1.0, %v468_v53 }
  0xfd   :  { %475 = vrcp.f32 %v321_v54 }
  0xfe   :  { %v470_v55 = vpop.eup %469 }
  0xff   :  { %v322_v56 = vadd.f32 1.0, %v470_v55 }
 0x101   :  { %477 = vrcp.f32 %v322_v56 }
 0x102   :  { %v472_v57 = vpop.eup %471 }
 0x103   :  { %v323_v58 = vadd.f32 1.0, %v472_v57 }
 0x105   :  { %479 = vrcp.f32 %v323_v58 }
 0x106   :  { %v474_v59 = vpop.eup %473 }
 0x107   :  { %v324_v60 = vadd.f32 1.0, %v474_v59 }
 0x109   :  { %481 = vrcp.f32 %v324_v60 }
 0x10a   :  { %v476_v61 = vpop.eup %475 }
 0x10b   :  { %v333_v62 = vmul.f32 %v476_v61, %v295_v35 }
 0x10d   :  { %v397_v63 = vpack.c.bf16 %v333_v62, %v333_v62 }
 0x10e   :  { %v478_v0 = vpop.eup %477 }
 0x10f   :  { %354 = vst.msk [vmem:[%s593_s3] sm:$0xf] %vm353_vm1, %v397_v63  ;;  %v334_v1 = vmul.f32 %v478_v0, %v298_v42 }
 0x111   :  { %v398_v2 = vpack.c.bf16 %v334_v1, %v334_v1 }
 0x112   :  { %v480_v3 = vpop.eup %479 }
 0x113   :  { %v335_v4 = vmul.f32 %v480_v3, %v303_v47  ;;  %355 = vst.msk [vmem:[%s593_s3 + $0x4] sm:$0xf] %vm353_vm1, %v398_v2 }
 0x115   :  { %v399_v5 = vpack.c.bf16 %v335_v4, %v335_v4 }
 0x116   :  { %v482_v6 = vpop.eup %481 }
 0x117   :  { %356 = vst.msk [vmem:[%s593_s3 + $0x8] sm:$0xf] %vm353_vm1, %v399_v5  ;;  %v336_v7 = vmul.f32 %v482_v6, %v306_v51 }
 0x119   :  { %v400_v8 = vpack.c.bf16 %v336_v7, %v336_v7 }
 0x11b   :  { %357 = vst.msk [vmem:[%s593_s3 + $0xc] sm:$0xf] %vm353_vm1, %v400_v8 }

// kernel: _lambda_.23
= control target key start
LH: loop header
LB: loop body
LE: loop exit
PB: predicated region body
PF: predicated region fallthrough
CT: control target
= control target key end

     0   :  { %vm68_vm0 = vcmask 523264   ;;  %vm168_vm1 = vcmask 519168   ;;  %s291_s1 = inlined_call_operand.vmem [shape: bf16[64,64], index: 1, kind: input, shape index: {}]   ;;  %s292_s0 = inlined_call_operand.vmem [shape: bf16[32,64], index: 0, kind: input, shape index: {}]   ;;  %s293_s2 = inlined_call_operand.vmem [shape: f32[1,64], index: 2, kind: input, shape index: {}]   ;;  %s294_s3 = inlined_call_operand.vmem [shape: bf16[32,64], index: 3, kind: output, shape index: {}]  }
   0x1   :  { %v216_v0 = vld [vmem:[%s291_s1 + $0x18] sm:$0xff]   ;;  %v217_v1 = vld [vmem:[%s291_s1 + $0x10] sm:$0xff]   ;;  %v218_v2 = vld [vmem:[%s291_s1 + $0x8] sm:$0xff]  }
   0x2   :  { %204 = vmatprep.subr.bf16.mxu0 %v216_v0  ;;  %v220_v3 = vld [vmem:[%s292_s0] sm:$0xff]   ;;  %v221_v5 = vld [vmem:[%s292_s0 + $0x8] sm:$0xff]  }
   0x3   :  { %205 = vmatpush3.bf16.msra.mxu0 %v216_v0  ;;  %212 = vmatprep.mubr.msk.bf16.mxu0 %vm68_vm0, %v220_v3  ;;  %v219_v4 = vld [vmem:[%s291_s1] sm:$0xff]  }
   0x4   :  { %206 = vmatprep.subr.bf16.mxu0 %v217_v1  ;;  %v177_v6 = vld [vmem:[%s293_s2] ss:$0 sm:$0xff] }
   0x7   :  { %207 = vmatpush3.bf16.msra.mxu0 %v217_v1 }
   0x8   :  { %208 = vmatprep.subr.bf16.mxu0 %v218_v2 }
   0xb   :  { %209 = vmatpush3.bf16.msra.mxu0 %v218_v2 }
   0xc   :  { %210 = vmatprep.subr.bf16.mxu0 %v219_v4 }
   0xf   :  { %211 = vmatpush3.bf16.msra.mxu0 %v219_v4 }
  0x12   :  { %213 = vmatmul.mubr.msk.bf16.vlgmr.msra.gmra.mxu0 %vm68_vm0, %v221_v5 }
  0xd2   :  { %v214_v7 = vpop.f32.mrf.mxu0 }
  0xd3   :  { %v118_v8 = vadd.f32 %v214_v7, %v177_v6 }
  0xd4   :  { %v109_v9 = vpop.f32.mrf.mxu0 }
  0xd5   :  { %v188_v10 = vmul.f32 -1.442695, %v118_v8  ;;  %v110_v11 = vadd.f32 %v177_v6, %v109_v9 }
  0xd6   :  { %v215_v12 = vpop.f32.mrf.mxu0 }
  0xd7   :  { %222 = vpow2.f32 %v188_v10  ;;  %v186_v13 = vmul.f32 -1.442695, %v110_v11  ;;  %v121_v14 = vadd.f32 %v215_v12, %v177_v6 }
  0xd8   :  { %v112_v15 = vpop.f32.mrf.mxu0 }
  0xd9   :  { %224 = vpow2.f32 %v186_v13  ;;  %v189_v16 = vmul.f32 -1.442695, %v121_v14  ;;  %v113_v17 = vadd.f32 %v177_v6, %v112_v15 }
  0xdb   :  { %226 = vpow2.f32 %v189_v16  ;;  %v187_v18 = vmul.f32 -1.442695, %v113_v17 }
  0xdd   :  { %228 = vpow2.f32 %v187_v18 }
  0xe4   :  { %v223_v19 = vpop.eup %222 }
  0xe5   :  { %v138_v20 = vadd.f32 1.0, %v223_v19 }
  0xe6   :  { %v225_v21 = vpop.eup %224 }
  0xe7   :  { %230 = vrcp.f32 %v138_v20  ;;  %v136_v22 = vadd.f32 1.0, %v225_v21 }
  0xe8   :  { %v227_v23 = vpop.eup %226 }
  0xe9   :  { %232 = vrcp.f32 %v136_v22  ;;  %v139_v24 = vadd.f32 1.0, %v227_v23 }
  0xea   :  { %v229_v25 = vpop.eup %228 }
  0xeb   :  { %234 = vrcp.f32 %v139_v24  ;;  %v137_v26 = vadd.f32 1.0, %v229_v25 }
  0xed   :  { %236 = vrcp.f32 %v137_v26 }
  0xf4   :  { %v231_v27 = vpop.eup %230 }
  0xf5   :  { %v150_v28 = vmul.f32 %v231_v27, %v118_v8 }
  0xf6   :  { %v233_v29 = vpop.eup %232 }
  0xf7   :  { %v196_v30 = vpack.c.bf16 %v150_v28, %v150_v28  ;;  %v148_v31 = vmul.f32 %v233_v29, %v110_v11 }
  0xf8   :  { %v235_v32 = vpop.eup %234 }
  0xf9   :  { %171 = vst.msk [vmem:[%s294_s3 + $0x8] sm:$0xf] %vm168_vm1, %v196_v30  ;;  %v194_v33 = vpack.c.bf16 %v148_v31, %v148_v31  ;;  %v151_v34 = vmul.f32 %v235_v32, %v121_v14 }
  0xfa   :  { %v237_v35 = vpop.eup %236 }
  0xfb   :  { %169 = vst.msk [vmem:[%s294_s3] sm:$0xf] %vm168_vm1, %v194_v33  ;;  %v197_v36 = vpack.c.bf16 %v151_v34, %v151_v34  ;;  %v149_v37 = vmul.f32 %v237_v35, %v113_v17 }
  0xfd   :  { %172 = vst.msk [vmem:[%s294_s3 + $0xc] sm:$0xf] %vm168_vm1, %v197_v36  ;;  %v195_v38 = vpack.c.bf16 %v149_v37, %v149_v37 }
  0xff   :  { %170 = vst.msk [vmem:[%s294_s3 + $0x4] sm:$0xf] %vm168_vm1, %v195_v38 }

// kernel: _lambda_.24
= control target key start
LH: loop header
LB: loop body
LE: loop exit
PB: predicated region body
PF: predicated region fallthrough
CT: control target
= control target key end

     0   :  { %vm204_vm0 = vcmask 261120   ;;  %vm353_vm1 = vcmask 257024   ;;  %s590_s1 = inlined_call_operand.vmem [shape: bf16[288,32], index: 1, kind: input, shape index: {}]   ;;  %s591_s0 = inlined_call_operand.vmem [shape: bf16[32,288], index: 0, kind: input, shape index: {}]   ;;  %s592_s2 = inlined_call_operand.vmem [shape: f32[1,32], index: 2, kind: input, shape index: {}]   ;;  %s593_s3 = inlined_call_operand.vmem [shape: bf16[32,32], index: 3, kind: output, shape index: {}]  }
   0x1   :  { %v441_v0 = vld [vmem:[%s590_s1 + $0x78] sm:$0xff]   ;;  %v443_v2 = vld [vmem:[%s590_s1 + $0x70] sm:$0xff]   ;;  %v445_v4 = vld [vmem:[%s590_s1 + $0x68] sm:$0xff]  }
   0x2   :  { %v442_v1 = vld [vmem:[%s590_s1 + $0x38] sm:$0xff]   ;;  %401 = vmatprep.subr.bf16.mxu0 %v441_v0  ;;  %v444_v3 = vld [vmem:[%s590_s1 + $0x30] sm:$0xff]   ;;  %v446_v5 = vld [vmem:[%s590_s1 + $0x28] sm:$0xff]  }
   0x3   :  { %402 = vmatpush3.bf16.msra.mxu0 %v442_v1  ;;  %v447_v6 = vld [vmem:[%s590_s1 + $0x60] sm:$0xff]   ;;  %v449_v8 = vld [vmem:[%s590_s1 + $0x58] sm:$0xff]   ;;  %v456_v10 = vld [vmem:[%s590_s1 + $0x88] sm:$0xff]  }
   0x4   :  { %403 = vmatprep.subr.bf16.mxu0 %v443_v2  ;;  %v448_v7 = vld [vmem:[%s590_s1 + $0x20] sm:$0xff]   ;;  %v450_v9 = vld [vmem:[%s590_s1 + $0x18] sm:$0xff]   ;;  %v451_v11 = vld [vmem:[%s590_s1 + $0x50] sm:$0xff]   ;;  %433 = vmatprep.subr.bf16.mxu1 %v456_v10 }
   0x5   :  { %v452_v12 = vld [vmem:[%s590_s1 + $0x10] sm:$0xff]   ;;  %v453_v13 = vld [vmem:[%s590_s1 + $0x48] sm:$0xff]   ;;  %434 = vmatpush3.bf16.msra.mxu1 %v456_v10  ;;  %v461_v15 = vld [vmem:[%s590_s1 + $0x80] sm:$0xff]  }
   0x6   :  { %v460_v14 = vld [vmem:[%s591_s0 + $0x4] ss:$12 sps:$4 sm:$0xff]   ;;  %v462_v16 = vld [vmem:[%s591_s0 + $0x8] ss:$12 sps:$4 sm:$0xff]   ;;  %435 = vmatprep.subr.bf16.mxu1 %v461_v15  ;;  %v463_v17 = vld [vmem:[%s591_s0 + $0x20] ss:$12 sps:$4 sm:$0xff]  }
   0x7   :  { %404 = vmatpush3.bf16.msra.mxu0 %v444_v3  ;;  %243 = vmatprep.mubr.bf16.mxu0 %v460_v14  ;;  %v454_v18 = vld [vmem:[%s590_s1 + $0x8] sm:$0xff]   ;;  %v455_v19 = vld [vmem:[%s590_s1 + $0x40] sm:$0xff]  }
   0x8   :  { %405 = vmatprep.subr.bf16.mxu0 %v445_v4  ;;  %437 = vmatprep.mubr.msk.bf16.mxu1 %vm204_vm0, %v462_v16  ;;  %v457_v20 = vld [vmem:[%s590_s1] sm:$0xff]   ;;  %v464_v22 = vld [vmem:[%s591_s0 + $0x1c] ss:$12 sps:$4 sm:$0xff]  }
   0x9   :  { %436 = vmatpush3.bf16.msra.mxu1 %v461_v15  ;;  %v458_v21 = vld [vmem:[%s591_s0] ss:$12 sps:$4 sm:$0xff]   ;;  %v466_v23 = vld [vmem:[%s591_s0 + $0x18] ss:$12 sps:$4 sm:$0xff]  }
   0xa   :  { %v362_v28 = vld [vmem:[%s592_s2] ss:$0 sm:$0xff] }
   0xb   :  { %406 = vmatpush3.bf16.msra.mxu0 %v446_v5 }
   0xc   :  { %407 = vmatprep.subr.bf16.mxu0 %v447_v6  ;;  %438 = vmatmul.mubr.msk.bf16.vlgmr.msra.gmra.mxu1 %vm204_vm0, %v463_v17 }
   0xf   :  { %408 = vmatpush3.bf16.msra.mxu0 %v448_v7 }
  0x10   :  { %409 = vmatprep.subr.bf16.mxu0 %v449_v8 }
  0x13   :  { %410 = vmatpush3.bf16.msra.mxu0 %v450_v9 }
  0x14   :  { %411 = vmatprep.subr.bf16.mxu0 %v451_v11 }
  0x17   :  { %412 = vmatpush3.bf16.msra.mxu0 %v452_v12 }
  0x18   :  { %413 = vmatprep.subr.bf16.mxu0 %v453_v13 }
  0x1b   :  { %414 = vmatpush3.bf16.msra.mxu0 %v454_v18 }
  0x1c   :  { %415 = vmatprep.subr.bf16.mxu0 %v455_v19 }
  0x1f   :  { %416 = vmatpush3.bf16.msra.mxu0 %v457_v20 }
  0x22   :  { %244 = vmatmul.mubr.bf16.vlgmr.msra.gmra.mxu0 %v458_v21 }
  0x23   :  { %251 = vmatprep.mubr.bf16.mxu0 %v464_v22 }
  0x2a   :  { %252 = vmatmul.mubr.bf16.gmra.mxu0 %v466_v23 }
  0xcc   :  { %v439_v24 = vpop.f32.mrf.mxu1 }
  0xce   :  { %v294_v26 = vpop.f32.mrf.mxu1 }
  0xd0   :  { %v440_v31 = vpop.f32.mrf.mxu1 }
  0xd2   :  { %v297_v37 = vpop.f32.mrf.mxu1 }
  0xe2   :  { %v417_v25 = vpop.f32.mrf.mxu0 }
  0xe4   :  { %v418_v27 = vpop.f32.mrf.mxu0 }
  0xe5   :  { %v419_v29 = vadd.f32 %v418_v27, %v417_v25 }
  0xe6   :  { %v420_v30 = vpop.f32.mrf.mxu0 }
  0xe7   :  { %v246_v32 = vadd.f32 %v419_v29, %v362_v28 }
  0xe8   :  { %v421_v33 = vpop.f32.mrf.mxu0 }
  0xe9   :  { %v422_v34 = vadd.f32 %v421_v33, %v420_v30  ;;  %v295_v35 = vadd.f32 %v294_v26, %v246_v32 }
  0xea   :  { %v423_v36 = vpop.f32.mrf.mxu0 }
  0xeb   :  { %v389_v38 = vmul.f32 -1.442695, %v295_v35  ;;  %v249_v39 = vadd.f32 %v422_v34, %v362_v28 }
  0xec   :  { %v424_v40 = vpop.f32.mrf.mxu0 }
  0xed   :  { %467 = vpow2.f32 %v389_v38  ;;  %v425_v41 = vadd.f32 %v424_v40, %v423_v36  ;;  %v298_v42 = vadd.f32 %v297_v37, %v249_v39 }
  0xee   :  { %v426_v43 = vpop.f32.mrf.mxu0 }
  0xef   :  { %v254_v44 = vadd.f32 %v425_v41, %v362_v28  ;;  %v390_v45 = vmul.f32 -1.442695, %v298_v42 }
  0xf0   :  { %v427_v46 = vpop.f32.mrf.mxu0 }
  0xf1   :  { %v303_v47 = vadd.f32 %v439_v24, %v254_v44  ;;  %469 = vpow2.f32 %v390_v45  ;;  %v428_v48 = vadd.f32 %v427_v46, %v426_v43 }
  0xf3   :  { %v391_v49 = vmul.f32 -1.442695, %v303_v47  ;;  %v257_v50 = vadd.f32 %v428_v48, %v362_v28 }
  0xf5   :  { %471 = vpow2.f32 %v391_v49  ;;  %v306_v51 = vadd.f32 %v440_v31, %v257_v50 }
  0xf7   :  { %v392_v52 = vmul.f32 -1.442695, %v306_v51 }
  0xf9   :  { %473 = vpow2.f32 %v392_v52 }
  0xfa   :  { %v468_v53 = vpop.eup %467 }
  0xfb   :  { %v321_v54 = vadd.f32 1.0, %v468_v53 }
  0xfd   :  { %475 = vrcp.f32 %v321_v54 }
  0xfe   :  { %v470_v55 = vpop.eup %469 }
  0xff   :  { %v322_v56 = vadd.f32 1.0, %v470_v55 }
 0x101   :  { %477 = vrcp.f32 %v322_v56 }
 0x102   :  { %v472_v57 = vpop.eup %471 }
 0x103   :  { %v323_v58 = vadd.f32 1.0, %v472_v57 }
 0x105   :  { %479 = vrcp.f32 %v323_v58 }
 0x106   :  { %v474_v59 = vpop.eup %473 }
 0x107   :  { %v324_v60 = vadd.f32 1.0, %v474_v59 }
 0x109   :  { %481 = vrcp.f32 %v324_v60 }
 0x10a   :  { %v476_v61 = vpop.eup %475 }
 0x10b   :  { %v333_v62 = vmul.f32 %v476_v61, %v295_v35 }
 0x10d   :  { %v397_v63 = vpack.c.bf16 %v333_v62, %v333_v62 }
 0x10e   :  { %v478_v0 = vpop.eup %477 }
 0x10f   :  { %354 = vst.msk [vmem:[%s593_s3] sm:$0xf] %vm353_vm1, %v397_v63  ;;  %v334_v1 = vmul.f32 %v478_v0, %v298_v42 }
 0x111   :  { %v398_v2 = vpack.c.bf16 %v334_v1, %v334_v1 }
 0x112   :  { %v480_v3 = vpop.eup %479 }
 0x113   :  { %v335_v4 = vmul.f32 %v480_v3, %v303_v47  ;;  %355 = vst.msk [vmem:[%s593_s3 + $0x4] sm:$0xf] %vm353_vm1, %v398_v2 }
 0x115   :  { %v399_v5 = vpack.c.bf16 %v335_v4, %v335_v4 }
 0x116   :  { %v482_v6 = vpop.eup %481 }
 0x117   :  { %356 = vst.msk [vmem:[%s593_s3 + $0x8] sm:$0xf] %vm353_vm1, %v399_v5  ;;  %v336_v7 = vmul.f32 %v482_v6, %v306_v51 }
 0x119   :  { %v400_v8 = vpack.c.bf16 %v336_v7, %v336_v7 }
 0x11b   :  { %357 = vst.msk [vmem:[%s593_s3 + $0xc] sm:$0xf] %vm353_vm1, %v400_v8 }

// kernel: _lambda_.26
= control target key start
LH: loop header
LB: loop body
LE: loop exit
PB: predicated region body
PF: predicated region fallthrough
CT: control target
= control target key end

     0   :  { %vm84_vm0 = vcmask 785408   ;;  %vm184_vm1 = vcmask 519168   ;;  %s325_s1 = inlined_call_operand.vmem [shape: bf16[96,64], index: 1, kind: input, shape index: {}]   ;;  %s326_s0 = inlined_call_operand.vmem [shape: bf16[32,96], index: 0, kind: input, shape index: {}]   ;;  %s327_s2 = inlined_call_operand.vmem [shape: f32[1,64], index: 2, kind: input, shape index: {}]   ;;  %s328_s3 = inlined_call_operand.vmem [shape: bf16[32,64], index: 3, kind: output, shape index: {}]  }
   0x1   :  { %v240_v0 = vld [vmem:[%s325_s1 + $0x28] sm:$0xff]   ;;  %v241_v1 = vld [vmem:[%s325_s1 + $0x20] sm:$0xff]   ;;  %v242_v2 = vld [vmem:[%s325_s1 + $0x18] sm:$0xff]  }
   0x2   :  { %224 = vmatprep.subr.bf16.mxu0 %v240_v0  ;;  %v246_v3 = vld [vmem:[%s326_s0] sm:$0xff]   ;;  %v243_v4 = vld [vmem:[%s325_s1 + $0x10] sm:$0xff]   ;;  %v244_v5 = vld [vmem:[%s325_s1 + $0x8] sm:$0xff]  }
   0x3   :  { %225 = vmatpush3.bf16.msra.mxu0 %v240_v0  ;;  %236 = vmatprep.mubr.msk.bf16.mxu0 %vm84_vm0, %v246_v3  ;;  %v245_v6 = vld [vmem:[%s325_s1] sm:$0xff]   ;;  %v247_v7 = vld [vmem:[%s326_s0 + $0x8] sm:$0xff]  }
   0x4   :  { %226 = vmatprep.subr.bf16.mxu0 %v241_v1  ;;  %v193_v8 = vld [vmem:[%s327_s2] ss:$0 sm:$0xff] }
   0x7   :  { %227 = vmatpush3.bf16.msra.mxu0 %v241_v1 }
   0x8   :  { %228 = vmatprep.subr.bf16.mxu0 %v242_v2 }
   0xb   :  { %229 = vmatpush3.bf16.msra.mxu0 %v242_v2 }
   0xc   :  { %230 = vmatprep.subr.bf16.mxu0 %v243_v4 }
   0xf   :  { %231 = vmatpush3.bf16.msra.mxu0 %v243_v4 }
  0x10   :  { %232 = vmatprep.subr.bf16.mxu0 %v244_v5 }
  0x13   :  { %233 = vmatpush3.bf16.msra.mxu0 %v244_v5 }
  0x14   :  { %234 = vmatprep.subr.bf16.mxu0 %v245_v6 }
  0x17   :  { %235 = vmatpush3.bf16.msra.mxu0 %v245_v6 }
  0x1a   :  { %237 = vmatmul.mubr.msk.bf16.vlgmr.msra.gmra.mxu0 %vm84_vm0, %v247_v7 }
  0xda   :  { %v238_v9 = vpop.f32.mrf.mxu0 }
  0xdb   :  { %v134_v10 = vadd.f32 %v238_v9, %v193_v8 }
  0xdc   :  { %v125_v11 = vpop.f32.mrf.mxu0 }
  0xdd   :  { %v206_v12 = vmul.f32 -1.442695, %v134_v10  ;;  %v126_v13 = vadd.f32 %v193_v8, %v125_v11 }
  0xde   :  { %v239_v14 = vpop.f32.mrf.mxu0 }
  0xdf   :  { %248 = vpow2.f32 %v206_v12  ;;  %v204_v15 = vmul.f32 -1.442695, %v126_v13  ;;  %v137_v16 = vadd.f32 %v239_v14, %v193_v8 }
  0xe0   :  { %v128_v17 = vpop.f32.mrf.mxu0 }
  0xe1   :  { %250 = vpow2.f32 %v204_v15  ;;  %v207_v18 = vmul.f32 -1.442695, %v137_v16  ;;  %v129_v19 = vadd.f32 %v193_v8, %v128_v17 }
  0xe3   :  { %252 = vpow2.f32 %v207_v18  ;;  %v205_v20 = vmul.f32 -1.442695, %v129_v19 }
  0xe5   :  { %254 = vpow2.f32 %v205_v20 }
  0xec   :  { %v249_v21 = vpop.eup %248 }
  0xed   :  { %v154_v22 = vadd.f32 1.0, %v249_v21 }
  0xee   :  { %v251_v23 = vpop.eup %250 }
  0xef   :  { %256 = vrcp.f32 %v154_v22  ;;  %v152_v24 = vadd.f32 1.0, %v251_v23 }
  0xf0   :  { %v253_v25 = vpop.eup %252 }
  0xf1   :  { %258 = vrcp.f32 %v152_v24  ;;  %v155_v26 = vadd.f32 1.0, %v253_v25 }
  0xf2   :  { %v255_v27 = vpop.eup %254 }
  0xf3   :  { %260 = vrcp.f32 %v155_v26  ;;  %v153_v28 = vadd.f32 1.0, %v255_v27 }
  0xf5   :  { %262 = vrcp.f32 %v153_v28 }
  0xfc   :  { %v257_v29 = vpop.eup %256 }
  0xfd   :  { %v166_v30 = vmul.f32 %v257_v29, %v134_v10 }
  0xfe   :  { %v259_v31 = vpop.eup %258 }
  0xff   :  { %v214_v32 = vpack.c.bf16 %v166_v30, %v166_v30  ;;  %v164_v33 = vmul.f32 %v259_v31, %v126_v13 }
 0x100   :  { %v261_v34 = vpop.eup %260 }
 0x101   :  { %187 = vst.msk [vmem:[%s328_s3 + $0x8] sm:$0xf] %vm184_vm1, %v214_v32  ;;  %v212_v35 = vpack.c.bf16 %v164_v33, %v164_v33  ;;  %v167_v36 = vmul.f32 %v261_v34, %v137_v16 }
 0x102   :  { %v263_v37 = vpop.eup %262 }
 0x103   :  { %185 = vst.msk [vmem:[%s328_s3] sm:$0xf] %vm184_vm1, %v212_v35  ;;  %v215_v38 = vpack.c.bf16 %v167_v36, %v167_v36  ;;  %v165_v39 = vmul.f32 %v263_v37, %v129_v19 }
 0x105   :  { %188 = vst.msk [vmem:[%s328_s3 + $0xc] sm:$0xf] %vm184_vm1, %v215_v38  ;;  %v213_v40 = vpack.c.bf16 %v165_v39, %v165_v39 }
 0x107   :  { %186 = vst.msk [vmem:[%s328_s3 + $0x4] sm:$0xf] %vm184_vm1, %v213_v40 }

// kernel: _lambda_.27
= control target key start
LH: loop header
LB: loop body
LE: loop exit
PB: predicated region body
PF: predicated region fallthrough
CT: control target
= control target key end

     0   :  { %vm68_vm0 = vcmask 523264   ;;  %vm168_vm1 = vcmask 257024   ;;  %s291_s1 = inlined_call_operand.vmem [shape: bf16[64,32], index: 1, kind: input, shape index: {}]   ;;  %s292_s0 = inlined_call_operand.vmem [shape: bf16[32,64], index: 0, kind: input, shape index: {}]   ;;  %s293_s2 = inlined_call_operand.vmem [shape: f32[1,32], index: 2, kind: input, shape index: {}]   ;;  %s294_s3 = inlined_call_operand.vmem [shape: bf16[32,32], index: 3, kind: output, shape index: {}]  }
   0x1   :  { %v216_v0 = vld [vmem:[%s291_s1 + $0x18] sm:$0xff]   ;;  %v217_v1 = vld [vmem:[%s291_s1 + $0x10] sm:$0xff]   ;;  %v218_v2 = vld [vmem:[%s291_s1 + $0x8] sm:$0xff]  }
   0x2   :  { %204 = vmatprep.subr.bf16.mxu0 %v216_v0  ;;  %v220_v3 = vld [vmem:[%s292_s0] sm:$0xff]   ;;  %v221_v5 = vld [vmem:[%s292_s0 + $0x8] sm:$0xff]  }
   0x3   :  { %205 = vmatpush3.bf16.msra.mxu0 %v216_v0  ;;  %212 = vmatprep.mubr.msk.bf16.mxu0 %vm68_vm0, %v220_v3  ;;  %v219_v4 = vld [vmem:[%s291_s1] sm:$0xff]  }
   0x4   :  { %206 = vmatprep.subr.bf16.mxu0 %v217_v1  ;;  %v177_v6 = vld [vmem:[%s293_s2] ss:$0 sm:$0xff] }
   0x7   :  { %207 = vmatpush3.bf16.msra.mxu0 %v217_v1 }
   0x8   :  { %208 = vmatprep.subr.bf16.mxu0 %v218_v2 }
   0xb   :  { %209 = vmatpush3.bf16.msra.mxu0 %v218_v2 }
   0xc   :  { %210 = vmatprep.subr.bf16.mxu0 %v219_v4 }
   0xf   :  { %211 = vmatpush3.bf16.msra.mxu0 %v219_v4 }
  0x12   :  { %213 = vmatmul.mubr.msk.bf16.vlgmr.msra.gmra.mxu0 %vm68_vm0, %v221_v5 }
  0xd2   :  { %v214_v7 = vpop.f32.mrf.mxu0 }
  0xd3   :  { %v118_v8 = vadd.f32 %v214_v7, %v177_v6 }
  0xd4   :  { %v109_v9 = vpop.f32.mrf.mxu0 }
  0xd5   :  { %v188_v10 = vmul.f32 -1.442695, %v118_v8  ;;  %v110_v11 = vadd.f32 %v177_v6, %v109_v9 }
  0xd6   :  { %v215_v12 = vpop.f32.mrf.mxu0 }
  0xd7   :  { %222 = vpow2.f32 %v188_v10  ;;  %v186_v13 = vmul.f32 -1.442695, %v110_v11  ;;  %v121_v14 = vadd.f32 %v215_v12, %v177_v6 }
  0xd8   :  { %v112_v15 = vpop.f32.mrf.mxu0 }
  0xd9   :  { %224 = vpow2.f32 %v186_v13  ;;  %v189_v16 = vmul.f32 -1.442695, %v121_v14  ;;  %v113_v17 = vadd.f32 %v177_v6, %v112_v15 }
  0xdb   :  { %226 = vpow2.f32 %v189_v16  ;;  %v187_v18 = vmul.f32 -1.442695, %v113_v17 }
  0xdd   :  { %228 = vpow2.f32 %v187_v18 }
  0xe4   :  { %v223_v19 = vpop.eup %222 }
  0xe5   :  { %v138_v20 = vadd.f32 1.0, %v223_v19 }
  0xe6   :  { %v225_v21 = vpop.eup %224 }
  0xe7   :  { %230 = vrcp.f32 %v138_v20  ;;  %v136_v22 = vadd.f32 1.0, %v225_v21 }
  0xe8   :  { %v227_v23 = vpop.eup %226 }
  0xe9   :  { %232 = vrcp.f32 %v136_v22  ;;  %v139_v24 = vadd.f32 1.0, %v227_v23 }
  0xea   :  { %v229_v25 = vpop.eup %228 }
  0xeb   :  { %234 = vrcp.f32 %v139_v24  ;;  %v137_v26 = vadd.f32 1.0, %v229_v25 }
  0xed   :  { %236 = vrcp.f32 %v137_v26 }
  0xf4   :  { %v231_v27 = vpop.eup %230 }
  0xf5   :  { %v150_v28 = vmul.f32 %v231_v27, %v118_v8 }
  0xf6   :  { %v233_v29 = vpop.eup %232 }
  0xf7   :  { %v196_v30 = vpack.c.bf16 %v150_v28, %v150_v28  ;;  %v148_v31 = vmul.f32 %v233_v29, %v110_v11 }
  0xf8   :  { %v235_v32 = vpop.eup %234 }
  0xf9   :  { %171 = vst.msk [vmem:[%s294_s3 + $0x8] sm:$0xf] %vm168_vm1, %v196_v30  ;;  %v194_v33 = vpack.c.bf16 %v148_v31, %v148_v31  ;;  %v151_v34 = vmul.f32 %v235_v32, %v121_v14 }
  0xfa   :  { %v237_v35 = vpop.eup %236 }
  0xfb   :  { %169 = vst.msk [vmem:[%s294_s3] sm:$0xf] %vm168_vm1, %v194_v33  ;;  %v197_v36 = vpack.c.bf16 %v151_v34, %v151_v34  ;;  %v149_v37 = vmul.f32 %v237_v35, %v113_v17 }
  0xfd   :  { %172 = vst.msk [vmem:[%s294_s3 + $0xc] sm:$0xf] %vm168_vm1, %v197_v36  ;;  %v195_v38 = vpack.c.bf16 %v149_v37, %v149_v37 }
  0xff   :  { %170 = vst.msk [vmem:[%s294_s3 + $0x4] sm:$0xf] %vm168_vm1, %v195_v38 }

// kernel: _lambda_.28
= control target key start
LH: loop header
LB: loop body
LE: loop exit
PB: predicated region body
PF: predicated region fallthrough
CT: control target
= control target key end

     0   :  { %vm195_vm0 = vcmask 519168   ;;  %s348_s1 = inlined_call_operand.vmem [shape: bf16[128,64], index: 1, kind: input, shape index: {}]   ;;  %s349_s0 = inlined_call_operand.vmem [shape: bf16[32,128], index: 0, kind: input, shape index: {}]   ;;  %s350_s2 = inlined_call_operand.vmem [shape: f32[1,64], index: 2, kind: input, shape index: {}]   ;;  %s351_s3 = inlined_call_operand.vmem [shape: bf16[32,64], index: 3, kind: output, shape index: {}]  }
   0x1   :  { %v257_v0 = vld [vmem:[%s348_s1 + $0x38] sm:$0xff]   ;;  %v258_v1 = vld [vmem:[%s348_s1 + $0x30] sm:$0xff]   ;;  %v259_v2 = vld [vmem:[%s348_s1 + $0x28] sm:$0xff]  }
   0x2   :  { %237 = vmatprep.subr.bf16.mxu0 %v257_v0  ;;  %v260_v3 = vld [vmem:[%s348_s1 + $0x20] sm:$0xff]   ;;  %v261_v5 = vld [vmem:[%s348_s1 + $0x18] sm:$0xff]   ;;  %v262_v6 = vld [vmem:[%s348_s1 + $0x10] sm:$0xff]  }
   0x3   :  { %238 = vmatpush3.bf16.msra.mxu0 %v257_v0  ;;  %v265_v4 = vld [vmem:[%s349_s0] sm:$0xff]   ;;  %v263_v7 = vld [vmem:[%s348_s1 + $0x8] sm:$0xff]  }
   0x4   :  { %239 = vmatprep.subr.bf16.mxu0 %v258_v1  ;;  %253 = vmatprep.mubr.bf16.mxu0 %v265_v4  ;;  %v264_v8 = vld [vmem:[%s348_s1] sm:$0xff]   ;;  %v266_v9 = vld [vmem:[%s349_s0 + $0x8] sm:$0xff]  }
   0x5   :  { %v204_v10 = vld [vmem:[%s350_s2] ss:$0 sm:$0xff] }
   0x7   :  { %240 = vmatpush3.bf16.msra.mxu0 %v258_v1 }
   0x8   :  { %241 = vmatprep.subr.bf16.mxu0 %v259_v2 }
   0xb   :  { %242 = vmatpush3.bf16.msra.mxu0 %v259_v2 }
   0xc   :  { %243 = vmatprep.subr.bf16.mxu0 %v260_v3 }
   0xf   :  { %244 = vmatpush3.bf16.msra.mxu0 %v260_v3 }
  0x10   :  { %245 = vmatprep.subr.bf16.mxu0 %v261_v5 }
  0x13   :  { %246 = vmatpush3.bf16.msra.mxu0 %v261_v5 }
  0x14   :  { %247 = vmatprep.subr.bf16.mxu0 %v262_v6 }
  0x17   :  { %248 = vmatpush3.bf16.msra.mxu0 %v262_v6 }
  0x18   :  { %249 = vmatprep.subr.bf16.mxu0 %v263_v7 }
  0x1b   :  { %250 = vmatpush3.bf16.msra.mxu0 %v263_v7 }
  0x1c   :  { %251 = vmatprep.subr.bf16.mxu0 %v264_v8 }
  0x1f   :  { %252 = vmatpush3.bf16.msra.mxu0 %v264_v8 }
  0x22   :  { %254 = vmatmul.mubr.bf16.vlgmr.msra.gmra.mxu0 %v266_v9 }
  0xe2   :  { %v255_v11 = vpop.f32.mrf.mxu0 }
  0xe3   :  { %v145_v12 = vadd.f32 %v255_v11, %v204_v10 }
  0xe4   :  { %v136_v13 = vpop.f32.mrf.mxu0 }
  0xe5   :  { %v217_v14 = vmul.f32 -1.442695, %v145_v12  ;;  %v137_v15 = vadd.f32 %v204_v10, %v136_v13 }
  0xe6   :  { %v256_v16 = vpop.f32.mrf.mxu0 }
  0xe7   :  { %267 = vpow2.f32 %v217_v14  ;;  %v215_v17 = vmul.f32 -1.442695, %v137_v15  ;;  %v148_v18 = vadd.f32 %v256_v16, %v204_v10 }
  0xe8   :  { %v139_v19 = vpop.f32.mrf.mxu0 }
  0xe9   :  { %269 = vpow2.f32 %v215_v17  ;;  %v218_v20 = vmul.f32 -1.442695, %v148_v18  ;;  %v140_v21 = vadd.f32 %v204_v10, %v139_v19 }
  0xeb   :  { %271 = vpow2.f32 %v218_v20  ;;  %v216_v22 = vmul.f32 -1.442695, %v140_v21 }
  0xed   :  { %273 = vpow2.f32 %v216_v22 }
  0xf4   :  { %v268_v23 = vpop.eup %267 }
  0xf5   :  { %v165_v24 = vadd.f32 1.0, %v268_v23 }
  0xf6   :  { %v270_v25 = vpop.eup %269 }
  0xf7   :  { %275 = vrcp.f32 %v165_v24  ;;  %v163_v26 = vadd.f32 1.0, %v270_v25 }
  0xf8   :  { %v272_v27 = vpop.eup %271 }
  0xf9   :  { %277 = vrcp.f32 %v163_v26  ;;  %v166_v28 = vadd.f32 1.0, %v272_v27 }
  0xfa   :  { %v274_v29 = vpop.eup %273 }
  0xfb   :  { %279 = vrcp.f32 %v166_v28  ;;  %v164_v30 = vadd.f32 1.0, %v274_v29 }
  0xfd   :  { %281 = vrcp.f32 %v164_v30 }
 0x104   :  { %v276_v31 = vpop.eup %275 }
 0x105   :  { %v177_v32 = vmul.f32 %v276_v31, %v145_v12 }
 0x106   :  { %v278_v33 = vpop.eup %277 }
 0x107   :  { %v225_v34 = vpack.c.bf16 %v177_v32, %v177_v32  ;;  %v175_v35 = vmul.f32 %v278_v33, %v137_v15 }
 0x108   :  { %v280_v36 = vpop.eup %279 }
 0x109   :  { %198 = vst.msk [vmem:[%s351_s3 + $0x8] sm:$0xf] %vm195_vm0, %v225_v34  ;;  %v223_v37 = vpack.c.bf16 %v175_v35, %v175_v35  ;;  %v178_v38 = vmul.f32 %v280_v36, %v148_v18 }
 0x10a   :  { %v282_v39 = vpop.eup %281 }
 0x10b   :  { %196 = vst.msk [vmem:[%s351_s3] sm:$0xf] %vm195_vm0, %v223_v37  ;;  %v226_v40 = vpack.c.bf16 %v178_v38, %v178_v38  ;;  %v176_v41 = vmul.f32 %v282_v39, %v140_v21 }
 0x10d   :  { %199 = vst.msk [vmem:[%s351_s3 + $0xc] sm:$0xf] %vm195_vm0, %v226_v40  ;;  %v224_v42 = vpack.c.bf16 %v176_v41, %v176_v41 }
 0x10f   :  { %197 = vst.msk [vmem:[%s351_s3 + $0x4] sm:$0xf] %vm195_vm0, %v224_v42 }

// kernel: _lambda_.31
= control target key start
LH: loop header
LB: loop body
LE: loop exit
PB: predicated region body
PF: predicated region fallthrough
CT: control target
= control target key end

     0   :  { %vm69_vm0 = vcmask 523264   ;;  %s251_s0 = inlined_call_operand.vmem [shape: bf16[32,64], index: 0, kind: input, shape index: {}]   ;;  %s252_s1 = inlined_call_operand.vmem [shape: bf16[64,65], index: 1, kind: input, shape index: {}]   ;;  %s253_s2 = inlined_call_operand.vmem [shape: f32[1,65], index: 2, kind: input, shape index: {}]   ;;  %s254_s3 = inlined_call_operand.hbm [shape: f32[32,65], index: 3, kind: output, shape index: {}]  }
   0x1   :  { %v176_v0 = vld [vmem:[%s252_s1 + $0x18] sm:$0xff]   ;;  %v177_v1 = vld [vmem:[%s252_s1 + $0x10] sm:$0xff]   ;;  %v178_v2 = vld [vmem:[%s252_s1 + $0x8] sm:$0xff]  }
   0x2   :  { %161 = vmatprep.subr.bf16.mxu0 %v176_v0  ;;  %v180_v3 = vld [vmem:[%s251_s0] sm:$0xff]  }
   0x3   :  { %162 = vmatpush3.bf16.msra.mxu0 %v176_v0  ;;  %169 = vmatprep.mubr.msk.bf16.mxu0 %vm69_vm0, %v180_v3 }
   0x4   :  { %163 = vmatprep.subr.bf16.mxu0 %v177_v1 }
   0x5   :  { %8 = vsyncpa [#allocation3], 0  ;;  %v179_v4 = vld [vmem:[%s252_s1] sm:$0xff]   ;;  %v181_v5 = vld [vmem:[%s251_s0 + $0x8] sm:$0xff]   ;;  %vm125_vm1 = vcmask 531456   ;;  %s204_s26 = smov [#allocation2]  }
   0x6   :  { %v146_v6 = vld [vmem:[%s253_s2] ss:$0 sm:$0xff]  ;;  %s135_s1 = sshll.u32 %s204_s26, 4  ;;  %s136_s1 = int_to_ptr.vmem [resolvable:$true] %s135_s1 }
   0x7   :  { %164 = vmatpush3.bf16.msra.mxu0 %v177_v1  ;;  %s182_s0 = scalar_lea.vmem %s136_s1, 512  ;;  %p187_p1 = scmp.lt.s32.totalorder %s136_s1, %s136_s1 }
   0x8   :  { %165 = vmatprep.subr.bf16.mxu0 %v178_v2  ;;  %p183_p0 = scmp.ne.s32.totalorder %s136_s1, %s182_s0  ;;  %p188_p2 = scmp.lt.s32.totalorder %s182_s0, %s182_s0 }
   0xa   :  { %p189_p3 = por %p188_p2, %p187_p1 }
   0xb   :  { %166 = vmatpush3.bf16.msra.mxu0 %v178_v2 }
   0xc   :  { %167 = vmatprep.subr.bf16.mxu0 %v179_v4  ;;  %p190_p4 = pnand %p189_p3, %p183_p0 }
   0xf   :  { %168 = vmatpush3.bf16.msra.mxu0 %v179_v4 }
  0x12   :  { %170 = vmatmul.mubr.msk.bf16.vlgmr.msra.gmra.mxu0 %vm69_vm0, %v181_v5 }
  0xd2   :  { %v171_v7 = vpop.f32.mrf.mxu0 }
  0xd3   :  { %v119_v8 = vadd.f32 %v171_v7, %v146_v6 }
  0xd4   :  { %v110_v9 = vpop.f32.mrf.mxu0 }
  0xd5   :  { %128 = vst.msk [vmem:[#allocation2 + $0x10] sm:$0xff] %vm125_vm1, %v119_v8  ;;  %v111_v10 = vadd.f32 %v146_v6, %v110_v9 }
  0xd6   :  { %v172_v11 = vpop.f32.mrf.mxu0 }
  0xd7   :  { %126 = vst.msk [vmem:[#allocation2] sm:$0xff] %vm125_vm1, %v111_v10  ;;  %v122_v12 = vadd.f32 %v172_v11, %v146_v6 }
  0xd8   :  { %v113_v13 = vpop.f32.mrf.mxu0 }
  0xd9   :  { %129 = vst.msk [vmem:[#allocation2 + $0x18] sm:$0xff] %vm125_vm1, %v122_v12  ;;  %v114_v14 = vadd.f32 %v146_v6, %v113_v13 }
  0xdb   :  { %127 = vst.msk [vmem:[#allocation2 + $0x8] sm:$0xff] %vm125_vm1, %v114_v14 }
  0xdc   :  { %193 = shalt.err (!%p190_p4)
}
  0xdd   :  { %s205_s2 = smov 128   ;;  %s206_s27 = smov 8  }
  0xde   :  { %141 = dma.vmem_to_hbm [thread:$0]  %s136_s1, 512, %s254_s3, [#allocation3], %s205_s2, %s205_s2, %s206_s27  }
  0xdf   :  { %202 = dma.done.wait [#allocation3], 512  }
  0xe0   :  { %203 = vsyncadd [#allocation3], 4294966784 }
  0xe1   :  { %145 = vsyncpa [#allocation3], 1 }

// kernel: _lambda_.29
= control target key start
LH: loop header
LB: loop body
LE: loop exit
PB: predicated region body
PF: predicated region fallthrough
CT: control target
= control target key end

     0   :  { %vm372_vm0 = vcmask 523264   ;;  %vm570_vm1 = vcmask 519168   ;;  %s953_s1 = inlined_call_operand.vmem [shape: bf16[576,64], index: 1, kind: input, shape index: {}]   ;;  %s954_s0 = inlined_call_operand.vmem [shape: bf16[32,576], index: 0, kind: input, shape index: {}]   ;;  %s955_s2 = inlined_call_operand.vmem [shape: f32[1,64], index: 2, kind: input, shape index: {}]   ;;  %s956_s3 = inlined_call_operand.vmem [shape: bf16[32,64], index: 3, kind: output, shape index: {}]  }
   0x1   :  { %v714_v0 = vld [vmem:[%s953_s1 + $0x78] sm:$0xff]   ;;  %v718_v4 = vld [vmem:[%s953_s1 + $0x70] sm:$0xff]   ;;  %v722_v8 = vld [vmem:[%s953_s1 + $0x68] sm:$0xff]  }
   0x2   :  { %v715_v1 = vld [vmem:[%s953_s1 + $0xf8] sm:$0xff]   ;;  %640 = vmatprep.subr.bf16.mxu0 %v714_v0  ;;  %v719_v5 = vld [vmem:[%s953_s1 + $0xf0] sm:$0xff]   ;;  %v723_v9 = vld [vmem:[%s953_s1 + $0xe8] sm:$0xff]  }
   0x3   :  { %v716_v2 = vld [vmem:[%s953_s1 + $0x38] sm:$0xff]   ;;  %668 = vmatprep.subr.bf16.mxu1 %v715_v1  ;;  %v720_v6 = vld [vmem:[%s953_s1 + $0x30] sm:$0xff]   ;;  %v724_v10 = vld [vmem:[%s953_s1 + $0x28] sm:$0xff]  }
   0x4   :  { %v717_v3 = vld [vmem:[%s953_s1 + $0xb8] sm:$0xff]   ;;  %641 = vmatpush3.bf16.msra.mxu0 %v716_v2  ;;  %v721_v7 = vld [vmem:[%s953_s1 + $0xb0] sm:$0xff]   ;;  %v725_v11 = vld [vmem:[%s953_s1 + $0xa8] sm:$0xff]  }
   0x5   :  { %669 = vmatpush3.bf16.msra.mxu1 %v717_v3  ;;  %642 = vmatprep.subr.bf16.mxu0 %v718_v4  ;;  %v726_v12 = vld [vmem:[%s953_s1 + $0x60] sm:$0xff]   ;;  %v730_v16 = vld [vmem:[%s953_s1 + $0x58] sm:$0xff]   ;;  %v734_v20 = vld [vmem:[%s953_s1 + $0x50] sm:$0xff]  }
   0x6   :  { %670 = vmatprep.subr.bf16.mxu1 %v719_v5  ;;  %v727_v13 = vld [vmem:[%s953_s1 + $0xe0] sm:$0xff]   ;;  %v731_v17 = vld [vmem:[%s953_s1 + $0xd8] sm:$0xff]   ;;  %v735_v21 = vld [vmem:[%s953_s1 + $0xd0] sm:$0xff]  }
   0x7   :  { %v728_v14 = vld [vmem:[%s953_s1 + $0x20] sm:$0xff]   ;;  %v732_v18 = vld [vmem:[%s953_s1 + $0x18] sm:$0xff]   ;;  %v736_v22 = vld [vmem:[%s953_s1 + $0x10] sm:$0xff]  }
   0x8   :  { %643 = vmatpush3.bf16.msra.mxu0 %v720_v6  ;;  %v729_v15 = vld [vmem:[%s953_s1 + $0xa0] sm:$0xff]   ;;  %v733_v19 = vld [vmem:[%s953_s1 + $0x98] sm:$0xff]   ;;  %v737_v23 = vld [vmem:[%s953_s1 + $0x90] sm:$0xff]  }
   0x9   :  { %671 = vmatpush3.bf16.msra.mxu1 %v721_v7  ;;  %644 = vmatprep.subr.bf16.mxu0 %v722_v8  ;;  %v738_v24 = vld [vmem:[%s953_s1 + $0x48] sm:$0xff]   ;;  %v742_v28 = vld [vmem:[%s953_s1 + $0x40] sm:$0xff]   ;;  %v752_v36 = vld [vmem:[%s953_s1 + $0x118] sm:$0xff]  }
   0xa   :  { %672 = vmatprep.subr.bf16.mxu1 %v723_v9  ;;  %v739_v25 = vld [vmem:[%s953_s1 + $0xc8] sm:$0xff]   ;;  %v743_v29 = vld [vmem:[%s953_s1 + $0xc0] sm:$0xff]   ;;  %v753_v37 = vld [vmem:[%s953_s1 + $0x110] sm:$0xff]  }
   0xb   :  { %v740_v26 = vld [vmem:[%s953_s1 + $0x8] sm:$0xff]   ;;  %v744_v30 = vld [vmem:[%s953_s1] sm:$0xff]  }
   0xc   :  { %645 = vmatpush3.bf16.msra.mxu0 %v724_v10  ;;  %v741_v27 = vld [vmem:[%s953_s1 + $0x88] sm:$0xff]   ;;  %v745_v31 = vld [vmem:[%s953_s1 + $0x80] sm:$0xff]  }
   0xd   :  { %673 = vmatpush3.bf16.msra.mxu1 %v725_v11  ;;  %646 = vmatprep.subr.bf16.mxu0 %v726_v12  ;;  %v746_v32 = vld [vmem:[%s954_s0] ss:$20 sps:$4 sm:$0xff]   ;;  %v748_v33 = vld [vmem:[%s954_s0 + $0x4] ss:$20 sps:$4 sm:$0xff]   ;;  %v749_v34 = vld [vmem:[%s954_s0 + $0x8] ss:$20 sps:$4 sm:$0xff]  }
   0xe   :  { %674 = vmatprep.subr.bf16.mxu1 %v727_v13  ;;  %v751_v35 = vld [vmem:[%s954_s0 + $0xc] ss:$20 sps:$4 sm:$0xff]   ;;  %411 = vmatprep.mubr.bf16.mxu0 %v748_v33  ;;  %v756_v39 = vld [vmem:[%s954_s0 + $0x34] ss:$20 sps:$4 sm:$0xff]   ;;  %v759_v42 = vld [vmem:[%s954_s0 + $0x30] ss:$20 sps:$4 sm:$0xff]  }
   0xf   :  { %460 = vmatprep.mubr.bf16.mxu1 %v751_v35  ;;  %v754_v38 = vld [vmem:[%s954_s0 + $0x2c] ss:$20 sps:$4 sm:$0xff]   ;;  %v758_v40 = vld [vmem:[%s954_s0 + $0x28] ss:$20 sps:$4 sm:$0xff]   ;;  %v762_v43 = vld [vmem:[%s954_s0 + $0x10] ss:$20 sps:$4 sm:$0xff]  }
  0x10   :  { %647 = vmatpush3.bf16.msra.mxu0 %v728_v14  ;;  %v760_v41 = vld [vmem:[%s953_s1 + $0x108] sm:$0xff]   ;;  %v761_v44 = vld [vmem:[%s953_s1 + $0x100] sm:$0xff]  }
  0x11   :  { %675 = vmatpush3.bf16.msra.mxu1 %v729_v15  ;;  %648 = vmatprep.subr.bf16.mxu0 %v730_v16  ;;  %v763_v45 = vld [vmem:[%s954_s0 + $0x38] ss:$20 sps:$4 sm:$0xff]   ;;  %v579_v58 = vld [vmem:[%s955_s2] ss:$0 sm:$0xff] }
  0x12   :  { %676 = vmatprep.subr.bf16.mxu1 %v731_v17 }
  0x14   :  { %649 = vmatpush3.bf16.msra.mxu0 %v732_v18 }
  0x15   :  { %677 = vmatpush3.bf16.msra.mxu1 %v733_v19  ;;  %650 = vmatprep.subr.bf16.mxu0 %v734_v20 }
  0x16   :  { %678 = vmatprep.subr.bf16.mxu1 %v735_v21 }
  0x18   :  { %651 = vmatpush3.bf16.msra.mxu0 %v736_v22 }
  0x19   :  { %679 = vmatpush3.bf16.msra.mxu1 %v737_v23  ;;  %652 = vmatprep.subr.bf16.mxu0 %v738_v24 }
  0x1a   :  { %680 = vmatprep.subr.bf16.mxu1 %v739_v25 }
  0x1c   :  { %653 = vmatpush3.bf16.msra.mxu0 %v740_v26 }
  0x1d   :  { %681 = vmatpush3.bf16.msra.mxu1 %v741_v27  ;;  %654 = vmatprep.subr.bf16.mxu0 %v742_v28 }
  0x1e   :  { %682 = vmatprep.subr.bf16.mxu1 %v743_v29 }
  0x20   :  { %655 = vmatpush3.bf16.msra.mxu0 %v744_v30 }
  0x21   :  { %683 = vmatpush3.bf16.msra.mxu1 %v745_v31  ;;  %702 = vmatprep.subr.bf16.mxu0 %v752_v36 }
  0x23   :  { %412 = vmatmul.mubr.bf16.vlgmr.msra.gmra.mxu0 %v746_v32 }
  0x24   :  { %461 = vmatmul.mubr.bf16.vlgmr.msra.gmra.mxu1 %v749_v34  ;;  %703 = vmatpush3.bf16.msra.mxu0 %v752_v36 }
  0x25   :  { %704 = vmatprep.subr.bf16.mxu0 %v753_v37  ;;  %419 = vmatprep.mubr.bf16.mxu0 %v754_v38 }
  0x26   :  { %468 = vmatprep.mubr.bf16.mxu1 %v756_v39 }
  0x28   :  { %705 = vmatpush3.bf16.msra.mxu0 %v753_v37 }
  0x29   :  { %706 = vmatprep.subr.bf16.mxu0 %v760_v41 }
  0x2b   :  { %420 = vmatmul.mubr.bf16.gmra.mxu0 %v758_v40 }
  0x2c   :  { %469 = vmatmul.mubr.bf16.gmra.mxu1 %v759_v42  ;;  %710 = vmatprep.mubr.msk.bf16.mxu0 %vm372_vm0, %v762_v43 }
  0x2d   :  { %707 = vmatpush3.bf16.msra.mxu0 %v760_v41 }
  0x2e   :  { %708 = vmatprep.subr.bf16.mxu0 %v761_v44 }
  0x31   :  { %709 = vmatpush3.bf16.msra.mxu0 %v761_v44 }
  0x34   :  { %711 = vmatmul.mubr.msk.bf16.vlgmr.msra.gmra.mxu0 %vm372_vm0, %v763_v45 }
  0xe3   :  { %v656_v46 = vpop.f32.mrf.mxu0 }
  0xe4   :  { %v684_v47 = vpop.f32.mrf.mxu1 }
  0xe5   :  { %v657_v48 = vpop.f32.mrf.mxu0 }
  0xe6   :  { %v685_v49 = vpop.f32.mrf.mxu1  ;;  %v658_v56 = vadd.f32 %v657_v48, %v656_v46 }
  0xe7   :  { %v659_v50 = vpop.f32.mrf.mxu0  ;;  %v686_v2 = vadd.f32 %v685_v49, %v684_v47 }
  0xe8   :  { %v687_v51 = vpop.f32.mrf.mxu1  ;;  %v414_v1 = vadd.f32 %v658_v56, %v579_v58 }
  0xe9   :  { %v660_v52 = vpop.f32.mrf.mxu0 }
  0xea   :  { %v688_v53 = vpop.f32.mrf.mxu1  ;;  %v661_v3 = vadd.f32 %v660_v52, %v659_v50  ;;  %v463_v13 = vadd.f32 %v686_v2, %v414_v1 }
  0xeb   :  { %v662_v54 = vpop.f32.mrf.mxu0  ;;  %v689_v16 = vadd.f32 %v688_v53, %v687_v51 }
  0xec   :  { %v690_v55 = vpop.f32.mrf.mxu1  ;;  %v417_v11 = vadd.f32 %v661_v3, %v579_v58 }
  0xed   :  { %v663_v57 = vpop.f32.mrf.mxu0 }
  0xee   :  { %v664_v59 = vadd.f32 %v663_v57, %v662_v54  ;;  %v691_v60 = vpop.f32.mrf.mxu1  ;;  %v466_v22 = vadd.f32 %v689_v16, %v417_v11 }
  0xef   :  { %v692_v61 = vadd.f32 %v691_v60, %v690_v55  ;;  %v665_v62 = vpop.f32.mrf.mxu0 }
  0xf0   :  { %v422_v63 = vadd.f32 %v664_v59, %v579_v58  ;;  %v693_v0 = vpop.f32.mrf.mxu1 }
  0xf1   :  { %v666_v4 = vpop.f32.mrf.mxu0 }
  0xf2   :  { %v667_v5 = vadd.f32 %v666_v4, %v665_v62  ;;  %v694_v6 = vpop.f32.mrf.mxu1  ;;  %v471_v7 = vadd.f32 %v692_v61, %v422_v63 }
  0xf3   :  { %v695_v9 = vadd.f32 %v694_v6, %v693_v0 }
  0xf4   :  { %v425_v8 = vadd.f32 %v667_v5, %v579_v58  ;;  %v712_v10 = vpop.f32.mrf.mxu0 }
  0xf5   :  { %v520_v12 = vadd.f32 %v712_v10, %v471_v7 }
  0xf6   :  { %v511_v14 = vpop.f32.mrf.mxu0  ;;  %v474_v15 = vadd.f32 %v695_v9, %v425_v8 }
  0xf7   :  { %v630_v17 = vmul.f32 -1.442695, %v520_v12  ;;  %v512_v18 = vadd.f32 %v511_v14, %v463_v13 }
  0xf8   :  { %v713_v19 = vpop.f32.mrf.mxu0 }
  0xf9   :  { %764 = vpow2.f32 %v630_v17  ;;  %v628_v20 = vmul.f32 -1.442695, %v512_v18  ;;  %v523_v21 = vadd.f32 %v713_v19, %v474_v15 }
  0xfa   :  { %v514_v23 = vpop.f32.mrf.mxu0 }
  0xfb   :  { %766 = vpow2.f32 %v628_v20  ;;  %v631_v24 = vmul.f32 -1.442695, %v523_v21  ;;  %v515_v25 = vadd.f32 %v514_v23, %v466_v22 }
  0xfd   :  { %768 = vpow2.f32 %v631_v24  ;;  %v629_v26 = vmul.f32 -1.442695, %v515_v25 }
  0xff   :  { %770 = vpow2.f32 %v629_v26 }
 0x106   :  { %v765_v27 = vpop.eup %764 }
 0x107   :  { %v540_v28 = vadd.f32 1.0, %v765_v27 }
 0x108   :  { %v767_v29 = vpop.eup %766 }
 0x109   :  { %772 = vrcp.f32 %v540_v28  ;;  %v538_v30 = vadd.f32 1.0, %v767_v29 }
 0x10a   :  { %v769_v31 = vpop.eup %768 }
 0x10b   :  { %774 = vrcp.f32 %v538_v30  ;;  %v541_v32 = vadd.f32 1.0, %v769_v31 }
 0x10c   :  { %v771_v33 = vpop.eup %770 }
 0x10d   :  { %776 = vrcp.f32 %v541_v32  ;;  %v539_v34 = vadd.f32 1.0, %v771_v33 }
 0x10f   :  { %778 = vrcp.f32 %v539_v34 }
 0x116   :  { %v773_v35 = vpop.eup %772 }
 0x117   :  { %v552_v36 = vmul.f32 %v773_v35, %v520_v12 }
 0x118   :  { %v775_v37 = vpop.eup %774 }
 0x119   :  { %v638_v38 = vpack.c.bf16 %v552_v36, %v552_v36  ;;  %v550_v39 = vmul.f32 %v775_v37, %v512_v18 }
 0x11a   :  { %v777_v40 = vpop.eup %776 }
 0x11b   :  { %573 = vst.msk [vmem:[%s956_s3 + $0x8] sm:$0xf] %vm570_vm1, %v638_v38  ;;  %v636_v41 = vpack.c.bf16 %v550_v39, %v550_v39  ;;  %v553_v42 = vmul.f32 %v777_v40, %v523_v21 }
 0x11c   :  { %v779_v43 = vpop.eup %778 }
 0x11d   :  { %571 = vst.msk [vmem:[%s956_s3] sm:$0xf] %vm570_vm1, %v636_v41  ;;  %v639_v44 = vpack.c.bf16 %v553_v42, %v553_v42  ;;  %v551_v45 = vmul.f32 %v779_v43, %v515_v25 }
 0x11f   :  { %574 = vst.msk [vmem:[%s956_s3 + $0xc] sm:$0xf] %vm570_vm1, %v639_v44  ;;  %v637_v46 = vpack.c.bf16 %v551_v45, %v551_v45 }
 0x121   :  { %572 = vst.msk [vmem:[%s956_s3 + $0x4] sm:$0xf] %vm570_vm1, %v637_v46 }

</bundles_post_ra>
